<compile_context>
chip_gen: v6e
topology: v6e:2x2x1
jax: 0.10.0
libtpu: 0.0.40
codegen_flags: <defaults>
</compile_context>

<pallas_src>
import functools

import jax
import jax.numpy as jnp
from jax.experimental import pallas as pl
from jax.experimental.pallas import tpu as pltpu


def attention_kernel(xq_ref, xkv_ref, wq_ref, wkv_ref, wo_ref, b_ref, o_ref,
                     kv_ref, q_ref, m_ref, l_ref, acc_ref,
                     *, heads, dim_head, scale):
    """One grid step = (batch bi, q-tile qi, kv-tile ki); ki is the reduction axis."""
    qi = pl.program_id(1)
    ki = pl.program_id(2)
    nkv = pl.num_programs(2)
    hid = heads * dim_head
    tkv = xkv_ref.shape[-1]
    cdt = jnp.bfloat16          # MXU operand dtype (f32 accumulation everywhere)

    # ---- once per q-tile: project Q for this tile, reset online-softmax state ----
    @pl.when(ki == 0)
    def _init():
        xq = xq_ref[0].astype(cdt)                                   # (C, tq)
        q_all = jnp.dot(wq_ref[...], xq,
                        preferred_element_type=jnp.float32) * scale  # (hid, tq) f32
        # (hid, tq) -> (heads, d, tq): free sublane-split, no transposes needed.
        q_ref[...] = q_all.reshape(heads, dim_head, q_all.shape[-1]).astype(cdt)
        m_ref[...] = jnp.full(m_ref.shape, -jnp.inf, dtype=m_ref.dtype)
        l_ref[...] = jnp.zeros(l_ref.shape, dtype=l_ref.dtype)
        acc_ref[...] = jnp.zeros(acc_ref.shape, dtype=acc_ref.dtype)

    kv_start = pl.multiple_of(ki * tkv, tkv)

    # ---- once per (batch, kv-block): project K/V into the persistent bf16 cache ----
    @pl.when(qi == 0)
    def _project_kv():
        xkv = xkv_ref[0].astype(cdt)                                  # (C, tkv)
        kv = jnp.dot(wkv_ref[...], xkv,
                     preferred_element_type=jnp.float32)              # (2*hid, tkv) f32
        kv_ref[:, :, pl.ds(kv_start, tkv)] = kv.reshape(2, hid, tkv).astype(cdt)

    # ---- every step: one online-softmax update, reading K/V from the cache ----
    k3 = kv_ref[0, :, pl.ds(kv_start, tkv)].reshape(heads, dim_head, tkv)  # (h, d, tkv)
    v3 = kv_ref[1, :, pl.ds(kv_start, tkv)].reshape(heads, dim_head, tkv)  # (h, d, tkv)
    q = q_ref[...]                                                         # (h, d, tq)

    # sim[h, k, q] = sum_d k3[h,d,k] * q[h,d,q]  -> lane-dense (last dim = tq)
    sim = jnp.einsum('hdk,hdq->hkq', k3, q,
                     preferred_element_type=jnp.float32)               # (h, tkv, tq) f32

    m_prev = m_ref[...]                                                # (h, 1, tq)
    m_new = jnp.maximum(m_prev, jnp.max(sim, axis=1, keepdims=True))
    alpha = jnp.exp(m_prev - m_new)                                    # (h, 1, tq)
    p = jnp.exp(sim - m_new)                                           # (h, tkv, tq)
    l_ref[...] = alpha * l_ref[...] + jnp.sum(p, axis=1, keepdims=True)
    # Canonical per-head (d, tkv) @ (tkv, tq) matmul, bf16 operands, f32 accum.
    pv = jnp.einsum('hdk,hkq->hdq', v3, p.astype(cdt),
                    preferred_element_type=jnp.float32)                # (h, d, tq)
    acc_ref[...] = alpha * acc_ref[...] + pv
    m_ref[...] = m_new

    # ---- once per q-tile: normalize acc, fuse out-projection (+bias), single K=hid matmul ----
    @pl.when(ki == nkv - 1)
    def _finalize():
        acc_n = acc_ref[...] * pl.reciprocal(l_ref[...], approx=True)  # (h, d, tq)
        tq = acc_n.shape[-1]
        # (h, d, tq) -> (hid, tq) is a free merge; column order of wo is (h d),
        # matching PyTorch's 'b h (x y) d -> b (h d) x y'.
        out = jnp.dot(wo_ref[...], acc_n.reshape(hid, tq).astype(cdt),
                      preferred_element_type=jnp.float32)              # (C, tq)
        out = out + b_ref[...]                                         # bias (C, 1) broadcast
        o_ref[0] = out.astype(o_ref.dtype)                             # lane-dense (C, tq)


def _pick_tile(n, max_tile=512):
    """Largest multiple of 128 that divides n (capped), else n (single block)."""
    # TODO(synk): very large N that is not a multiple of 128 falls back to a single
    # full-N block, which may exceed VMEM (especially v7x's 64 MiB); pass explicit tiles.
    if n % 128 != 0 or n <= max_tile:
        return n
    t = (max_tile // 128) * 128
    while t >= 128:
        if n % t == 0:
            return t
        t -= 128
    return n


def attention_forward(x, w_qkv, w_out, b_out, heads=4, dim_head=32,
                      q_tile=None, kv_tile=None):
    """x: (B, C, H, W) NCHW; conv weights in PyTorch layout (O, I, 1, 1)."""
    b, c, hh, ww = x.shape
    n = hh * ww
    hid = heads * dim_head
    scale = dim_head ** -0.5
    assert w_qkv.shape == (3 * hid, c, 1, 1)
    assert w_out.shape == (c, hid, 1, 1)

    tq = q_tile if q_tile is not None else _pick_tile(n, 512)
    tkv = kv_tile if kv_tile is not None else _pick_tile(n, 512)
    assert n % tq == 0 and (tq % 128 == 0 or tq == n)
    assert n % tkv == 0 and (tkv % 128 == 0 or tkv == n)

    x_cn = x.reshape(b, c, n)                                   # (B, C, N): free reshape
    wq = w_qkv[:hid, :, 0, 0].astype(jnp.bfloat16)              # (hid, C)
    wkv = w_qkv[hid:, :, 0, 0].astype(jnp.bfloat16)             # (2*hid, C)
    wo = w_out[:, :, 0, 0].astype(jnp.bfloat16)                 # (C, hid), cols in (h d) order
    bias = b_out.astype(jnp.float32).reshape(c, 1)              # (C, 1)

    grid = (b, n // tq, n // tkv)
    kernel = functools.partial(attention_kernel, heads=heads,
                               dim_head=dim_head, scale=scale)

    y_cn = pl.pallas_call(
        kernel,
        out_shape=jax.ShapeDtypeStruct((b, c, n), x.dtype),
        grid=grid,
        in_specs=[
            # q-tile stream of x
            pl.BlockSpec((1, c, tq), lambda bi, qi, ki: (bi, 0, qi)),
            # kv-tile stream of x: only consumed on qi == 0; collapse the block
            # index afterwards so x is not re-streamed from HBM per q-tile.
            pl.BlockSpec((1, c, tkv),
                         lambda bi, qi, ki: (bi, 0, jnp.where(qi == 0, ki, 0))),
            pl.BlockSpec((hid, c), lambda bi, qi, ki: (0, 0)),          # wq (resident)
            pl.BlockSpec((2 * hid, c), lambda bi, qi, ki: (0, 0)),      # wkv (resident)
            pl.BlockSpec((c, hid), lambda bi, qi, ki: (0, 0)),          # out-proj weight
            pl.BlockSpec((c, 1), lambda bi, qi, ki: (0, 0)),            # out-proj bias
        ],
        out_specs=pl.BlockSpec((1, c, tq), lambda bi, qi, ki: (bi, 0, qi)),
        scratch_shapes=[
            pltpu.VMEM((2, hid, n), jnp.bfloat16),              # per-batch K/V cache
            pltpu.VMEM((heads, dim_head, tq), jnp.bfloat16),    # Q for the current q-tile
            pltpu.VMEM((heads, 1, tq), jnp.float32),            # running row max m
            pltpu.VMEM((heads, 1, tq), jnp.float32),            # running row sum l
            pltpu.VMEM((heads, dim_head, tq), jnp.float32),     # un-normalized output acc
        ],
        compiler_params=pltpu.CompilerParams(
            # qi must stay on one core: the K/V cache written at qi==0 is reused
            # by the later q-tiles of the same batch. Megacore splits over batch.
            dimension_semantics=("parallel", "arbitrary", "arbitrary"),
            vmem_limit_bytes=48 * 1024 * 1024,
        ),
    )(x_cn, x_cn, wq, wkv, wo, bias)

    return y_cn.reshape(b, c, hh, ww)


def reference_attention(x, w_qkv, w_out, b_out, heads=4, dim_head=32):
    """Pure-JAX mirror of the PyTorch forward, for verification (f32 throughout)."""
    b, c, hh, ww = x.shape
    n = hh * ww
    hidden = heads * dim_head
    scale = dim_head ** -0.5

    qkv = jnp.einsum('bcxy,oc->boxy', x, w_qkv[:, :, 0, 0])         # (B, 3*hidden, H, W)
    q, k, v = jnp.split(qkv, 3, axis=1)
    rearr = lambda t: t.reshape(b, heads, dim_head, n)              # 'b (h c) x y -> b h c (x y)'
    q, k, v = rearr(q), rearr(k), rearr(v)
    q = q * scale
    sim = jnp.einsum('bhdi,bhdj->bhij', q, k)
    sim = sim - jnp.max(sim, axis=-1, keepdims=True)
    attn = jax.nn.softmax(sim, axis=-1)
    out = jnp.einsum('bhij,bhdj->bhid', attn, v)                    # (B, h, N, d)
    out = jnp.transpose(out, (0, 1, 3, 2)).reshape(b, hidden, hh, ww)
    return (jnp.einsum('bcxy,oc->boxy', out, w_out[:, :, 0, 0])
            + b_out[None, :, None, None])


if __name__ == "__main__":
    B, C, H, W = 2, 8, 16, 16
    heads, dim_head = 4, 32
    hidden = heads * dim_head

    key = jax.random.PRNGKey(0)
    k1, k2, k3, k4 = jax.random.split(key, 4)
    x = jax.random.normal(k1, (B, C, H, W), jnp.float32)
    # Deterministic synthetic parameters (PyTorch conv weight layout O, I, 1, 1).
    w_qkv = jax.random.normal(k2, (3 * hidden, C, 1, 1), jnp.float32) * 0.1
    w_out = jax.random.normal(k3, (C, hidden, 1, 1), jnp.float32) * 0.1
    b_out = jax.random.normal(k4, (C,), jnp.float32) * 0.1

    y_ref = reference_attention(x, w_qkv, w_out, b_out, heads, dim_head)

    # bf16 MXU operands -> compare against the f32 reference at bf16-appropriate tolerance.
    TOL = dict(atol=2e-2, rtol=2e-2)

    # Default tiling (N=256 -> one q/kv block).
    y1 = attention_forward(x, w_qkv, w_out, b_out, heads, dim_head)
    y1 = jax.block_until_ready(y1)
    assert y1.shape == (B, C, H, W)
    assert jnp.allclose(y1, y_ref, **TOL), "mismatch vs reference (1 tile)"

    # Forced multi-block path (2 q-tiles x 2 kv-tiles) to exercise the online-softmax
    # carry and the qi>0 K/V-cache read path.
    y2 = attention_forward(x, w_qkv, w_out, b_out, heads, dim_head,
                           q_tile=128, kv_tile=128)
    y2 = jax.block_until_ready(y2)
    assert jnp.allclose(y2, y_ref, **TOL), "mismatch vs reference (tiled)"

    print("KERNEL_OK")
</pallas_src>

<mosaic_0001>
module attributes {stable_mosaic.version = 11 : i64} {
  func.func @attention_kernel(%arg0: i32, %arg1: i32, %arg2: i32, %arg3: memref<1x8x256xf32, #tpu.memory_space<vmem>>, %arg4: memref<1x8x256xf32, #tpu.memory_space<vmem>>, %arg5: memref<128x8xbf16, #tpu.memory_space<vmem>>, %arg6: memref<256x8xbf16, #tpu.memory_space<vmem>>, %arg7: memref<8x128xbf16, #tpu.memory_space<vmem>>, %arg8: memref<8x1xf32, #tpu.memory_space<vmem>>, %arg9: memref<1x8x256xf32, #tpu.memory_space<vmem>>, %arg10: memref<2x128x256xbf16, #tpu.memory_space<vmem>>, %arg11: memref<4x32x256xbf16, #tpu.memory_space<vmem>>, %arg12: memref<4x1x256xf32, #tpu.memory_space<vmem>>, %arg13: memref<4x1x256xf32, #tpu.memory_space<vmem>>, %arg14: memref<4x32x256xf32, #tpu.memory_space<vmem>>) attributes {dimension_semantics = [#tpu.dimension_semantics<parallel>, #tpu.dimension_semantics<arbitrary>, #tpu.dimension_semantics<arbitrary>], iteration_bounds = array<i64: 2, 1, 1>, scalar_prefetch = 0 : i64, scratch_operands = 5 : i64, tpu.core_type = #tpu.core_type<tc>, window_params = [{transform_indices = @transform_0, window_bounds = array<i64: 1, 8, 256>}, {transform_indices = @transform_1, window_bounds = array<i64: 1, 8, 256>}, {pipeline_mode = #tpu.pipeline_mode<synchronous>, transform_indices = @transform_2, window_bounds = array<i64: 128, 8>}, {pipeline_mode = #tpu.pipeline_mode<synchronous>, transform_indices = @transform_3, window_bounds = array<i64: 256, 8>}, {pipeline_mode = #tpu.pipeline_mode<synchronous>, transform_indices = @transform_4, window_bounds = array<i64: 8, 128>}, {pipeline_mode = #tpu.pipeline_mode<synchronous>, transform_indices = @transform_5, window_bounds = array<i64: 8, 1>}, {transform_indices = @transform_6, window_bounds = array<i64: 1, 8, 256>}]} {
    %c0_i32 = arith.constant 0 : i32
    %0 = arith.cmpi eq, %arg2, %c0_i32 : i32
    %1 = arith.extui %0 : i1 to i32
    %c0_i32_0 = arith.constant 0 : i32
    %2 = arith.cmpi ne, %1, %c0_i32_0 : i32
    scf.if %2 {
      %c0_31 = arith.constant 0 : index
      %c0_32 = arith.constant 0 : index
      %c0_33 = arith.constant 0 : index
      %44 = vector.load %arg3[%c0_31, %c0_32, %c0_33] : memref<1x8x256xf32, #tpu.memory_space<vmem>>, vector<1x8x256xf32>
      %45 = vector.shape_cast %44 : vector<1x8x256xf32> to vector<8x256xf32>
      %46 = arith.truncf %45 : vector<8x256xf32> to vector<8x256xbf16>
      %c0_34 = arith.constant 0 : index
      %c0_35 = arith.constant 0 : index
      %47 = vector.load %arg5[%c0_34, %c0_35] : memref<128x8xbf16, #tpu.memory_space<vmem>>, vector<128x8xbf16>
      %cst_36 = arith.constant dense<0.000000e+00> : vector<128x256xf32>
      %48 = tpu.matmul %47, %46, %cst_36 {dimension_numbers = #tpu.dot_dimension_numbers<[1], [0], [0], [1], [0, 0, 1, 1], [], []>} : vector<128x8xbf16>, vector<8x256xbf16>, vector<128x256xf32> -> vector<128x256xf32>
      %cst_37 = arith.constant 0.176776692 : f32
      %49 = vector.broadcast %cst_37 : f32 to vector<128x256xf32>
      %50 = arith.mulf %48, %49 : vector<128x256xf32>
      %51 = vector.shape_cast %50 : vector<128x256xf32> to vector<4x32x256xf32>
      %52 = arith.truncf %51 : vector<4x32x256xf32> to vector<4x32x256xbf16>
      %c0_38 = arith.constant 0 : index
      %c0_39 = arith.constant 0 : index
      %c0_40 = arith.constant 0 : index
      %53 = vector.load %arg11[%c0_38, %c0_39, %c0_40] : memref<4x32x256xbf16, #tpu.memory_space<vmem>>, vector<4x32x256xbf16>
      tpu.vector_store %arg11[%c0_38, %c0_39, %c0_40], %52 {strides = array<i32>} : memref<4x32x256xbf16, #tpu.memory_space<vmem>>, vector<4x32x256xbf16>,
      %cst_41 = arith.constant 0xFF800000 : f32
      %54 = vector.broadcast %cst_41 : f32 to vector<4x1x256xf32>
      %c0_42 = arith.constant 0 : index
      %c0_43 = arith.constant 0 : index
      %c0_44 = arith.constant 0 : index
      %55 = vector.load %arg12[%c0_42, %c0_43, %c0_44] : memref<4x1x256xf32, #tpu.memory_space<vmem>>, vector<4x1x256xf32>
      tpu.vector_store %arg12[%c0_42, %c0_43, %c0_44], %54 {strides = array<i32>} : memref<4x1x256xf32, #tpu.memory_space<vmem>>, vector<4x1x256xf32>,
      %cst_45 = arith.constant 0.000000e+00 : f32
      %56 = vector.broadcast %cst_45 : f32 to vector<4x1x256xf32>
      %c0_46 = arith.constant 0 : index
      %c0_47 = arith.constant 0 : index
      %c0_48 = arith.constant 0 : index
      %57 = vector.load %arg13[%c0_46, %c0_47, %c0_48] : memref<4x1x256xf32, #tpu.memory_space<vmem>>, vector<4x1x256xf32>
      tpu.vector_store %arg13[%c0_46, %c0_47, %c0_48], %56 {strides = array<i32>} : memref<4x1x256xf32, #tpu.memory_space<vmem>>, vector<4x1x256xf32>,
      %cst_49 = arith.constant 0.000000e+00 : f32
      %58 = vector.broadcast %cst_49 : f32 to vector<4x32x256xf32>
      %c0_50 = arith.constant 0 : index
      %c0_51 = arith.constant 0 : index
      %c0_52 = arith.constant 0 : index
      %59 = vector.load %arg14[%c0_50, %c0_51, %c0_52] : memref<4x32x256xf32, #tpu.memory_space<vmem>>, vector<4x32x256xf32>
      tpu.vector_store %arg14[%c0_50, %c0_51, %c0_52], %58 {strides = array<i32>} : memref<4x32x256xf32, #tpu.memory_space<vmem>>, vector<4x32x256xf32>,
    } else {
    }
    %c256_i32 = arith.constant 256 : i32
    %3 = arith.muli %arg2, %c256_i32 : i32
    %4 = tpu.assume_multiple %3, 256 : i32
    %c0_i32_1 = arith.constant 0 : i32
    %5 = arith.cmpi eq, %arg1, %c0_i32_1 : i32
    %6 = arith.extui %5 : i1 to i32
    %c0_i32_2 = arith.constant 0 : i32
    %7 = arith.cmpi ne, %6, %c0_i32_2 : i32
    scf.if %7 {
      %c0_31 = arith.constant 0 : index
      %c0_32 = arith.constant 0 : index
      %c0_33 = arith.constant 0 : index
      %44 = vector.load %arg4[%c0_31, %c0_32, %c0_33] : memref<1x8x256xf32, #tpu.memory_space<vmem>>, vector<1x8x256xf32>
      %45 = vector.shape_cast %44 : vector<1x8x256xf32> to vector<8x256xf32>
      %46 = arith.truncf %45 : vector<8x256xf32> to vector<8x256xbf16>
      %c0_34 = arith.constant 0 : index
      %c0_35 = arith.constant 0 : index
      %47 = vector.load %arg6[%c0_34, %c0_35] : memref<256x8xbf16, #tpu.memory_space<vmem>>, vector<256x8xbf16>
      %cst_36 = arith.constant dense<0.000000e+00> : vector<256x256xf32>
      %48 = tpu.matmul %47, %46, %cst_36 {dimension_numbers = #tpu.dot_dimension_numbers<[1], [0], [0], [1], [0, 0, 1, 1], [], []>} : vector<256x8xbf16>, vector<8x256xbf16>, vector<256x256xf32> -> vector<256x256xf32>
      %49 = vector.shape_cast %48 : vector<256x256xf32> to vector<2x128x256xf32>
      %50 = arith.truncf %49 : vector<2x128x256xf32> to vector<2x128x256xbf16>
      %c0_37 = arith.constant 0 : index
      %c0_38 = arith.constant 0 : index
      %51 = arith.index_cast %4 : i32 to index
      %52 = vector.load %arg10[%c0_37, %c0_38, %51] : memref<2x128x256xbf16, #tpu.memory_space<vmem>>, vector<2x128x256xbf16>
      tpu.vector_store %arg10[%c0_37, %c0_38, %51], %50 {strides = array<i32>} : memref<2x128x256xbf16, #tpu.memory_space<vmem>>, vector<2x128x256xbf16>,
    } else {
    }
    %c0 = arith.constant 0 : index
    %c0_3 = arith.constant 0 : index
    %8 = arith.index_cast %4 : i32 to index
    %9 = vector.load %arg10[%c0, %c0_3, %8] : memref<2x128x256xbf16, #tpu.memory_space<vmem>>, vector<1x128x256xbf16>
    %10 = vector.shape_cast %9 : vector<1x128x256xbf16> to vector<128x256xbf16>
    %11 = vector.shape_cast %10 : vector<128x256xbf16> to vector<4x32x256xbf16>
    %c1 = arith.constant 1 : index
    %c0_4 = arith.constant 0 : index
    %12 = arith.index_cast %4 : i32 to index
    %13 = vector.load %arg10[%c1, %c0_4, %12] : memref<2x128x256xbf16, #tpu.memory_space<vmem>>, vector<1x128x256xbf16>
    %14 = vector.shape_cast %13 : vector<1x128x256xbf16> to vector<128x256xbf16>
    %15 = vector.shape_cast %14 : vector<128x256xbf16> to vector<4x32x256xbf16>
    %c0_5 = arith.constant 0 : index
    %c0_6 = arith.constant 0 : index
    %c0_7 = arith.constant 0 : index
    %16 = vector.load %arg11[%c0_5, %c0_6, %c0_7] : memref<4x32x256xbf16, #tpu.memory_space<vmem>>, vector<4x32x256xbf16>
    "tpu.trace_start"() <{level = 10 : i32, message = "hdk,hdq->hkq"}> : () -> ()
    %cst = arith.constant dense<0.000000e+00> : vector<4x256x256xf32>
    %17 = tpu.matmul %11, %16, %cst {dimension_numbers = #tpu.dot_dimension_numbers<[1], [1], [2], [2], [0, 0, 0, 2, 1, 2], [0], [0]>} : vector<4x32x256xbf16>, vector<4x32x256xbf16>, vector<4x256x256xf32> -> vector<4x256x256xf32>
    "tpu.trace_stop"() : () -> ()
    %c0_8 = arith.constant 0 : index
    %c0_9 = arith.constant 0 : index
    %c0_10 = arith.constant 0 : index
    %18 = vector.load %arg12[%c0_8, %c0_9, %c0_10] : memref<4x1x256xf32, #tpu.memory_space<vmem>>, vector<4x1x256xf32>
    %cst_11 = arith.constant dense<0xFF800000> : vector<4x256xf32>
    %19 = vector.multi_reduction <maximumf>, %17, %cst_11 [1] : vector<4x256x256xf32> to vector<4x256xf32>
    %20 = vector.shape_cast %19 : vector<4x256xf32> to vector<4x1x256xf32>
    %21 = arith.maximumf %18, %20 : vector<4x1x256xf32>
    %22 = arith.subf %18, %21 : vector<4x1x256xf32>
    %23 = math.exp %22 : vector<4x1x256xf32>
    %24 = vector.broadcast %21 : vector<4x1x256xf32> to vector<4x256x256xf32>
    %25 = arith.subf %17, %24 : vector<4x256x256xf32>
    %26 = math.exp %25 : vector<4x256x256xf32>
    %c0_12 = arith.constant 0 : index
    %c0_13 = arith.constant 0 : index
    %c0_14 = arith.constant 0 : index
    %27 = vector.load %arg13[%c0_12, %c0_13, %c0_14] : memref<4x1x256xf32, #tpu.memory_space<vmem>>, vector<4x1x256xf32>
    %28 = arith.mulf %23, %27 : vector<4x1x256xf32>
    %cst_15 = arith.constant dense<0.000000e+00> : vector<4x256xf32>
    %29 = vector.multi_reduction <add>, %26, %cst_15 [1] : vector<4x256x256xf32> to vector<4x256xf32>
    %30 = vector.shape_cast %29 : vector<4x256xf32> to vector<4x1x256xf32>
    %31 = arith.addf %28, %30 : vector<4x1x256xf32>
    %c0_16 = arith.constant 0 : index
    %c0_17 = arith.constant 0 : index
    %c0_18 = arith.constant 0 : index
    %32 = vector.load %arg13[%c0_16, %c0_17, %c0_18] : memref<4x1x256xf32, #tpu.memory_space<vmem>>, vector<4x1x256xf32>
    tpu.vector_store %arg13[%c0_16, %c0_17, %c0_18], %31 {strides = array<i32>} : memref<4x1x256xf32, #tpu.memory_space<vmem>>, vector<4x1x256xf32>,
    %33 = arith.truncf %26 : vector<4x256x256xf32> to vector<4x256x256xbf16>
    "tpu.trace_start"() <{level = 10 : i32, message = "hdk,hkq->hdq"}> : () -> ()
    %cst_19 = arith.constant dense<0.000000e+00> : vector<4x32x256xf32>
    %34 = tpu.matmul %15, %33, %cst_19 {dimension_numbers = #tpu.dot_dimension_numbers<[2], [1], [1], [2], [0, 0, 0, 1, 1, 2], [0], [0]>} : vector<4x32x256xbf16>, vector<4x256x256xbf16>, vector<4x32x256xf32> -> vector<4x32x256xf32>
    "tpu.trace_stop"() : () -> ()
    %c0_20 = arith.constant 0 : index
    %c0_21 = arith.constant 0 : index
    %c0_22 = arith.constant 0 : index
    %35 = vector.load %arg14[%c0_20, %c0_21, %c0_22] : memref<4x32x256xf32, #tpu.memory_space<vmem>>, vector<4x32x256xf32>
    %36 = vector.broadcast %23 : vector<4x1x256xf32> to vector<4x32x256xf32>
    %37 = arith.mulf %36, %35 : vector<4x32x256xf32>
    %38 = arith.addf %37, %34 : vector<4x32x256xf32>
    %c0_23 = arith.constant 0 : index
    %c0_24 = arith.constant 0 : index
    %c0_25 = arith.constant 0 : index
    %39 = vector.load %arg14[%c0_23, %c0_24, %c0_25] : memref<4x32x256xf32, #tpu.memory_space<vmem>>, vector<4x32x256xf32>
    tpu.vector_store %arg14[%c0_23, %c0_24, %c0_25], %38 {strides = array<i32>} : memref<4x32x256xf32, #tpu.memory_space<vmem>>, vector<4x32x256xf32>,
    %c0_26 = arith.constant 0 : index
    %c0_27 = arith.constant 0 : index
    %c0_28 = arith.constant 0 : index
    %40 = vector.load %arg12[%c0_26, %c0_27, %c0_28] : memref<4x1x256xf32, #tpu.memory_space<vmem>>, vector<4x1x256xf32>
    tpu.vector_store %arg12[%c0_26, %c0_27, %c0_28], %21 {strides = array<i32>} : memref<4x1x256xf32, #tpu.memory_space<vmem>>, vector<4x1x256xf32>,
    %c0_i32_29 = arith.constant 0 : i32
    %41 = arith.cmpi eq, %arg2, %c0_i32_29 : i32
    %42 = arith.extui %41 : i1 to i32
    %c0_i32_30 = arith.constant 0 : i32
    %43 = arith.cmpi ne, %42, %c0_i32_30 : i32
    scf.if %43 {
      %c0_31 = arith.constant 0 : index
      %c0_32 = arith.constant 0 : index
      %c0_33 = arith.constant 0 : index
      %44 = vector.load %arg14[%c0_31, %c0_32, %c0_33] : memref<4x32x256xf32, #tpu.memory_space<vmem>>, vector<4x32x256xf32>
      %c0_34 = arith.constant 0 : index
      %c0_35 = arith.constant 0 : index
      %c0_36 = arith.constant 0 : index
      %45 = vector.load %arg13[%c0_34, %c0_35, %c0_36] : memref<4x1x256xf32, #tpu.memory_space<vmem>>, vector<4x1x256xf32>
      %46 = tpu.reciprocal %45 {approx = true} : vector<4x1x256xf32> -> vector<4x1x256xf32>
      %47 = vector.broadcast %46 : vector<4x1x256xf32> to vector<4x32x256xf32>
      %48 = arith.mulf %44, %47 : vector<4x32x256xf32>
      %c0_37 = arith.constant 0 : index
      %c0_38 = arith.constant 0 : index
      %49 = vector.load %arg7[%c0_37, %c0_38] : memref<8x128xbf16, #tpu.memory_space<vmem>>, vector<8x128xbf16>
      %50 = vector.shape_cast %48 : vector<4x32x256xf32> to vector<128x256xf32>
      %51 = arith.truncf %50 : vector<128x256xf32> to vector<128x256xbf16>
      %cst_39 = arith.constant dense<0.000000e+00> : vector<8x256xf32>
      %52 = tpu.matmul %49, %51, %cst_39 {dimension_numbers = #tpu.dot_dimension_numbers<[1], [0], [0], [1], [0, 0, 1, 1], [], []>} : vector<8x128xbf16>, vector<128x256xbf16>, vector<8x256xf32> -> vector<8x256xf32>
      %c0_40 = arith.constant 0 : index
      %c0_41 = arith.constant 0 : index
      %53 = vector.load %arg8[%c0_40, %c0_41] : memref<8x1xf32, #tpu.memory_space<vmem>>, vector<8x1xf32>
      %54 = vector.broadcast %53 : vector<8x1xf32> to vector<8x256xf32>
      %55 = arith.addf %52, %54 : vector<8x256xf32>
      %c0_42 = arith.constant 0 : index
      %c0_43 = arith.constant 0 : index
      %c0_44 = arith.constant 0 : index
      %56 = vector.load %arg9[%c0_42, %c0_43, %c0_44] : memref<1x8x256xf32, #tpu.memory_space<vmem>>, vector<1x8x256xf32>
      %57 = vector.shape_cast %56 : vector<1x8x256xf32> to vector<8x256xf32>
      %58 = vector.shape_cast %55 : vector<8x256xf32> to vector<1x8x256xf32>
      tpu.vector_store %arg9[%c0_42, %c0_43, %c0_44], %58 {strides = array<i32>} : memref<1x8x256xf32, #tpu.memory_space<vmem>>, vector<1x8x256xf32>,
    } else {
    }
    return
  }
  func.func @transform_0(%arg0: i32, %arg1: i32, %arg2: i32) -> (i32, i32, i32) {
    %c0_i32 = arith.constant 0 : i32
    %c0_i32_0 = arith.constant 0 : i32
    return %arg0, %c0_i32, %arg1 : i32, i32, i32
  }
  func.func @transform_1(%arg0: i32, %arg1: i32, %arg2: i32) -> (i32, i32, i32) {
    %c0_i32 = arith.constant 0 : i32
    %0 = arith.cmpi eq, %arg1, %c0_i32 : i32
    %c0_i32_0 = arith.constant 0 : i32
    %1 = arith.select %0, %arg2, %c0_i32_0 : i32
    %c0_i32_1 = arith.constant 0 : i32
    %c0_i32_2 = arith.constant 0 : i32
    return %arg0, %c0_i32_1, %1 : i32, i32, i32
  }
  func.func @transform_2(%arg0: i32, %arg1: i32, %arg2: i32) -> (i32, i32) {
    %c0_i32 = arith.constant 0 : i32
    %c0_i32_0 = arith.constant 0 : i32
    %c0_i32_1 = arith.constant 0 : i32
    return %c0_i32, %c0_i32_0 : i32, i32
  }
  func.func @transform_3(%arg0: i32, %arg1: i32, %arg2: i32) -> (i32, i32) {
    %c0_i32 = arith.constant 0 : i32
    %c0_i32_0 = arith.constant 0 : i32
    %c0_i32_1 = arith.constant 0 : i32
    return %c0_i32, %c0_i32_0 : i32, i32
  }
  func.func @transform_4(%arg0: i32, %arg1: i32, %arg2: i32) -> (i32, i32) {
    %c0_i32 = arith.constant 0 : i32
    %c0_i32_0 = arith.constant 0 : i32
    %c0_i32_1 = arith.constant 0 : i32
    return %c0_i32, %c0_i32_0 : i32, i32
  }
  func.func @transform_5(%arg0: i32, %arg1: i32, %arg2: i32) -> (i32, i32) {
    %c0_i32 = arith.constant 0 : i32
    %c0_i32_0 = arith.constant 0 : i32
    %c0_i32_1 = arith.constant 0 : i32
    return %c0_i32, %c0_i32_0 : i32, i32
  }
  func.func @transform_6(%arg0: i32, %arg1: i32, %arg2: i32) -> (i32, i32, i32) {
    %c0_i32 = arith.constant 0 : i32
    %c0_i32_0 = arith.constant 0 : i32
    return %arg0, %c0_i32, %arg1 : i32, i32, i32
  }
}

</mosaic_0001>

<bundles_post_ra>
// kernel: tpu_custom_call.1
= control target key start
LH: loop header
LB: loop body
LE: loop exit
PB: predicated region body
PF: predicated region fallthrough
CT: control target
= control target key end

     0   :  { %11 = vsyncpa [#allocation8], 0  ;;  %s10486_s0 = inlined_call_operand.vmem [shape: f32[2,8,256], index: 0, kind: input, shape index: {}]   ;;  %s10487_s1 = inlined_call_operand.vmem [shape: f32[2,8,256], index: 1, kind: input, shape index: {}]   ;;  %s10488_s2 = inlined_call_operand.vmem [shape: bf16[128,8], index: 2, kind: input, shape index: {}]   ;;  %s10489_s3 = inlined_call_operand.vmem [shape: bf16[256,8], index: 3, kind: input, shape index: {}]   ;;  %s10490_s4 = inlined_call_operand.vmem [shape: bf16[8,128], index: 4, kind: input, shape index: {}]   ;;  %s10491_s5 = inlined_call_operand.vmem [shape: f32[8,1], index: 5, kind: input, shape index: {}]   ;;  %s10492_s6 = inlined_call_operand.hbm [shape: f32[2,8,256], index: 6, kind: output, shape index: {}]  }
   0x1   :  { %13 = vsyncpa [#allocation8 + $0x1], 0  ;;  %s6204_s21 = smov 0   ;;  %s6206_s22 = smov 0  }
   0x2   :  { %s6208_s23 = smov 0   ;;  %s6210_s24 = smov 0  }
   0x3   :  { %s6212_s25 = smov 0   ;;  %s6214_s26 = smov 0  }
   0x4 LB: > { %s5132_s27 = sadd.s32 4294967295, %s6162_s26   ;;  %s5133_s28 = sadd.s32 4294967294, %s6162_s26   ;;  %s6162_s26 = sphi %s6214_s26, %s19_s26   ;;  %s6158_s25 = sphi %s6212_s25, %s12518_s25   ;;  %s6154_s24 = sphi %s6210_s24, %s12517_s24   ;;  %s6150_s23 = sphi %s6208_s23, %s12516_s23   ;;  %s6146_s22 = sphi %s6206_s22, %s12515_s22   ;;  %s6142_s21 = sphi %s6204_s21, %s12514_s21  }
   0x5   : > { %s38_s29 = sadd.s32 1, %s6158_s25  ;;  %s191_s30 = sadd.s32 1, %s6150_s23 }
   0x6   : > { %p40_p0 = scmp.ge.s32.totalorder %s38_s29, 2  ;;  %p201_p1 = scmp.ne.s32.totalorder %s6150_s23, %s6146_s22 }
   0x7   : > { %p202_p2 = scmp.eq.s32.totalorder %s5132_s27, 1  ;;  %p207_p3 = scmp.ne.s32.totalorder %s6146_s22, %s6142_s21 }
   0x8   : > { %s12520_s29 = smov (%p40_p0, %s38_s29), 0  ;;  %p208_p5 = scmp.eq.s32.totalorder %s5133_s28, 1 }
   0x9   : > { %p6244_p4 = por %p202_p2, %p201_p1  ;;  %s186_s8 = ssub.s32 %s6158_s25, %s12520_s29 }
   0xa   : > { %p5136_p6 = scmp.ge.s32.totalorder %s6162_s26, 1  ;;  %p189_p7 = scmp.eq.s32.totalorder %s186_s8, 0 }
   0xb   : > { %p6251_p8 = por %p208_p5, %p207_p3  ;;  %p268_p9 = scmp.lt.s32.totalorder %s6162_s26, 3 }
   0xc   : > { %s6257_s10 = scalar_select %p189_p7, %s6150_s23, %s191_s30  }
   0xd   : > { %p269_p10 = pnand %p5136_p6, %p268_p9 }
   0xf   : > { %272 = sbr.rel (%p269_p10) target bundleno = 1584 (0x630), region = 44 }
  0x14   : > { %p314_p11 = scmp.lt.s32.totalorder %s6154_s24, 1  ;;  %v10511_v0 = vmov 0   ;;  %vm428_vm0 = vcmask 1043456   ;;  %v5534_v8 = vld [vmem:[%s10488_s2] sm:$0xff]   ;;  %v5535_v11 = vld [vmem:[%s10488_s2 + $0x30] sm:$0xff]   ;;  %vm403_vm1 = vcmask 64512  }
  0x15   : > { %467 = vmatprep.mubr.bf16.mxu0 %v10511_v0  ;;  %527 = vmatprep.mubr.bf16.mxu1 %v10511_v0  ;;  %v5536_v13 = vld [vmem:[%s10488_s2 + $0x8] sm:$0xff]   ;;  %v5537_v14 = vld [vmem:[%s10488_s2 + $0x38] sm:$0xff]   ;;  %v5538_v15 = vld [vmem:[%s10488_s2 + $0x10] sm:$0xff]   ;;  %vm1461_vm2 = vcmask 261120   ;;  %s5423_s17 = sshll.u32 %s6154_s24, 8  ;;  %s6168_s8 = smov [#allocation7]  }
  0x16   : > { %s315_s11 = scalar_select %p314_p11, %s6154_s24, 1  ;;  %v5539_v16 = vld [vmem:[%s10489_s3] sm:$0xff]   ;;  %v5540_v17 = vld [vmem:[%s10488_s2 + $0x18] sm:$0xff]   ;;  %v5541_v18 = vld [vmem:[%s10489_s3 + $0x8] sm:$0xff]  }
  0x17   : > { %v5542_v19 = vld [vmem:[%s10489_s3 + $0x10] sm:$0xff]   ;;  %v5546_v20 = vld [vmem:[%s10488_s2 + $0x20] sm:$0xff]   ;;  %v5543_v21 = vld [vmem:[%s10489_s3 + $0x18] sm:$0xff]   ;;  %s10440_s28 = scalar_lea.hbm %s10492_s6, %s5423_s17 }
  0x18   : > { %s5373_s12 = sshll.u32 %s315_s11, 4  ;;  %v5548_v22 = vld [vmem:[%s10488_s2 + $0x28] sm:$0xff]   ;;  %v5544_v23 = vld [vmem:[%s10489_s3 + $0x20] sm:$0xff]   ;;  %v5547_v25 = vld [vmem:[%s10489_s3 + $0x30] sm:$0xff]   ;;  %s6090_s11 = sshll.u32 %s6168_s8, 4  ;;  %s6091_s11 = int_to_ptr.vmem [resolvable:$false] %s6090_s11 }
  0x19   : > { %s321_s15 = scalar_lea.vmem %s10486_s0, %s5373_s12  ;;  %s333_s18 = scalar_lea.vmem %s10487_s1, %s5373_s12  ;;  %v5545_v24 = vld [vmem:[%s10489_s3 + $0x28] sm:$0xff]   ;;  %v5549_v26 = vld [vmem:[%s10489_s3 + $0x38] sm:$0xff]   ;;  %v5550_v27 = vld [vmem:[%s10489_s3 + $0x40] sm:$0xff]  }
  0x1a   : > { %v344_v1 = vld [vmem:[%s321_s15 + $0x8] sm:$0xff]  ;;  %v343_v3 = vld [vmem:[%s321_s15] sm:$0xff]  ;;  %v5552_v29 = vld [vmem:[%s10489_s3 + $0x50] sm:$0xff]   ;;  %s310_s15 = sand.u32 1, %s6146_s22   ;;  %s6092_s12 = scalar_lea.vmem %s6091_s11, 512 }
  0x1b   : > { %v742_v2 = vld [vmem:[%s333_s18 + $0x8] sm:$0xff]  ;;  %v346_v4 = vpack.c.bf16 %v344_v1, %v344_v1  ;;  %v345_v6 = vpack.c.bf16 %v343_v3, %v343_v3  ;;  %v741_v7 = vld [vmem:[%s333_s18] sm:$0xff]  ;;  %v5553_v30 = vld [vmem:[%s10489_s3 + $0x58] sm:$0xff]   ;;  %s5137_s16 = sshll.u32 %s310_s15, 4  ;;  %s5012_s24 = scalar_lea.sflag [#allocation8], %s310_s15 }
  0x1c   : > { %v744_v5 = vpack.c.bf16 %v742_v2, %v742_v2  ;;  %v743_v9 = vpack.c.bf16 %v741_v7, %v741_v7  ;;  %v5551_v28 = vld [vmem:[%s10489_s3 + $0x48] sm:$0xff]   ;;  %v5554_v31 = vld [vmem:[%s10489_s3 + $0x60] sm:$0xff]   ;;  %v5556_v33 = vld [vmem:[%s10489_s3 + $0x70] sm:$0xff]   ;;  %s312_s18 = scalar_lea.vmem [#allocation7], %s5137_s16 }
  0x1d   : > { %5150 = vmatprep.subr.msk.bf16.mxu0 %vm428_vm0, %v346_v4  ;;  %5472 = vmatprep.subr.msk.bf16.mxu1 %vm428_vm0, %v346_v4  ;;  %v430_v10 = vsel %vm428_vm0, %v345_v6, 0  ;;  %v5555_v32 = vld [vmem:[%s10489_s3 + $0x68] sm:$0xff]   ;;  %v5557_v34 = vld [vmem:[%s10489_s3 + $0x78] sm:$0xff]   ;;  %s5028_s19 = sshll.u32 %s312_s18, 4  ;;  %s10442_s19 = int_to_ptr.vmem [resolvable:$true] %s5028_s19 }
  0x1e   : > { %450 = vmatpush1.bf16.msra.mxu0 %v430_v10  ;;  %5473 = vmatpush1.bf16.msra.mxu1 %v430_v10  ;;  %v908_v12 = vsel %vm428_vm0, %v743_v9, 0  ;;  %s6086_s30 = scalar_lea.vmem %s10442_s19, 256  ;;  %p6093_p1 = scmp.lt.s32.totalorder %s10442_s19, %s6091_s11 }
  0x1f   : > { %5191 = vmatprep.subr.msk.bf16.mxu1 %vm428_vm0, %v744_v5  ;;  %p6087_p12 = scmp.ne.s32.totalorder %s10442_s19, %s6086_s30  ;;  %p6094_p2 = scmp.lt.s32.totalorder %s6092_s12, %s6086_s30 }
  0x21   : > { %5151 = vmatmul.mubr.msk.bf16.vlgmr.msra.gmra.mxu0 %vm403_vm1, %v5534_v8  ;;  %5157 = vmatmul.mubr.msk.bf16.vlgmr.msra.gmra.mxu1 %vm403_vm1, %v5535_v11  ;;  %p6088_p13 = pnand %p6087_p12, %p6244_p4  ;;  %p6095_p3 = por %p6094_p2, %p6093_p1 }
  0x22   : > { %477 = vmatprep.mubr.bf16.mxu0 %v10511_v0  ;;  %537 = vmatprep.mubr.bf16.mxu1 %v10511_v0 }
  0x23   : > { %928 = vmatpush1.bf16.msra.mxu1 %v908_v12  ;;  %p6089_p0 = pneg %p6088_p13 }
  0x25   : > { %p6096_p5 = pnand %p6095_p3, %p6089_p0 }
  0x29   : > { %5152 = vmatmul.mubr.msk.bf16.gmra.mxu0 %vm403_vm1, %v5536_v13  ;;  %5158 = vmatmul.mubr.msk.bf16.gmra.mxu1 %vm403_vm1, %v5537_v14 }
  0x2a   : > { %487 = vmatprep.mubr.bf16.mxu0 %v10511_v0  ;;  %945 = vmatprep.mubr.bf16.mxu1 %v10511_v0 }
  0x31   : > { %5153 = vmatmul.mubr.msk.bf16.gmra.mxu0 %vm403_vm1, %v5538_v15  ;;  %5192 = vmatmul.mubr.msk.bf16.vlgmr.msra.gmra.mxu1 %vm403_vm1, %v5539_v16 }
  0x32   : > { %497 = vmatprep.mubr.bf16.mxu0 %v10511_v0  ;;  %955 = vmatprep.mubr.bf16.mxu1 %v10511_v0 }
  0x39   : > { %5154 = vmatmul.mubr.msk.bf16.gmra.mxu0 %vm403_vm1, %v5540_v17  ;;  %5193 = vmatmul.mubr.msk.bf16.gmra.mxu1 %vm403_vm1, %v5541_v18 }
  0x3a   : > { %965 = vmatprep.mubr.bf16.mxu1 %v10511_v0  ;;  %507 = vmatprep.mubr.bf16.mxu0 %v10511_v0 }
  0x41   : > { %5194 = vmatmul.mubr.msk.bf16.gmra.mxu1 %vm403_vm1, %v5542_v19  ;;  %5155 = vmatmul.mubr.msk.bf16.gmra.mxu0 %vm403_vm1, %v5546_v20 }
  0x42   : > { %975 = vmatprep.mubr.bf16.mxu1 %v10511_v0  ;;  %517 = vmatprep.mubr.bf16.mxu0 %v10511_v0 }
  0x49   : > { %5195 = vmatmul.mubr.msk.bf16.gmra.mxu1 %vm403_vm1, %v5543_v21  ;;  %5156 = vmatmul.mubr.msk.bf16.gmra.mxu0 %vm403_vm1, %v5548_v22 }
  0x4a   : > { %985 = vmatprep.mubr.bf16.mxu1 %v10511_v0  ;;  %1542 = vmatprep.mubr.bf16.mxu0 %v10511_v0 }
  0x51   : > { %5196 = vmatmul.mubr.msk.bf16.gmra.mxu1 %vm403_vm1, %v5544_v23 }
  0x52   : > { %995 = vmatprep.mubr.bf16.mxu1 %v10511_v0 }
  0x59   : > { %5197 = vmatmul.mubr.msk.bf16.gmra.mxu1 %vm403_vm1, %v5545_v24 }
  0x5a   : > { %1005 = vmatprep.mubr.bf16.mxu1 %v10511_v0 }
  0x61   : > { %5198 = vmatmul.mubr.msk.bf16.gmra.mxu1 %vm403_vm1, %v5547_v25 }
  0x62   : > { %1015 = vmatprep.mubr.bf16.mxu1 %v10511_v0 }
  0x69   : > { %5199 = vmatmul.mubr.msk.bf16.gmra.mxu1 %vm403_vm1, %v5549_v26 }
  0x6a   : > { %1025 = vmatprep.mubr.bf16.mxu1 %v10511_v0 }
  0x71   : > { %5200 = vmatmul.mubr.msk.bf16.gmra.mxu1 %vm403_vm1, %v5550_v27 }
  0x72   : > { %1035 = vmatprep.mubr.bf16.mxu1 %v10511_v0 }
  0x79   : > { %5201 = vmatmul.mubr.msk.bf16.gmra.mxu1 %vm403_vm1, %v5551_v28 }
  0x7a   : > { %1045 = vmatprep.mubr.bf16.mxu1 %v10511_v0 }
  0x81   : > { %5202 = vmatmul.mubr.msk.bf16.gmra.mxu1 %vm403_vm1, %v5552_v29 }
  0x82   : > { %1055 = vmatprep.mubr.bf16.mxu1 %v10511_v0 }
  0x89   : > { %5203 = vmatmul.mubr.msk.bf16.gmra.mxu1 %vm403_vm1, %v5553_v30 }
  0x8a   : > { %1065 = vmatprep.mubr.bf16.mxu1 %v10511_v0 }
  0x91   : > { %5204 = vmatmul.mubr.msk.bf16.gmra.mxu1 %vm403_vm1, %v5554_v31 }
  0x92   : > { %1075 = vmatprep.mubr.bf16.mxu1 %v10511_v0 }
  0x99   : > { %5205 = vmatmul.mubr.msk.bf16.gmra.mxu1 %vm403_vm1, %v5555_v32 }
  0x9a   : > { %1085 = vmatprep.mubr.bf16.mxu1 %v10511_v0 }
  0xa1   : > { %5206 = vmatmul.mubr.msk.bf16.gmra.mxu1 %vm403_vm1, %v5556_v33 }
  0xa2   : > { %1095 = vmatprep.mubr.bf16.mxu1 %v10511_v0 }
  0xa9   : > { %5207 = vmatmul.mubr.msk.bf16.gmra.mxu1 %vm403_vm1, %v5557_v34 }
  0xaa   : > { %1855 = vmatprep.mubr.bf16.mxu1 %v10511_v0 }
  0xe1   : > { %v469_v35 = vpop.f32.mrf.mxu0  ;;  %v529_v36 = vpop.f32.mrf.mxu1 }
  0xe2   : > { %v6396_v41 = vmul.f32 0.17677669, %v529_v36  ;;  %v548_v63 = vmul.f32 0.17677669, %v469_v35 }
  0xe3   : > { %v471_v37 = vpop.f32.mrf.mxu0  ;;  %v6394_v38 = vpop.f32.mrf.mxu1 }
  0xe4   : > { %v549_v50 = vmul.f32 0.17677669, %v471_v37 }
  0xe5   : > { %v473_v39 = vpop.f32.mrf.mxu0  ;;  %v533_v40 = vpop.f32.mrf.mxu1 }
  0xe6   : > { %v6398_v42 = vmul.f32 0.17677669, %v533_v40  ;;  %v550_v1 = vmul.f32 0.17677669, %v473_v39 }
  0xe7   : > { %v475_v43 = vpop.f32.mrf.mxu0  ;;  %v6400_v44 = vpop.f32.mrf.mxu1 }
  0xe8   : > { %v5452_v45 = vpack.c.bf16 %v6398_v42, %v6396_v41  ;;  %v551_v51 = vmul.f32 0.17677669, %v475_v43  ;;  %v5428_v9 = vpack.c.bf16 %v550_v1, %v548_v63 }
  0xe9   : > { %v479_v46 = vpop.f32.mrf.mxu0  ;;  %v539_v47 = vpop.f32.mrf.mxu1 }
  0xea   : > { %v552_v52 = vmul.f32 0.17677669, %v479_v46  ;;  %v6406_v53 = vmul.f32 0.17677669, %v539_v47  ;;  %v5429_v5 = vpack.c.bf16 %v551_v51, %v549_v50 }
  0xeb   : > { %v481_v48 = vpop.f32.mrf.mxu0  ;;  %v6404_v49 = vpop.f32.mrf.mxu1 }
  0xec   : > { %v553_v56 = vmul.f32 0.17677669, %v481_v48  ;;  %v577_v50 = vmul.f32 0.17677669, %v6404_v49 }
  0xed   : > { %v483_v54 = vpop.f32.mrf.mxu0  ;;  %v543_v55 = vpop.f32.mrf.mxu1 }
  0xee   : > { %v554_v57 = vmul.f32 0.17677669, %v483_v54  ;;  %v6408_v58 = vmul.f32 0.17677669, %v543_v55 }
  0xef   : > { %v485_v59 = vpop.f32.mrf.mxu0  ;;  %v545_v60 = vpop.f32.mrf.mxu1 }
  0xf0   : > { %v5454_v61 = vpack.c.bf16 %v6408_v58, %v6406_v53  ;;  %v555_v62 = vmul.f32 0.17677669, %v485_v59  ;;  %v5430_v2 = vpack.c.bf16 %v554_v57, %v552_v52  ;;  %v579_v40 = vmul.f32 0.17677669, %v545_v60 }
  0xf1   : > { %v489_v3 = vpop.f32.mrf.mxu0  ;;  %v947_v4 = vpop.f32.mrf.mxu1 }
  0xf2   : > { %v5431_v6 = vpack.c.bf16 %v555_v62, %v553_v56  ;;  %v556_v30 = vmul.f32 0.17677669, %v489_v3  ;;  %v5455_v56 = vpack.c.bf16 %v579_v40, %v577_v50 }
  0xf3   : > { %v491_v7 = vpop.f32.mrf.mxu0  ;;  %v6412_v8 = vpop.f32.mrf.mxu1 }
  0xf4   : > { %1522 = vmatprep.subr.bf16.mxu0 %v5431_v6  ;;  %v557_v19 = vmul.f32 0.17677669, %v491_v7 }
  0xf5   : > { %v493_v10 = vpop.f32.mrf.mxu0  ;;  %v951_v11 = vpop.f32.mrf.mxu1  ;;  %1523 = vmatpush1.bf16.msra.mxu0 %v5430_v2 }
  0xf6   : > { %v5424_v12 = vpack.c.bf16 %v951_v11, %v947_v4  ;;  %1524 = vmatprep.subr.bf16.mxu0 %v5429_v5  ;;  %v558_v31 = vmul.f32 0.17677669, %v493_v10 }
  0xf7   : > { %v495_v13 = vpop.f32.mrf.mxu0  ;;  %v6414_v14 = vpop.f32.mrf.mxu1 }
  0xf8   : > { %1409 = vxpose.xlu0.c.b16.start [1/2] (short) %v5424_v12, 128  ;;  %v559_v23 = vmul.f32 0.17677669, %v495_v13  ;;  %v5436_v46 = vpack.c.bf16 %v558_v31, %v556_v30 }
  0xf9   : > { %v499_v15 = vpop.f32.mrf.mxu0  ;;  %v957_v16 = vpop.f32.mrf.mxu1  ;;  %1525 = vmatpush1.bf16.msra.mxu0 %v5428_v9 }
  0xfa   : > { %v560_v20 = vmul.f32 0.17677669, %v499_v15  ;;  %v5437_v35 = vpack.c.bf16 %v559_v23, %v557_v19 }
  0xfb   : > { %v501_v17 = vpop.f32.mrf.mxu0  ;;  %v6416_v18 = vpop.f32.mrf.mxu1 }
  0xfc   : > { %v561_v24 = vmul.f32 0.17677669, %v501_v17 }
  0xfd   : > { %v503_v21 = vpop.f32.mrf.mxu0  ;;  %v961_v22 = vpop.f32.mrf.mxu1 }
  0xfe   : > { %v562_v25 = vmul.f32 0.17677669, %v503_v21  ;;  %v5426_v26 = vpack.c.bf16 %v961_v22, %v957_v16  ;;  %v5425_v16 = vpack.c.bf16 %v6414_v14, %v6412_v8 }
  0xff   : > { %v505_v27 = vpop.f32.mrf.mxu0  ;;  %v963_v28 = vpop.f32.mrf.mxu1 }
 0x100   : > { %v563_v29 = vmul.f32 0.17677669, %v505_v27  ;;  %1410 = vxpose.xlu0.c.b16.end [2/2] (short) %v5426_v26, 128  ;;  %v5438_v32 = vpack.c.bf16 %v562_v25, %v560_v20  ;;  %v5427_v20 = vpack.c.bf16 %v963_v28, %v6416_v18 }
 0x101   : > { %v967_v33 = vpop.f32.mrf.mxu1  ;;  %v509_v34 = vpop.f32.mrf.mxu0 }
 0x102   : > { %v5439_v36 = vpack.c.bf16 %v563_v29, %v561_v24  ;;  %v6420_v43 = vmul.f32 0.17677669, %v509_v34 }
 0x103   : > { %v969_v37 = vpop.f32.mrf.mxu1  ;;  %v6418_v39 = vpop.f32.mrf.mxu0 }
 0x104   : > { %1835 = vmatprep.subr.bf16.mxu1 %v5439_v36 }
 0x105   : > { %v971_v47 = vpop.f32.mrf.mxu1  ;;  %1836 = vmatpush1.bf16.msra.mxu1 %v5438_v32  ;;  %v513_v48 = vpop.f32.mrf.mxu0 }
 0x106   : > { %1837 = vmatprep.subr.bf16.mxu1 %v5437_v35  ;;  %v5432_v51 = vpack.c.bf16 %v971_v47, %v967_v33  ;;  %v6423_v52 = vmul.f32 0.17677669, %v513_v48 }
 0x107   : > { %v973_v54 = vpop.f32.mrf.mxu1  ;;  %v515_v55 = vpop.f32.mrf.mxu0 }
 0x108   : > { %1723 = vxpose.xlu1.c.b16.start [1/2] (short) %v5432_v51, 128  ;;  %v5444_v57 = vpack.c.bf16 %v6423_v52, %v6420_v43  ;;  %v5433_v27 = vpack.c.bf16 %v973_v54, %v969_v37  ;;  %v565_v37 = vmul.f32 0.17677669, %v6418_v39  ;;  %v567_v40 = vmul.f32 0.17677669, %v515_v55 }
 0x109   : > { %v977_v59 = vpop.f32.mrf.mxu1  ;;  %1838 = vmatpush1.bf16.msra.mxu1 %v5436_v46  ;;  %v519_v60 = vpop.f32.mrf.mxu0  ;;  %v575_v54 = vmul.f32 0.17677669, %v6400_v44 }
 0x10a   : > { %2461 = vmatprep.subr.bf16.mxu1 %v5455_v56  ;;  %v568_v1 = vmul.f32 0.17677669, %v519_v60  ;;  %v5445_v46 = vpack.c.bf16 %v567_v40, %v565_v37 }
 0x10b   : > { %v979_v62 = vpop.f32.mrf.mxu1  ;;  %v521_v63 = vpop.f32.mrf.mxu0 }
 0x10c   : > { %v569_v4 = vmul.f32 0.17677669, %v521_v63 }
 0x10d   : > { %v981_v2 = vpop.f32.mrf.mxu1  ;;  %v523_v49 = vpop.f32.mrf.mxu0 }
 0x10e   : > { %v5434_v3 = vpack.c.bf16 %v981_v2, %v977_v59  ;;  %v570_v5 = vmul.f32 0.17677669, %v523_v49  ;;  %v573_v59 = vmul.f32 0.17677669, %v6394_v38 }
 0x10f   : > { %v983_v6 = vpop.f32.mrf.mxu1  ;;  %v525_v7 = vpop.f32.mrf.mxu0 }
 0x110   : > { %1724 = vxpose.xlu1.c.b16.end [2/2] (short) %v5434_v3, 128  ;;  %v5446_v9 = vpack.c.bf16 %v570_v5, %v568_v1  ;;  %v571_v10 = vmul.f32 0.17677669, %v525_v7  ;;  %v5435_v30 = vpack.c.bf16 %v983_v6, %v979_v62  ;;  %v5453_v62 = vpack.c.bf16 %v575_v54, %v573_v59 }
 0x111   : > { %v987_v11 = vpop.f32.mrf.mxu1 }
 0x112   : > { %v5447_v12 = vpack.c.bf16 %v571_v10, %v569_v4 }
 0x113   : > { %v989_v13 = vpop.f32.mrf.mxu1 }
 0x114   : > { %2148 = vmatprep.subr.bf16.mxu0 %v5447_v12 }
 0x115   : > { %v991_v15 = vpop.f32.mrf.mxu1 }
 0x116   : > { %v5440_v18 = vpack.c.bf16 %v991_v15, %v987_v11 }
 0x117   : > { %v993_v17 = vpop.f32.mrf.mxu1 }
 0x118   : > { %v5441_v48 = vpack.c.bf16 %v993_v17, %v989_v13 }
 0x119   : > { %1425 = vxpose.xlu0.c.b16.start [1/2] (short) %v5425_v16, 128  ;;  %v997_v19 = vpop.f32.mrf.mxu1 }
 0x11b   : > { %v999_v21 = vpop.f32.mrf.mxu1 }
 0x11d   : > { %1426 = vxpose.xlu0.c.b16.end [2/2] (short) %v5427_v20, 128  ;;  %v1001_v22 = vpop.f32.mrf.mxu1 }
 0x11e   : > { %v5442_v28 = vpack.c.bf16 %v1001_v22, %v997_v19 }
 0x11f   : > { %v1003_v23 = vpop.f32.mrf.mxu1 }
 0x120   : > { %v5443_v50 = vpack.c.bf16 %v1003_v23, %v999_v21 }
 0x121   : > { %v1007_v24 = vpop.f32.mrf.mxu1 }
 0x123   : > { %v1009_v25 = vpop.f32.mrf.mxu1 }
 0x125   : > { %v1011_v26 = vpop.f32.mrf.mxu1 }
 0x126   : > { %v5448_v8 = vpack.c.bf16 %v1011_v26, %v1007_v24 }
 0x127   : > { %v1013_v29 = vpop.f32.mrf.mxu1 }
 0x128   : > { %v5449_v34 = vpack.c.bf16 %v1013_v29, %v1009_v25 }
 0x129   : > { %1739 = vxpose.xlu1.c.b16.start [1/2] (short) %v5433_v27, 128  ;;  %v1017_v31 = vpop.f32.mrf.mxu1 }
 0x12b   : > { %v1019_v32 = vpop.f32.mrf.mxu1 }
 0x12d   : > { %1740 = vxpose.xlu1.c.b16.end [2/2] (short) %v5435_v30, 128  ;;  %v1021_v14 = vpop.f32.mrf.mxu1 }
 0x12e   : > { %v5450_v33 = vpack.c.bf16 %v1021_v14, %v1017_v31 }
 0x12f   : > { %v1023_v35 = vpop.f32.mrf.mxu1 }
 0x130   : > { %v5451_v36 = vpack.c.bf16 %v1023_v35, %v1019_v32 }
 0x131   : > { %v6439_v39 = vpop.f32.mrf.mxu1 }
 0x132   : > { %11111 = vst [vmem:[#allocation10_spill] sm:$0xff] %v6439_v39 }
 0x133   : > { %v6442_v56 = vpop.f32.mrf.mxu1 }
 0x135   : > { %v6447_v43 = vpop.f32.mrf.mxu1 }
 0x136   : > { %2349 = vxpose.xlu0.c.b16.start [1/2] (short) %v5448_v8, 128  ;;  %11112 = vst [vmem:[#allocation11_spill] sm:$0xff] %v6447_v43  ;;  %v11182_v43 = vmov 0  }
 0x137   : > { %v6456_v38 = vpop.f32.mrf.mxu1 }
 0x139   : > { %v6458_v52 = vpop.f32.mrf.mxu1 }
 0x13a   : > { %2350 = vxpose.xlu0.c.b16.end [2/2] (short) %v5450_v33, 128  ;;  %11113 = vst [vmem:[#allocation12_spill] sm:$0xff] %v6458_v52 }
 0x13b   : > { %v6463_v53 = vpop.f32.mrf.mxu1 }
 0x13c   : > { %11114 = vst [vmem:[#allocation13_spill] sm:$0xff] %v6463_v53 }
 0x13d   : > { %v6467_v58 = vpop.f32.mrf.mxu1 }
 0x13e   : > { %11115 = vst [vmem:[#allocation14_spill] sm:$0xff] %v6467_v58 }
 0x13f   : > { %v6473_v1 = vpop.f32.mrf.mxu1 }
 0x140   : > { %11116 = vst [vmem:[#allocation15_spill] sm:$0xff] %v6473_v1 }
 0x141   : > { %v6475_v41 = vpop.f32.mrf.mxu1 }
 0x142   : > { %11117 = vst [vmem:[#allocation16_spill] sm:$0xff] %v6475_v41 }
 0x143   : > { %v6477_v2 = vpop.f32.mrf.mxu1 }
 0x144   : > { %11118 = vst [vmem:[#allocation17_spill] sm:$0xff] %v6477_v2 }
 0x145   : > { %v6481_v49 = vpop.f32.mrf.mxu1 }
 0x146   : > { %2036 = vxpose.xlu1.c.b16.start [1/2] (short) %v5440_v18, 128  ;;  %11119 = vst [vmem:[#allocation18_spill] sm:$0xff] %v6481_v49 }
 0x147   : > { %v6487_v4 = vpop.f32.mrf.mxu1 }
 0x148   : > { %11120 = vst [vmem:[#allocation19_spill] sm:$0xff] %v6487_v4 }
 0x149   : > { %v6489_v5 = vpop.f32.mrf.mxu1 }
 0x14a   : > { %2037 = vxpose.xlu1.c.b16.end [2/2] (short) %v5442_v28, 128  ;;  %11121 = vst [vmem:[#allocation20_spill] sm:$0xff] %v6489_v5 }
 0x153   : > { %2365 = vxpose.xlu0.c.b16.start [1/2] (short) %v5449_v34, 128 }
 0x157   : > { %2366 = vxpose.xlu0.c.b16.end [2/2] (short) %v5451_v36, 128 }
 0x15e   : > { %v1417_v47 = vpop.trf.xlu0 }
 0x15f   : > { %5264 = vmatmul.mubr.msk.bf16.vlgmr.msra.gmra.mxu0 %vm1461_vm2, %v1417_v47 }
 0x160   : > { %1552 = vmatprep.mubr.bf16.mxu0 %v10511_v0  ;;  %2149 = vmatpush1.bf16.msra.mxu0 %v5446_v9  ;;  %v6491_v9 = vpop.f32.mrf.mxu1 }
 0x161   : > { %2150 = vmatprep.subr.bf16.mxu0 %v5445_v46  ;;  %5533 = vset.pattern.permute.xlu0 %v10511_v0  ;;  %11122 = vst [vmem:[#allocation21_spill] sm:$0xff] %v6491_v9 }
 0x162   : > { %v1418_v51 = vpop.trf.xlu0  ;;  %v6495_v10 = vpop.f32.mrf.mxu1 }
 0x163   : > { %2052 = vxpose.xlu1.c.b16.start [1/2] (short) %v5441_v48, 128  ;;  %11123 = vst [vmem:[#allocation22_spill] sm:$0xff] %v6495_v10 }
 0x164   : > { %2151 = vmatpush1.bf16.msra.mxu0 %v5444_v57  ;;  %v6501_v12 = vpop.f32.mrf.mxu1 }
 0x165   : > { %11124 = vst [vmem:[#allocation23_spill] sm:$0xff] %v6501_v12 }
 0x166   : > { %v1419_v55 = vpop.trf.xlu0  ;;  %v6503_v13 = vpop.f32.mrf.mxu1 }
 0x167   : > { %5265 = vmatmul.mubr.msk.bf16.gmra.mxu0 %vm1461_vm2, %v1418_v51  ;;  %2053 = vxpose.xlu1.c.b16.end [2/2] (short) %v5443_v50, 128  ;;  %11125 = vst [vmem:[#allocation24_spill] sm:$0xff] %v6503_v13 }
 0x168   : > { %1562 = vmatprep.mubr.bf16.mxu0 %v10511_v0  ;;  %v6505_v17 = vpop.f32.mrf.mxu1 }
 0x16a   : > { %v1420_v57 = vpop.trf.xlu0  ;;  %v6509_v19 = vpop.f32.mrf.mxu1 }
 0x16b   : > { %11126 = vst [vmem:[#allocation25_spill] sm:$0xff] %v6509_v19 }
 0x16c   : > { %v6515_v21 = vpop.f32.mrf.mxu1 }
 0x16e   : > { %v1731_v60 = vpop.trf.xlu1  ;;  %v1421_v42 = vpop.trf.xlu0 }
 0x16f   : > { %5266 = vmatmul.mubr.msk.bf16.gmra.mxu0 %vm1461_vm2, %v1419_v55  ;;  %5288 = vmatmul.mubr.msk.bf16.vlgmr.msra.gmra.mxu1 %vm1461_vm2, %v1731_v60  ;;  %v6517_v22 = vpop.f32.mrf.mxu1 }
 0x170   : > { %2462 = vmatpush1.bf16.msra.mxu1 %v5454_v61  ;;  %1572 = vmatprep.mubr.bf16.mxu0 %v10511_v0  ;;  %11127 = vst [vmem:[#allocation26_spill] sm:$0xff] %v6517_v22 }
 0x171   : > { %2463 = vmatprep.subr.bf16.mxu1 %v5453_v62  ;;  %1865 = vmatprep.mubr.bf16.mxu1 %v10511_v0  ;;  %v6519_v25 = vpop.f32.mrf.mxu1 }
 0x172   : > { %v1732_v63 = vpop.trf.xlu1  ;;  %v1422_v6 = vpop.trf.xlu0  ;;  %11128 = vst [vmem:[#allocation27_spill] sm:$0xff] %v6519_v25 }
 0x173   : > { %v6523_v26 = vpop.f32.mrf.mxu1 }
 0x174   : > { %2464 = vmatpush1.bf16.msra.mxu1 %v5452_v45  ;;  %11129 = vst [vmem:[#allocation28_spill] sm:$0xff] %v6523_v26 }
 0x175   : > { %v6529_v29 = vpop.f32.mrf.mxu1 }
 0x176   : > { %v1733_v45 = vpop.trf.xlu1  ;;  %v1423_v15 = vpop.trf.xlu0  ;;  %11130 = vst [vmem:[#allocation29_spill] sm:$0xff] %v6529_v29 }
 0x177   : > { %5267 = vmatmul.mubr.msk.bf16.gmra.mxu0 %vm1461_vm2, %v1420_v57  ;;  %5289 = vmatmul.mubr.msk.bf16.gmra.mxu1 %vm1461_vm2, %v1732_v63  ;;  %v6531_v30 = vpop.f32.mrf.mxu1 }
 0x178   : > { %1582 = vmatprep.mubr.bf16.mxu0 %v10511_v0  ;;  %1875 = vmatprep.mubr.bf16.mxu1 %v10511_v0  ;;  %11131 = vst [vmem:[#allocation30_spill] sm:$0xff] %v6531_v30 }
 0x179   : > { %v6533_v8 = vpop.f32.mrf.mxu1 }
 0x17a   : > { %v1734_v7 = vpop.trf.xlu1  ;;  %v1424_v23 = vpop.trf.xlu0  ;;  %11132 = vst [vmem:[#allocation31_spill] sm:$0xff] %v6533_v8 }
 0x17b   : > { %v6537_v14 = vpop.f32.mrf.mxu1 }
 0x17c   : > { %11133 = vst [vmem:[#allocation32_spill] sm:$0xff] %v6537_v14 }
 0x17d   : > { %v6543_v18 = vpop.f32.mrf.mxu1 }
 0x17e   : > { %v1735_v16 = vpop.trf.xlu1  ;;  %v1433_v31 = vpop.trf.xlu0  ;;  %11134 = vst [vmem:[#allocation33_spill] sm:$0xff] %v6543_v18 }
 0x17f   : > { %5268 = vmatmul.mubr.msk.bf16.gmra.mxu0 %vm1461_vm2, %v1421_v42  ;;  %5290 = vmatmul.mubr.msk.bf16.gmra.mxu1 %vm1461_vm2, %v1733_v45  ;;  %v6545_v28 = vpop.f32.mrf.mxu1 }
 0x180   : > { %1592 = vmatprep.mubr.bf16.mxu0 %v10511_v0  ;;  %1885 = vmatprep.mubr.bf16.mxu1 %v10511_v0  ;;  %11135 = vst [vmem:[#allocation34_spill] sm:$0xff] %v6545_v28 }
 0x181   : > { %v6547_v36 = vpop.f32.mrf.mxu1 }
 0x182   : > { %v1736_v24 = vpop.trf.xlu1  ;;  %v1434_v34 = vpop.trf.xlu0  ;;  %11136 = vst [vmem:[#allocation35_spill] sm:$0xff] %v6547_v36 }
 0x183   : > { %v6553_v37 = vpop.f32.mrf.mxu1 }
 0x184   : > { %11137 = vst [vmem:[#allocation36_spill] sm:$0xff] %v6553_v37 }
 0x186   : > { %v1737_v32 = vpop.trf.xlu1  ;;  %v1435_v46 = vpop.trf.xlu0 }
 0x187   : > { %5269 = vmatmul.mubr.msk.bf16.gmra.mxu0 %vm1461_vm2, %v1422_v6  ;;  %5291 = vmatmul.mubr.msk.bf16.gmra.mxu1 %vm1461_vm2, %v1734_v7 }
 0x188   : > { %1602 = vmatprep.mubr.bf16.mxu0 %v10511_v0  ;;  %1895 = vmatprep.mubr.bf16.mxu1 %v10511_v0 }
 0x18a   : > { %v1738_v35 = vpop.trf.xlu1  ;;  %v1436_v48 = vpop.trf.xlu0 }
 0x18e   : > { %v1747_v47 = vpop.trf.xlu1  ;;  %v1437_v51 = vpop.trf.xlu0 }
 0x18f   : > { %5270 = vmatmul.mubr.msk.bf16.gmra.mxu0 %vm1461_vm2, %v1423_v15  ;;  %5292 = vmatmul.mubr.msk.bf16.gmra.mxu1 %vm1461_vm2, %v1735_v16 }
 0x190   : > { %1612 = vmatprep.mubr.bf16.mxu0 %v10511_v0  ;;  %1905 = vmatprep.mubr.bf16.mxu1 %v10511_v0 }
 0x192   : > { %v1748_v50 = vpop.trf.xlu1  ;;  %v1438_v59 = vpop.trf.xlu0 }
 0x196   : > { %v1749_v54 = vpop.trf.xlu1  ;;  %v1439_v57 = vpop.trf.xlu0 }
 0x197   : > { %5271 = vmatmul.mubr.msk.bf16.gmra.mxu0 %vm1461_vm2, %v1424_v23  ;;  %5293 = vmatmul.mubr.msk.bf16.gmra.mxu1 %vm1461_vm2, %v1736_v24 }
 0x198   : > { %1622 = vmatprep.mubr.bf16.mxu0 %v10511_v0  ;;  %1915 = vmatprep.mubr.bf16.mxu1 %v10511_v0 }
 0x19a   : > { %v1750_v55 = vpop.trf.xlu1  ;;  %v1440_v42 = vpop.trf.xlu0 }
 0x19e   : > { %v1751_v60 = vpop.trf.xlu1  ;;  %v2357_v16 = vpop.trf.xlu0 }
 0x19f   : > { %5272 = vmatmul.mubr.msk.bf16.gmra.mxu0 %vm1461_vm2, %v1433_v31  ;;  %5294 = vmatmul.mubr.msk.bf16.gmra.mxu1 %vm1461_vm2, %v1737_v32 }
 0x1a0   : > { %1632 = vmatprep.mubr.bf16.mxu0 %v10511_v0  ;;  %1925 = vmatprep.mubr.bf16.mxu1 %v10511_v0 }
 0x1a2   : > { %v1752_v62 = vpop.trf.xlu1  ;;  %v2358_v24 = vpop.trf.xlu0 }
 0x1a6   : > { %v1753_v63 = vpop.trf.xlu1  ;;  %v2359_v32 = vpop.trf.xlu0 }
 0x1a7   : > { %5273 = vmatmul.mubr.msk.bf16.gmra.mxu0 %vm1461_vm2, %v1434_v34  ;;  %5295 = vmatmul.mubr.msk.bf16.gmra.mxu1 %vm1461_vm2, %v1738_v35 }
 0x1a8   : > { %1642 = vmatprep.mubr.bf16.mxu0 %v10511_v0  ;;  %1935 = vmatprep.mubr.bf16.mxu1 %v10511_v0 }
 0x1aa   : > { %v1754_v45 = vpop.trf.xlu1  ;;  %v2360_v35 = vpop.trf.xlu0 }
 0x1ae   : > { %v2044_v6 = vpop.trf.xlu1 }
 0x1af   : > { %5274 = vmatmul.mubr.msk.bf16.gmra.mxu0 %vm1461_vm2, %v1435_v46  ;;  %5296 = vmatmul.mubr.msk.bf16.gmra.mxu1 %vm1461_vm2, %v1747_v47  ;;  %v2361_v47 = vpop.trf.xlu0 }
 0x1b0   : > { %1652 = vmatprep.mubr.bf16.mxu0 %v10511_v0  ;;  %1945 = vmatprep.mubr.bf16.mxu1 %v10511_v0 }
 0x1b2   : > { %v2045_v7 = vpop.trf.xlu1 }
 0x1b6   : > { %v2046_v15 = vpop.trf.xlu1 }
 0x1b7   : > { %5275 = vmatmul.mubr.msk.bf16.gmra.mxu0 %vm1461_vm2, %v1436_v48  ;;  %5297 = vmatmul.mubr.msk.bf16.gmra.mxu1 %vm1461_vm2, %v1748_v50  ;;  %v2362_v50 = vpop.trf.xlu0 }
 0x1b8   : > { %1662 = vmatprep.mubr.bf16.mxu0 %v10511_v0  ;;  %1955 = vmatprep.mubr.bf16.mxu1 %v10511_v0 }
 0x1ba   : > { %v2047_v23 = vpop.trf.xlu1 }
 0x1be   : > { %v2048_v31 = vpop.trf.xlu1 }
 0x1bf   : > { %5276 = vmatmul.mubr.msk.bf16.gmra.mxu0 %vm1461_vm2, %v1437_v51  ;;  %5298 = vmatmul.mubr.msk.bf16.gmra.mxu1 %vm1461_vm2, %v1749_v54  ;;  %v2363_v54 = vpop.trf.xlu0 }
 0x1c0   : > { %1672 = vmatprep.mubr.bf16.mxu0 %v10511_v0  ;;  %1965 = vmatprep.mubr.bf16.mxu1 %v10511_v0 }
 0x1c2   : > { %v2049_v34 = vpop.trf.xlu1 }
 0x1c6   : > { %v2050_v46 = vpop.trf.xlu1 }
 0x1c7   : > { %5277 = vmatmul.mubr.msk.bf16.gmra.mxu0 %vm1461_vm2, %v1438_v59  ;;  %5299 = vmatmul.mubr.msk.bf16.gmra.mxu1 %vm1461_vm2, %v1750_v55 }
 0x1c8   : > { %1682 = vmatprep.mubr.bf16.mxu0 %v10511_v0  ;;  %1975 = vmatprep.mubr.bf16.mxu1 %v10511_v0 }
 0x1ca   : > { %v2051_v48 = vpop.trf.xlu1 }
 0x1ce   : > { %v2060_v51 = vpop.trf.xlu1 }
 0x1cf   : > { %5278 = vmatmul.mubr.msk.bf16.gmra.mxu0 %vm1461_vm2, %v1439_v57  ;;  %5300 = vmatmul.mubr.msk.bf16.gmra.mxu1 %vm1461_vm2, %v1751_v60  ;;  %v2364_v57 = vpop.trf.xlu0 }
 0x1d0   : > { %1692 = vmatprep.mubr.bf16.mxu0 %v10511_v0  ;;  %1985 = vmatprep.mubr.bf16.mxu1 %v10511_v0 }
 0x1d7   : > { %5279 = vmatmul.mubr.msk.bf16.gmra.mxu0 %vm1461_vm2, %v1440_v42  ;;  %5301 = vmatmul.mubr.msk.bf16.gmra.mxu1 %vm1461_vm2, %v1752_v62  ;;  %v2061_v62 = vpop.trf.xlu1 }
 0x1d8   : > { %1995 = vmatprep.mubr.bf16.mxu1 %v10511_v0  ;;  %2168 = vmatprep.mubr.bf16.mxu0 %v10511_v0 }
 0x1df   : > { %5302 = vmatmul.mubr.msk.bf16.gmra.mxu1 %vm1461_vm2, %v1753_v63  ;;  %5312 = vmatmul.mubr.msk.bf16.vlgmr.msra.gmra.mxu0 %vm1461_vm2, %v2044_v6 }
 0x1e0   : > { %2005 = vmatprep.mubr.bf16.mxu1 %v10511_v0  ;;  %2178 = vmatprep.mubr.bf16.mxu0 %v10511_v0 }
 0x1e7   : > { %5303 = vmatmul.mubr.msk.bf16.gmra.mxu1 %vm1461_vm2, %v1754_v45  ;;  %5313 = vmatmul.mubr.msk.bf16.gmra.mxu0 %vm1461_vm2, %v2045_v7  ;;  %v10493_v45 = vlaneseq  ;;  %v11144_v7 = vmov 0 }
 0x1e8   : > { %2188 = vmatprep.mubr.bf16.mxu0 %v10511_v0  ;;  %2481 = vmatprep.mubr.bf16.mxu1 %v10511_v0 }
 0x1e9   : > { %vm6634_vm3 = vcmp.lt.s32.totalorder %v10493_v45, 256 }
 0x1ea   : > { %v11145_v7 = vsel %vm6634_vm3, 4294967295, %v11144_v7 }
 0x1eb   : > { %11146 = vst [vmem:[#allocation43_spill] sm:$0xff] %v11145_v7 }
 0x1ef   : > { %5314 = vmatmul.mubr.msk.bf16.gmra.mxu0 %vm1461_vm2, %v2046_v15  ;;  %5336 = vmatmul.mubr.msk.bf16.vlgmr.msra.gmra.mxu1 %vm1461_vm2, %v2357_v16  ;;  %v6165_v16 = vmov -inf  }
 0x1f0   : > { %2198 = vmatprep.mubr.bf16.mxu0 %v10511_v0  ;;  %2491 = vmatprep.mubr.bf16.mxu1 %v10511_v0  ;;  %696 = vst.msk [vmem:[#allocation4] sm:$0x3] %vm6634_vm3, %v6165_v16  ;;  %697 = vst.msk [vmem:[#allocation4 + $0x2] sm:$0x3] %vm6634_vm3, %v6165_v16 }
 0x1f1   : > { %698 = vst.msk [vmem:[#allocation4 + $0x4] sm:$0x3] %vm6634_vm3, %v6165_v16  ;;  %699 = vst.msk [vmem:[#allocation4 + $0x6] sm:$0x3] %vm6634_vm3, %v6165_v16 }
 0x1f7   : > { %5315 = vmatmul.mubr.msk.bf16.gmra.mxu0 %vm1461_vm2, %v2047_v23  ;;  %5337 = vmatmul.mubr.msk.bf16.gmra.mxu1 %vm1461_vm2, %v2358_v24  ;;  %v6166_v23 = vmov 0.0   ;;  %v2062_v24 = vpop.trf.xlu1 }
 0x1f8   : > { %2208 = vmatprep.mubr.bf16.mxu0 %v10511_v0  ;;  %2501 = vmatprep.mubr.bf16.mxu1 %v10511_v0  ;;  %700 = vst.msk [vmem:[#allocation5] sm:$0x3] %vm6634_vm3, %v6166_v23  ;;  %701 = vst.msk [vmem:[#allocation5 + $0x2] sm:$0x3] %vm6634_vm3, %v6166_v23 }
 0x1f9   : > { %702 = vst.msk [vmem:[#allocation5 + $0x4] sm:$0x3] %vm6634_vm3, %v6166_v23  ;;  %703 = vst.msk [vmem:[#allocation5 + $0x6] sm:$0x3] %vm6634_vm3, %v6166_v23 }
 0x1ff   : > { %5316 = vmatmul.mubr.msk.bf16.gmra.mxu0 %vm1461_vm2, %v2048_v31  ;;  %5338 = vmatmul.mubr.msk.bf16.gmra.mxu1 %vm1461_vm2, %v2359_v32  ;;  %v2373_v31 = vpop.trf.xlu0  ;;  %v6656_v32 = vpop.f32.mrf.mxu1 }
 0x200   : > { %2218 = vmatprep.mubr.bf16.mxu0 %v10511_v0  ;;  %2511 = vmatprep.mubr.bf16.mxu1 %v10511_v0  ;;  %11148 = vst [vmem:[#allocation45_spill] sm:$0xff] %v6656_v32 }
 0x207   : > { %5317 = vmatmul.mubr.msk.bf16.gmra.mxu0 %vm1461_vm2, %v2049_v34  ;;  %5339 = vmatmul.mubr.msk.bf16.gmra.mxu1 %vm1461_vm2, %v2360_v35 }
 0x208   : > { %2228 = vmatprep.mubr.bf16.mxu0 %v10511_v0  ;;  %2521 = vmatprep.mubr.bf16.mxu1 %v10511_v0 }
 0x20f   : > { %5318 = vmatmul.mubr.msk.bf16.gmra.mxu0 %vm1461_vm2, %v2050_v46  ;;  %5340 = vmatmul.mubr.msk.bf16.gmra.mxu1 %vm1461_vm2, %v2361_v47 }
 0x210   : > { %2238 = vmatprep.mubr.bf16.mxu0 %v10511_v0  ;;  %2531 = vmatprep.mubr.bf16.mxu1 %v10511_v0 }
 0x217   : > { %5319 = vmatmul.mubr.msk.bf16.gmra.mxu0 %vm1461_vm2, %v2051_v48  ;;  %5341 = vmatmul.mubr.msk.bf16.gmra.mxu1 %vm1461_vm2, %v2362_v50 }
 0x218   : > { %2248 = vmatprep.mubr.bf16.mxu0 %v10511_v0  ;;  %2541 = vmatprep.mubr.bf16.mxu1 %v10511_v0 }
 0x21f   : > { %v6613_v55 = vpop.f32.mrf.mxu0  ;;  %5320 = vmatmul.mubr.msk.bf16.gmra.mxu0 %vm1461_vm2, %v2060_v51  ;;  %5342 = vmatmul.mubr.msk.bf16.gmra.mxu1 %vm1461_vm2, %v2363_v54  ;;  %v2063_v54 = vpop.trf.xlu1 }
 0x220   : > { %11138 = vst [vmem:[#allocation37_spill] sm:$0xff] %v6613_v55  ;;  %2258 = vmatprep.mubr.bf16.mxu0 %v10511_v0  ;;  %2551 = vmatprep.mubr.bf16.mxu1 %v10511_v0 }
 0x221   : > { %v6619_v59 = vpop.f32.mrf.mxu0 }
 0x222   : > { %11139 = vst [vmem:[#allocation38_spill] sm:$0xff] %v6619_v59 }
 0x223   : > { %v6621_v60 = vpop.f32.mrf.mxu0  ;;  %v2064_v20 = vpop.trf.xlu1 }
 0x224   : > { %11140 = vst [vmem:[#allocation39_spill] sm:$0xff] %v6621_v60  ;;  %v2646_v12 = vmax.f32 %v6613_v55, %v6621_v60 }
 0x225   : > { %v6623_v63 = vpop.f32.mrf.mxu0 }
 0x226   : > { %11141 = vst [vmem:[#allocation40_spill] sm:$0xff] %v6623_v63  ;;  %v2683_v2 = vmax.f32 %v6619_v59, %v6623_v63 }
 0x227   : > { %v6625_v42 = vpop.f32.mrf.mxu0  ;;  %5321 = vmatmul.mubr.msk.bf16.gmra.mxu0 %vm1461_vm2, %v2061_v62  ;;  %5343 = vmatmul.mubr.msk.bf16.gmra.mxu1 %vm1461_vm2, %v2364_v57  ;;  %v2374_v62 = vpop.trf.xlu0 }
 0x228   : > { %11142 = vst [vmem:[#allocation41_spill] sm:$0xff] %v6625_v42  ;;  %2268 = vmatprep.mubr.bf16.mxu0 %v10511_v0  ;;  %2561 = vmatprep.mubr.bf16.mxu1 %v10511_v0  ;;  %v2065_v30 = vpop.trf.xlu1  ;;  %v2647_v39 = vmax.f32 %v2646_v12, %v6625_v42 }
 0x229   : > { %v6631_v6 = vpop.f32.mrf.mxu0 }
 0x22a   : > { %11143 = vst [vmem:[#allocation42_spill] sm:$0xff] %v6631_v6 }
 0x22b   : > { %v6638_v15 = vpop.f32.mrf.mxu0  ;;  %v2375_v11 = vpop.trf.xlu0 }
 0x22c   : > { %11147 = vst [vmem:[#allocation44_spill] sm:$0xff] %v6638_v15  ;;  %v2066_v29 = vpop.trf.xlu1 }
 0x22d   : > { %v6658_v34 = vpop.f32.mrf.mxu0 }
 0x22e   : > { %11149 = vst [vmem:[#allocation46_spill] sm:$0xff] %v6658_v34 }
 0x22f   : > { %v6660_v35 = vpop.f32.mrf.mxu0  ;;  %v6662_v46 = vpop.f32.mrf.mxu1  ;;  %5322 = vmatmul.mubr.msk.bf16.gmra.mxu0 %vm1461_vm2, %v2062_v24  ;;  %5344 = vmatmul.mubr.msk.bf16.gmra.mxu1 %vm1461_vm2, %v2373_v31 }
 0x230   : > { %11150 = vst [vmem:[#allocation47_spill] sm:$0xff] %v6660_v35  ;;  %11151 = vst [vmem:[#allocation48_spill] sm:$0xff] %v6662_v46  ;;  %2278 = vmatprep.mubr.bf16.mxu0 %v10511_v0  ;;  %2571 = vmatprep.mubr.bf16.mxu1 %v10511_v0  ;;  %v2376_v14 = vpop.trf.xlu0  ;;  %v2067_v9 = vpop.trf.xlu1 }
 0x231   : > { %v6668_v47 = vpop.f32.mrf.mxu0  ;;  %v6670_v48 = vpop.f32.mrf.mxu1 }
 0x232   : > { %11152 = vst [vmem:[#allocation49_spill] sm:$0xff] %v6668_v47  ;;  %11153 = vst [vmem:[#allocation50_spill] sm:$0xff] %v6670_v48 }
 0x233   : > { %v6672_v50 = vpop.f32.mrf.mxu0  ;;  %v6674_v51 = vpop.f32.mrf.mxu1 }
 0x234   : > { %11154 = vst [vmem:[#allocation51_spill] sm:$0xff] %v6672_v50  ;;  %11155 = vst [vmem:[#allocation52_spill] sm:$0xff] %v6674_v51  ;;  %v2377_v25 = vpop.trf.xlu0 }
 0x235   : > { %v6676_v57 = vpop.f32.mrf.mxu0  ;;  %v6678_v16 = vpop.f32.mrf.mxu1 }
 0x236   : > { %11156 = vst [vmem:[#allocation53_spill] sm:$0xff] %v6676_v57  ;;  %11157 = vst [vmem:[#allocation54_spill] sm:$0xff] %v6678_v16 }
 0x237   : > { %v6680_v23 = vpop.f32.mrf.mxu0  ;;  %v6682_v24 = vpop.f32.mrf.mxu1  ;;  %5323 = vmatmul.mubr.msk.bf16.gmra.mxu0 %vm1461_vm2, %v2063_v54  ;;  %5345 = vmatmul.mubr.msk.bf16.gmra.mxu1 %vm1461_vm2, %v2374_v62 }
 0x238   : > { %11158 = vst [vmem:[#allocation55_spill] sm:$0xff] %v6680_v23  ;;  %11159 = vst [vmem:[#allocation56_spill] sm:$0xff] %v6682_v24  ;;  %2288 = vmatprep.mubr.bf16.mxu0 %v10511_v0  ;;  %2581 = vmatprep.mubr.bf16.mxu1 %v10511_v0  ;;  %v2378_v52 = vpop.trf.xlu0 }
 0x239   : > { %v6688_v31 = vpop.f32.mrf.mxu0  ;;  %v6690_v40 = vpop.f32.mrf.mxu1 }
 0x23a   : > { %11160 = vst [vmem:[#allocation57_spill] sm:$0xff] %v6688_v31  ;;  %11161 = vst [vmem:[#allocation58_spill] sm:$0xff] %v6690_v40 }
 0x23b   : > { %v6692_v33 = vpop.f32.mrf.mxu0  ;;  %v6694_v27 = vpop.f32.mrf.mxu1 }
 0x23c   : > { %11162 = vst [vmem:[#allocation59_spill] sm:$0xff] %v6692_v33  ;;  %11163 = vst [vmem:[#allocation60_spill] sm:$0xff] %v6694_v27  ;;  %v2379_v60 = vpop.trf.xlu0 }
 0x23d   : > { %v6696_v3 = vpop.f32.mrf.mxu0  ;;  %v6698_v61 = vpop.f32.mrf.mxu1 }
 0x23e   : > { %11164 = vst [vmem:[#allocation61_spill] sm:$0xff] %v6696_v3  ;;  %11165 = vst [vmem:[#allocation62_spill] sm:$0xff] %v6698_v61 }
 0x23f   : > { %v6700_v54 = vpop.f32.mrf.mxu0  ;;  %v6702_v62 = vpop.f32.mrf.mxu1  ;;  %5324 = vmatmul.mubr.msk.bf16.gmra.mxu0 %vm1461_vm2, %v2064_v20  ;;  %5346 = vmatmul.mubr.msk.bf16.gmra.mxu1 %vm1461_vm2, %v2375_v11 }
 0x240   : > { %11166 = vst [vmem:[#allocation63_spill] sm:$0xff] %v6700_v54  ;;  %11167 = vst [vmem:[#allocation64_spill] sm:$0xff] %v6702_v62  ;;  %2298 = vmatprep.mubr.bf16.mxu0 %v10511_v0  ;;  %2591 = vmatprep.mubr.bf16.mxu1 %v10511_v0 }
 0x241   : > { %v6708_v44 = vpop.f32.mrf.mxu0  ;;  %v6710_v45 = vpop.f32.mrf.mxu1 }
 0x242   : > { %11168 = vst [vmem:[#allocation65_spill] sm:$0xff] %v6708_v44  ;;  %11169 = vst [vmem:[#allocation66_spill] sm:$0xff] %v6710_v45 }
 0x243   : > { %v6712_v28 = vpop.f32.mrf.mxu0  ;;  %v6714_v37 = vpop.f32.mrf.mxu1 }
 0x244   : > { %11170 = vst [vmem:[#allocation67_spill] sm:$0xff] %v6712_v28  ;;  %11171 = vst [vmem:[#allocation68_spill] sm:$0xff] %v6714_v37 }
 0x245   : > { %v6716_v32 = vpop.f32.mrf.mxu0  ;;  %v6718_v36 = vpop.f32.mrf.mxu1 }
 0x246   : > { %11172 = vst [vmem:[#allocation69_spill] sm:$0xff] %v6718_v36 }
 0x247   : > { %v6720_v20 = vpop.f32.mrf.mxu0  ;;  %v6722_v11 = vpop.f32.mrf.mxu1  ;;  %5325 = vmatmul.mubr.msk.bf16.gmra.mxu0 %vm1461_vm2, %v2065_v30  ;;  %5347 = vmatmul.mubr.msk.bf16.gmra.mxu1 %vm1461_vm2, %v2376_v14 }
 0x248   : > { %11173 = vst [vmem:[#allocation70_spill] sm:$0xff] %v6722_v11  ;;  %2308 = vmatprep.mubr.bf16.mxu0 %v10511_v0  ;;  %2601 = vmatprep.mubr.bf16.mxu1 %v10511_v0 }
 0x249   : > { %v6728_v22 = vpop.f32.mrf.mxu0  ;;  %v6730_v26 = vpop.f32.mrf.mxu1 }
 0x24a   : > { %11174 = vst [vmem:[#allocation71_spill] sm:$0xff] %v6730_v26 }
 0x24b   : > { %v6732_v13 = vpop.f32.mrf.mxu0  ;;  %v6734_v19 = vpop.f32.mrf.mxu1 }
 0x24c   : > { %11175 = vst [vmem:[#allocation72_spill] sm:$0xff] %v6734_v19 }
 0x24d   : > { %v6736_v5 = vpop.f32.mrf.mxu0  ;;  %v6738_v10 = vpop.f32.mrf.mxu1 }
 0x24e   : > { %11176 = vst [vmem:[#allocation73_spill] sm:$0xff] %v6738_v10 }
 0x24f   : > { %v6740_v30 = vpop.f32.mrf.mxu0  ;;  %v6742_v14 = vpop.f32.mrf.mxu1  ;;  %5326 = vmatmul.mubr.msk.bf16.gmra.mxu0 %vm1461_vm2, %v2066_v29  ;;  %5348 = vmatmul.mubr.msk.bf16.gmra.mxu1 %vm1461_vm2, %v2377_v25 }
 0x250   : > { %11177 = vst [vmem:[#allocation74_spill] sm:$0xff] %v6742_v14  ;;  %2318 = vmatprep.mubr.bf16.mxu0 %v10511_v0  ;;  %2611 = vmatprep.mubr.bf16.mxu1 %v10511_v0  ;;  %v5457_v0 = vpack.c.bf16 %v6456_v38, %v6442_v56 }
 0x251   : > { %v6748_v41 = vpop.f32.mrf.mxu0  ;;  %v6750_v49 = vpop.f32.mrf.mxu1 }
 0x252   : > { %11178 = vst [vmem:[#allocation75_spill] sm:$0xff] %v6750_v49 }
 0x253   : > { %v6752_v18 = vpop.f32.mrf.mxu0  ;;  %v6754_v8 = vpop.f32.mrf.mxu1 }
 0x254   : > { %11179 = vst [vmem:[#allocation76_spill] sm:$0xff] %v6754_v8 }
 0x255   : > { %v6758_v29 = vpop.f32.mrf.mxu0  ;;  %v6760_v25 = vpop.f32.mrf.mxu1 }
 0x256   : > { %11180 = vst [vmem:[#allocation77_spill] sm:$0xff] %v6760_v25 }
 0x257   : > { %v6764_v58 = vpop.f32.mrf.mxu0  ;;  %v6766_v4 = vpop.f32.mrf.mxu1  ;;  %5327 = vmatmul.mubr.msk.bf16.gmra.mxu0 %vm1461_vm2, %v2067_v9  ;;  %5349 = vmatmul.mubr.msk.bf16.gmra.mxu1 %vm1461_vm2, %v2378_v52  ;;  %v2684_v9 = vmax.f32 %v2683_v2, %v6631_v6  ;;  %v2648_v52 = vmax.f32 %v2647_v39, %v6638_v15 }
 0x258   : > { %11181 = vst [vmem:[#allocation78_spill] sm:$0xff] %v6766_v4  ;;  %4410 = vmatprep.mubr.bf16.mxu0 %v5457_v0  ;;  %2621 = vmatprep.mubr.bf16.mxu1 %v11182_v43 }
 0x259   : > { %v6774_v1 = vpop.f32.mrf.mxu0  ;;  %v6776_v53 = vpop.f32.mrf.mxu1  ;;  %v2685_v42 = vmax.f32 %v2684_v9, %v6658_v34  ;;  %v2649_v59 = vmax.f32 %v2648_v52, %v6660_v35  ;;  %v5465_v52 = vpack.c.bf16 %v6515_v21, %v6505_v17 }
 0x25a   : > { %11183 = vst [vmem:[#allocation79_spill] sm:$0xff] %v6774_v1  ;;  %11184 = vst [vmem:[#allocation80_spill] sm:$0xff] %v6776_v53 }
 0x25b   : > { %v6778_v56 = vpop.f32.mrf.mxu0  ;;  %v6780_v38 = vpop.f32.mrf.mxu1  ;;  %v2686_v7 = vmax.f32 %v2685_v42, %v6668_v47 }
 0x25c   : > { %11185 = vst [vmem:[#allocation81_spill] sm:$0xff] %v6778_v56  ;;  %11186 = vst [vmem:[#allocation82_spill] sm:$0xff] %v6780_v38 }
 0x25d   : > { %v6784_v55 = vpop.f32.mrf.mxu0  ;;  %v6786_v63 = vpop.f32.mrf.mxu1  ;;  %v2687_v34 = vmax.f32 %v2686_v7, %v6676_v57  ;;  %v2720_v57 = vmax.f32 %v6662_v46, %v6674_v51 }
 0x25e   : > { %11187 = vst [vmem:[#allocation83_spill] sm:$0xff] %v6786_v63  ;;  %v2380_v63 = vpop.trf.xlu0 }
 0x25f   : > { %v6788_v0 = vpop.f32.mrf.mxu0  ;;  %v6790_v12 = vpop.f32.mrf.mxu1  ;;  %5350 = vmatmul.mubr.msk.bf16.gmra.mxu1 %vm1461_vm2, %v2379_v60  ;;  %v2688_v17 = vmax.f32 %v2687_v34, %v6688_v31 }
 0x260   : > { %11188 = vst [vmem:[#allocation84_spill] sm:$0xff] %v6790_v12  ;;  %2631 = vmatprep.mubr.bf16.mxu1 %v11182_v43  ;;  %v2650_v12 = vmax.f32 %v2649_v59, %v6672_v50 }
 0x261   : > { %v6796_v2 = vpop.f32.mrf.mxu0  ;;  %v6798_v39 = vpop.f32.mrf.mxu1  ;;  %v2689_v7 = vmax.f32 %v2688_v17, %v6696_v3  ;;  %v2757_v17 = vmax.f32 %v6670_v48, %v6678_v16 }
 0x262   : > { %11189 = vst [vmem:[#allocation85_spill] sm:$0xff] %v6796_v2  ;;  %11190 = vst [vmem:[#allocation86_spill] sm:$0xff] %v6798_v39  ;;  %v2651_v42 = vmax.f32 %v2650_v12, %v6680_v23 }
 0x263   : > { %v6800_v15 = vpop.f32.mrf.mxu0  ;;  %v6802_v6 = vpop.f32.mrf.mxu1 }
 0x264   : > { %11191 = vst [vmem:[#allocation87_spill] sm:$0xff] %v6800_v15  ;;  %11192 = vst [vmem:[#allocation88_spill] sm:$0xff] %v6802_v6  ;;  %v2652_v21 = vmax.f32 %v2651_v42, %v6692_v33 }
 0x265   : > { %v6806_v60 = vpop.f32.mrf.mxu0  ;;  %v6808_v9 = vpop.f32.mrf.mxu1 }
 0x266   : > { %11193 = vst [vmem:[#allocation89_spill] sm:$0xff] %v6806_v60  ;;  %11194 = vst [vmem:[#allocation90_spill] sm:$0xff] %v6808_v9  ;;  %v2653_v12 = vmax.f32 %v2652_v21, %v6700_v54  ;;  %v2721_v21 = vmax.f32 %v2720_v57, %v6682_v24 }
 0x267   : > { %v6812_v43 = vpop.f32.mrf.mxu0  ;;  %v6814_v35 = vpop.f32.mrf.mxu1  ;;  %5351 = vmatmul.mubr.msk.bf16.gmra.mxu1 %vm1461_vm2, %v2380_v63 }
 0x268   : > { %11195 = vst [vmem:[#allocation91_spill] sm:$0xff] %v6812_v43  ;;  %11196 = vst [vmem:[#allocation92_spill] sm:$0xff] %v6814_v35  ;;  %4556 = vmatprep.mubr.bf16.mxu1 %v5465_v52  ;;  %v2654_v34 = vmax.f32 %v2653_v12, %v6712_v28  ;;  %v2722_v12 = vmax.f32 %v2721_v21, %v6694_v27 }
 0x269   : > { %v6819_v59 = vpop.f32.mrf.mxu0  ;;  %v6821_v50 = vpop.f32.mrf.mxu1 }
 0x26a   : > { %11197 = vst [vmem:[#allocation93_spill] sm:$0xff] %v6821_v50  ;;  %v2655_v3 = vmax.f32 %v2654_v34, %v6720_v20 }
 0x26b   : > { %v6823_v47 = vpop.f32.mrf.mxu0  ;;  %v6825_v9 = vpop.f32.mrf.mxu1 }
 0x26c   : > { %11198 = vst [vmem:[#allocation94_spill] sm:$0xff] %v6825_v9  ;;  %v2690_v9 = vmax.f32 %v2689_v7, %v6708_v44  ;;  %v2758_v7 = vmax.f32 %v2757_v17, %v6690_v40  ;;  %v2656_v28 = vmax.f32 %v2655_v3, %v6732_v13 }
 0x26d   : > { %v6829_v35 = vpop.f32.mrf.mxu0  ;;  %v6831_v63 = vpop.f32.mrf.mxu1 }
 0x26e   : > { %11199 = vst [vmem:[#allocation95_spill] sm:$0xff] %v6829_v35  ;;  %11200 = vst [vmem:[#allocation96_spill] sm:$0xff] %v6831_v63  ;;  %v2691_v54 = vmax.f32 %v2690_v9, %v6716_v32  ;;  %v2759_v57 = vmax.f32 %v2758_v7, %v6698_v61  ;;  %v2723_v9 = vmax.f32 %v2722_v12, %v6702_v62 }
 0x26f   : > { %v6835_v52 = vpop.f32.mrf.mxu0  ;;  %v6837_v23 = vpop.f32.mrf.mxu1  ;;  %v2657_v24 = vmax.f32 %v2656_v28, %v6740_v30 }
 0x270   : > { %11201 = vst [vmem:[#allocation97_spill] sm:$0xff] %v6835_v52  ;;  %11202 = vst [vmem:[#allocation98_spill] sm:$0xff] %v6837_v23  ;;  %v2692_v46 = vmax.f32 %v2691_v54, %v6728_v22  ;;  %v2760_v54 = vmax.f32 %v2759_v57, %v6710_v45  ;;  %v2724_v3 = vmax.f32 %v2723_v9, %v6714_v37 }
 0x271   : > { %v6843_v42 = vpop.f32.mrf.mxu0  ;;  %v6845_v33 = vpop.f32.mrf.mxu1  ;;  %v2658_v27 = vmax.f32 %v2657_v24, %v6752_v18 }
 0x272   : > { %11203 = vst [vmem:[#allocation99_spill] sm:$0xff] %v6845_v33  ;;  %v2693_v34 = vmax.f32 %v2692_v46, %v6736_v5  ;;  %v2761_v46 = vmax.f32 %v2760_v54, %v6718_v36  ;;  %v2725_v28 = vmax.f32 %v2724_v3, %v6722_v11 }
 0x273   : > { %v6852_v31 = vpop.f32.mrf.mxu0  ;;  %v6854_v51 = vpop.f32.mrf.mxu1  ;;  %v2659_v62 = vmax.f32 %v2658_v27, %v6764_v58 }
 0x274   : > { %11204 = vst [vmem:[#allocation100_spill] sm:$0xff] %v6852_v31  ;;  %11205 = vst [vmem:[#allocation101_spill] sm:$0xff] %v6854_v51  ;;  %v2694_v21 = vmax.f32 %v2693_v34, %v6748_v41  ;;  %v2762_v9 = vmax.f32 %v2761_v46, %v6730_v26  ;;  %v2726_v24 = vmax.f32 %v2725_v28, %v6734_v19 }
 0x275   : > { %v6860_v44 = vpop.f32.mrf.mxu0  ;;  %v6862_v16 = vpop.f32.mrf.mxu1  ;;  %v2660_v37 = vmax.f32 %v2659_v62, %v6778_v56 }
 0x276   : > { %11206 = vst [vmem:[#allocation102_spill] sm:$0xff] %v6862_v16  ;;  %v2695_v12 = vmax.f32 %v2694_v21, %v6758_v29  ;;  %v2763_v3 = vmax.f32 %v2762_v9, %v6738_v10  ;;  %v2727_v27 = vmax.f32 %v2726_v24, %v6742_v14 }
 0x277   : > { %v6868_v48 = vpop.f32.mrf.mxu0  ;;  %v6870_v17 = vpop.f32.mrf.mxu1  ;;  %v2661_v11 = vmax.f32 %v2660_v37, %v6788_v0 }
 0x278   : > { %11207 = vst [vmem:[#allocation103_spill] sm:$0xff] %v6870_v17  ;;  %v2696_v34 = vmax.f32 %v2695_v12, %v6774_v1  ;;  %v2764_v28 = vmax.f32 %v2763_v3, %v6750_v49  ;;  %v2728_v62 = vmax.f32 %v2727_v27, %v6754_v8 }
 0x279   : > { %v6876_v40 = vpop.f32.mrf.mxu0  ;;  %v6878_v7 = vpop.f32.mrf.mxu1  ;;  %v2662_v19 = vmax.f32 %v2661_v11, %v6800_v15 }
 0x27a   : > { %11208 = vst [vmem:[#allocation104_spill] sm:$0xff] %v6878_v7  ;;  %v2697_v21 = vmax.f32 %v2696_v34, %v6784_v55  ;;  %v2765_v24 = vmax.f32 %v2764_v28, %v6760_v25  ;;  %v2729_v37 = vmax.f32 %v2728_v62, %v6766_v4  ;;  %v11216_v62 = vld [vmem:[#allocation83_spill] sm:$0xff]  ;;  %v11217_v4 = vld [vmem:[#allocation84_spill] sm:$0xff] }
 0x27b   : > { %v6884_v61 = vpop.f32.mrf.mxu0  ;;  %v6886_v57 = vpop.f32.mrf.mxu1  ;;  %v2663_v14 = vmax.f32 %v2662_v19, %v6812_v43  ;;  %v11309_v1 = vld [vmem:[#allocation100_spill] sm:$0xff] }
 0x27c   : > { %11209 = vst [vmem:[#allocation105_spill] sm:$0xff] %v6886_v57  ;;  %v2698_v12 = vmax.f32 %v2697_v21, %v6796_v2  ;;  %v2766_v27 = vmax.f32 %v2765_v24, %v6776_v53  ;;  %v2730_v11 = vmax.f32 %v2729_v37, %v6780_v38 }
 0x27d   : > { %v6892_v45 = vpop.f32.mrf.mxu0  ;;  %v6894_v54 = vpop.f32.mrf.mxu1  ;;  %v2664_v8 = vmax.f32 %v2663_v14, %v6823_v47 }
 0x27e   : > { %11210 = vst [vmem:[#allocation106_spill] sm:$0xff] %v6894_v54  ;;  %v2699_v34 = vmax.f32 %v2698_v12, %v6806_v60  ;;  %v2767_v12 = vmax.f32 %v2766_v27, %v11216_v62  ;;  %v2731_v19 = vmax.f32 %v2730_v11, %v11217_v4  ;;  %v11221_v11 = vld [vmem:[#allocation90_spill] sm:$0xff]  ;;  %v11222_v4 = vld [vmem:[#allocation92_spill] sm:$0xff] }
 0x27f   : > { %v6900_v36 = vpop.f32.mrf.mxu0  ;;  %v6902_v46 = vpop.f32.mrf.mxu1  ;;  %v2665_v43 = vmax.f32 %v2664_v8, %v6835_v52 }
 0x280   : > { %11211 = vst [vmem:[#allocation107_spill] sm:$0xff] %v6902_v46  ;;  %v2700_v21 = vmax.f32 %v2699_v34, %v6819_v59  ;;  %v2768_v37 = vmax.f32 %v2767_v12, %v6798_v39  ;;  %v2732_v14 = vmax.f32 %v2731_v19, %v6802_v6  ;;  %v11224_v19 = vld [vmem:[#allocation94_spill] sm:$0xff] }
 0x281   : > { %v6908_v26 = vpop.f32.mrf.mxu0  ;;  %v6910_v9 = vpop.f32.mrf.mxu1  ;;  %v2666_v38 = vmax.f32 %v2665_v43, %v6852_v31 }
 0x282   : > { %11212 = vst [vmem:[#allocation108_spill] sm:$0xff] %v6910_v9  ;;  %v2701_v25 = vmax.f32 %v2700_v21, %v6829_v35  ;;  %v2769_v21 = vmax.f32 %v2768_v37, %v11221_v11  ;;  %v2733_v8 = vmax.f32 %v2732_v14, %v11222_v4 }
 0x283   : > { %v6916_v10 = vpop.f32.mrf.mxu0  ;;  %v6918_v3 = vpop.f32.mrf.mxu1  ;;  %v2667_v52 = vmax.f32 %v2666_v38, %v6868_v48 }
 0x284   : > { %11213 = vst [vmem:[#allocation109_spill] sm:$0xff] %v6918_v3  ;;  %v2702_v34 = vmax.f32 %v2701_v25, %v6843_v42  ;;  %v2770_v25 = vmax.f32 %v2769_v21, %v6821_v50  ;;  %v2734_v43 = vmax.f32 %v2733_v8, %v11224_v19 }
 0x285   : > { %v6924_v49 = vpop.f32.mrf.mxu0  ;;  %v6926_v28 = vpop.f32.mrf.mxu1  ;;  %v2668_v39 = vmax.f32 %v2667_v52, %v6884_v61 }
 0x286   : > { %11214 = vst [vmem:[#allocation110_spill] sm:$0xff] %v6924_v49  ;;  %11215 = vst [vmem:[#allocation111_spill] sm:$0xff] %v6926_v28  ;;  %v2703_v62 = vmax.f32 %v2702_v34, %v6860_v44  ;;  %v2771_v14 = vmax.f32 %v2770_v25, %v6831_v63  ;;  %v2735_v38 = vmax.f32 %v2734_v43, %v6837_v23 }
 0x287   : > { %v6932_v60 = vpop.f32.mrf.mxu0  ;;  %v6934_v24 = vpop.f32.mrf.mxu1  ;;  %v2669_v4 = vmax.f32 %v2668_v39, %v6900_v36 }
 0x288   : > { %11218 = vst [vmem:[#allocation112_spill] sm:$0xff] %v6932_v60  ;;  %11219 = vst [vmem:[#allocation113_spill] sm:$0xff] %v6934_v24  ;;  %v2704_v6 = vmax.f32 %v2703_v62, %v6876_v40  ;;  %v2772_v62 = vmax.f32 %v2771_v14, %v6845_v33  ;;  %v2736_v52 = vmax.f32 %v2735_v38, %v6854_v51 }
 0x289   : > { %v6940_v53 = vpop.f32.mrf.mxu0  ;;  %v6942_v27 = vpop.f32.mrf.mxu1  ;;  %v2670_v19 = vmax.f32 %v2669_v4, %v6916_v10 }
 0x28a   : > { %11220 = vst [vmem:[#allocation114_spill] sm:$0xff] %v6942_v27  ;;  %v2705_v34 = vmax.f32 %v2704_v6, %v6892_v45  ;;  %v2773_v6 = vmax.f32 %v2772_v62, %v6862_v16  ;;  %v2737_v39 = vmax.f32 %v2736_v52, %v6870_v17 }
 0x28b   : > { %v6948_v35 = vpop.f32.mrf.mxu0  ;;  %v6950_v12 = vpop.f32.mrf.mxu1  ;;  %v2671_v23 = vmax.f32 %v2670_v19, %v6932_v60 }
 0x28c   : > { %11223 = vst [vmem:[#allocation115_spill] sm:$0xff] %v6950_v12  ;;  %v2706_v8 = vmax.f32 %v2705_v34, %v6908_v26  ;;  %v2774_v38 = vmax.f32 %v2773_v6, %v6878_v7  ;;  %v2738_v4 = vmax.f32 %v2737_v39, %v6886_v57 }
 0x28d   : > { %v6956_v31 = vpop.f32.mrf.mxu0  ;;  %v6958_v37 = vpop.f32.mrf.mxu1  ;;  %v2672_v51 = vmax.f32 %v2671_v23, %v6948_v35 }
 0x28e   : > { %11225 = vst [vmem:[#allocation116_spill] sm:$0xff] %v6956_v31  ;;  %11226 = vst [vmem:[#allocation117_spill] sm:$0xff] %v6958_v37  ;;  %v2707_v43 = vmax.f32 %v2706_v8, %v6924_v49  ;;  %v2775_v52 = vmax.f32 %v2774_v38, %v6894_v54  ;;  %v2739_v19 = vmax.f32 %v2738_v4, %v6902_v46 }
 0x28f   : > { %v6964_v11 = vpop.f32.mrf.mxu0  ;;  %v6966_v21 = vpop.f32.mrf.mxu1 }
 0x290   : > { %11227 = vst [vmem:[#allocation118_spill] sm:$0xff] %v6964_v11  ;;  %11228 = vst [vmem:[#allocation119_spill] sm:$0xff] %v6966_v21  ;;  %v2708_v34 = vmax.f32 %v2707_v43, %v6940_v53  ;;  %v2673_v17 = vmax.f32 %v2672_v51, %v6964_v11  ;;  %v2776_v39 = vmax.f32 %v2775_v52, %v6910_v9 }
 0x291   : > { %v6972_v50 = vpop.f32.mrf.mxu0  ;;  %v6974_v25 = vpop.f32.mrf.mxu1  ;;  %v2740_v23 = vmax.f32 %v2739_v19, %v6918_v3 }
 0x292   : > { %11229 = vst [vmem:[#allocation120_spill] sm:$0xff] %v6972_v50  ;;  %11230 = vst [vmem:[#allocation121_spill] sm:$0xff] %v6974_v25  ;;  %v2709_v8 = vmax.f32 %v2708_v34, %v6956_v31  ;;  %v2777_v4 = vmax.f32 %v2776_v39, %v6926_v28 }
 0x293   : > { %v6980_v63 = vpop.f32.mrf.mxu0  ;;  %v6982_v14 = vpop.f32.mrf.mxu1  ;;  %v2741_v51 = vmax.f32 %v2740_v23, %v6934_v24 }
 0x294   : > { %11231 = vst [vmem:[#allocation122_spill] sm:$0xff] %v6980_v63  ;;  %11232 = vst [vmem:[#allocation123_spill] sm:$0xff] %v6982_v14  ;;  %v2710_v43 = vmax.f32 %v2709_v8, %v6972_v50  ;;  %v2674_v57 = vmax.f32 %v2673_v17, %v6980_v63  ;;  %v2778_v19 = vmax.f32 %v2777_v4, %v6942_v27  ;;  %v6167_v27 = vmov 1966171168  }
 0x295   : > { %v6988_v33 = vpop.f32.mrf.mxu0  ;;  %v6990_v62 = vpop.f32.mrf.mxu1  ;;  %v2742_v17 = vmax.f32 %v2741_v51, %v6950_v12 }
 0x296   : > { %11233 = vst [vmem:[#allocation124_spill] sm:$0xff] %v6988_v33  ;;  %11234 = vst [vmem:[#allocation125_spill] sm:$0xff] %v6990_v62  ;;  %v2711_v34 = vmax.f32 %v2710_v43, %v6988_v33  ;;  %v2779_v23 = vmax.f32 %v2778_v19, %v6958_v37 }
 0x297   : > { %v6996_v16 = vpop.f32.mrf.mxu0  ;;  %v6998_v6 = vpop.f32.mrf.mxu1 }
 0x298   : > { %11235 = vst [vmem:[#allocation126_spill] sm:$0xff] %v6996_v16  ;;  %11236 = vst [vmem:[#allocation127_spill] sm:$0xff] %v6998_v6  ;;  %v2675_v46 = vmax.f32 %v2674_v57, %v6996_v16  ;;  %v2743_v57 = vmax.f32 %v2742_v17, %v6966_v21  ;;  %v2780_v51 = vmax.f32 %v2779_v23, %v6974_v25 }
 0x299   : > { %v7004_v7 = vpop.f32.mrf.mxu0  ;;  %v7006_v38 = vpop.f32.mrf.mxu1 }
 0x29a   : > { %11237 = vst [vmem:[#allocation128_spill] sm:$0xff] %v7004_v7  ;;  %11238 = vst [vmem:[#allocation129_spill] sm:$0xff] %v7006_v38  ;;  %v2712_v8 = vmax.f32 %v2711_v34, %v7004_v7  ;;  %v2744_v34 = vmax.f32 %v2743_v57, %v6982_v14  ;;  %v2781_v17 = vmax.f32 %v2780_v51, %v6990_v62  ;;  %v11249_v14 = vlaneseq }
 0x29b   : > { %v7012_v54 = vpop.f32.mrf.mxu0  ;;  %v7014_v52 = vpop.f32.mrf.mxu1 }
 0x29c   : > { %11239 = vst [vmem:[#allocation130_spill] sm:$0xff] %v7012_v54  ;;  %11240 = vst [vmem:[#allocation131_spill] sm:$0xff] %v7014_v52  ;;  %v2676_v3 = vmax.f32 %v2675_v46, %v7012_v54  ;;  %v2952_v54 = vunpack.c.l.s4 %v6167_v27  ;;  %v2782_v23 = vmax.f32 %v2781_v17, %v7006_v38  ;;  %v2955_v25 = vshrl.u32 %v11249_v14, 7 }
 0x29d   : > { %v7020_v9 = vpop.f32.mrf.mxu0  ;;  %v7022_v39 = vpop.f32.mrf.mxu1 }
 0x29e   : > { %11241 = vst [vmem:[#allocation132_spill] sm:$0xff] %v7020_v9  ;;  %11242 = vst [vmem:[#allocation133_spill] sm:$0xff] %v7022_v39  ;;  %v2677_v43 = vrot.slane %v2676_v3, 4  ;;  %v2713_v24 = vmax.f32 %v2712_v8, %v7020_v9  ;;  %v2745_v8 = vmax.f32 %v2744_v34, %v6998_v6 }
 0x29f   : > { %v7027_v28 = vpop.f32.mrf.mxu1  ;;  %v7029_v4 = vpop.f32.mrf.mxu0 }
 0x2a0   : > { %11243 = vst [vmem:[#allocation134_spill] sm:$0xff] %v7027_v28  ;;  %11244 = vst [vmem:[#allocation135_spill] sm:$0xff] %v7029_v4  ;;  %v2678_v46 = vmax.f32 %v2676_v3, %v2677_v43  ;;  %v2714_v12 = vrot.slane %v2713_v24, 4  ;;  %v2746_v57 = vmax.f32 %v2745_v8, %v7014_v52  ;;  %v2953_v43 = vunpack.c.0.s8 %v2952_v54 }
 0x2a1   : > { %v7033_v7 = vpop.f32.mrf.mxu1  ;;  %v7035_v19 = vpop.f32.mrf.mxu0  ;;  %v11322_v11 = vld [vmem:[#allocation128_spill] sm:$0xff] }
 0x2a2   : > { %11245 = vst [vmem:[#allocation136_spill] sm:$0xff] %v7033_v7  ;;  %11246 = vst [vmem:[#allocation137_spill] sm:$0xff] %v7035_v19  ;;  %v2679_v21 = vrot.slane %v2678_v46, 2  ;;  %v2715_v37 = vmax.f32 %v2713_v24, %v2714_v12  ;;  %v2783_v24 = vmax.f32 %v2782_v23, %v7022_v39  ;;  %v2747_v12 = vmax.f32 %v2746_v57, %v7027_v28 }
 0x2a3   : > { %v7039_v9 = vpop.f32.mrf.mxu1  ;;  %v7041_v16 = vpop.f32.mrf.mxu0  ;;  %v7058_v14 = vsub.s32 %v2953_v43, %v2955_v25 }
 0x2a4   : > { %11247 = vst [vmem:[#allocation138_spill] sm:$0xff] %v7039_v9  ;;  %11248 = vst [vmem:[#allocation139_spill] sm:$0xff] %v7041_v16  ;;  %v2680_v3 = vmax.f32 %v2678_v46, %v2679_v21  ;;  %v2716_v27 = vrot.slane %v2715_v37, 2  ;;  %v2784_v46 = vmax.f32 %v2783_v24, %v7033_v7  ;;  %v2748_v54 = vmax.f32 %v2747_v12, %v7039_v9 }
 0x2a5   : > { %v7046_v33 = vpop.f32.mrf.mxu1  ;;  %v7048_v51 = vpop.f32.mrf.mxu0  ;;  %11254 = vst [vmem:[#allocation144_spill] sm:$0xff] %v7058_v14 }
 0x2a6   : > { %11250 = vst [vmem:[#allocation140_spill] sm:$0xff] %v7046_v33  ;;  %11251 = vst [vmem:[#allocation141_spill] sm:$0xff] %v7048_v51  ;;  %v2681_v34 = vrot.slane %v2680_v3, 1  ;;  %v2717_v6 = vmax.f32 %v2715_v37, %v2716_v27  ;;  %v2785_v23 = vmax.f32 %v2784_v46, %v7046_v33 }
 0x2a7   : > { %v7052_v62 = vpop.f32.mrf.mxu1  ;;  %v7054_v17 = vpop.f32.mrf.mxu0 }
 0x2a8   : > { %11252 = vst [vmem:[#allocation142_spill] sm:$0xff] %v7052_v62  ;;  %11253 = vst [vmem:[#allocation143_spill] sm:$0xff] %v7054_v17  ;;  %v2718_v21 = vrot.slane %v2717_v6, 1  ;;  %v2682_v37 = vmax.f32 %v2680_v3, %v2681_v34  ;;  %v2749_v57 = vmax.f32 %v2748_v54, %v7052_v62  ;;  %v2642_v3 = vld [vmem:[#allocation4] sm:$0x3]  ;;  %v7076_v34 = vsub.s32 0, %v2955_v25 }
 0x2a9   : > { %v7060_v8 = vpop.f32.mrf.mxu1  ;;  %v7062_v52 = vpop.f32.mrf.mxu0  ;;  %v11280_v62 = vld [vmem:[#allocation41_spill] sm:$0xff] }
 0x2aa   : > { %11255 = vst [vmem:[#allocation145_spill] sm:$0xff] %v7060_v8  ;;  %11256 = vst [vmem:[#allocation146_spill] sm:$0xff] %v7062_v52  ;;  %v2719_v27 = vmax.f32 %v2717_v6, %v2718_v21  ;;  %v2786_v24 = vmax.f32 %v2785_v23, %v7060_v8  ;;  %v2794_v21 = vmax.f32 %v7029_v4, %v7041_v16 }
 0x2ab   : > { %v7066_v28 = vpop.f32.mrf.mxu1  ;;  %v7068_v39 = vpop.f32.mrf.mxu0  ;;  %11260 = vst [vmem:[#allocation150_spill] sm:$0xff] %v7076_v34 }
 0x2ac   : > { %11257 = vst [vmem:[#allocation147_spill] sm:$0xff] %v7066_v28  ;;  %11258 = vst [vmem:[#allocation148_spill] sm:$0xff] %v7068_v39  ;;  %v2950_v38 = vcombine.low %v2682_v37, %v2719_v27  ;;  %v2750_v43 = vmax.f32 %v2749_v57, %v7066_v28  ;;  %v7083_v37 = vsub.s32 1, %v2955_v25  ;;  %v11298_v39 = vld [vmem:[#allocation67_spill] sm:$0xff] }
 0x2ad   : > { %v7072_v12 = vpop.f32.mrf.mxu1  ;;  %v7080_v46 = vpop.f32.mrf.mxu0 }
 0x2ae   : > { %11259 = vst [vmem:[#allocation149_spill] sm:$0xff] %v7072_v12  ;;  %v2957_v9 = vrot.slane %v2950_v38, %v7058_v14  ;;  %v2751_v7 = vrot.slane %v2750_v43, 4  ;;  %v2787_v6 = vmax.f32 %v2786_v24, %v7072_v12  ;;  %11261 = vst [vmem:[#allocation151_spill] sm:$0xff] %v7080_v46  ;;  %v2831_v24 = vmax.f32 %v7035_v19, %v7048_v51  ;;  %v11303_v46 = vld [vmem:[#allocation89_spill] sm:$0xff] }
 0x2af   : > { %11262 = vst [vmem:[#allocation152_spill] sm:$0xff] %v7083_v37  ;;  %v7085_v57 = vpop.f32.mrf.mxu0  ;;  %v7087_v38 = vpop.f32.mrf.mxu1  ;;  %v7092_v12 = vmax.f32 %v2794_v21, %v7054_v17 }
 0x2b0   : > { %v2964_v54 = vrot.slane %v2957_v9, %v7058_v14  ;;  %v2752_v27 = vmax.f32 %v2750_v43, %v2751_v7  ;;  %v2788_v23 = vrot.slane %v2787_v6, 4  ;;  %11263 = vst [vmem:[#allocation153_spill] sm:$0xff] %v7085_v57  ;;  %11264 = vst [vmem:[#allocation154_spill] sm:$0xff] %v7087_v38  ;;  %v7113_v19 = vmax.f32 %v2831_v24, %v7062_v52  ;;  %v11282_v38 = vld [vmem:[#allocation44_spill] sm:$0xff]  ;;  %v11285_v43 = vld [vmem:[#allocation46_spill] sm:$0xff] }
 0x2b1   : > { %11265 = vst [vmem:[#allocation155_spill] sm:$0xff] %v7092_v12  ;;  %v7094_v4 = vpop.f32.mrf.mxu0  ;;  %v7096_v8 = vpop.f32.mrf.mxu1  ;;  %v11286_v14 = vld [vmem:[#allocation47_spill] sm:$0xff]  ;;  %v11295_v52 = vld [vmem:[#allocation61_spill] sm:$0xff] }
 0x2b2   : > { %v3014_v28 = vmax.f32 %v2642_v3, %v2964_v54  ;;  %v2753_v16 = vrot.slane %v2752_v27, 2  ;;  %11266 = vst [vmem:[#allocation156_spill] sm:$0xff] %v7094_v4  ;;  %11267 = vst [vmem:[#allocation157_spill] sm:$0xff] %v7096_v8  ;;  %v7106_v54 = vmax.f32 %v2787_v6, %v2788_v23  ;;  %v11277_v23 = vld [vmem:[#allocation38_spill] sm:$0xff]  ;;  %v11289_v4 = vld [vmem:[#allocation53_spill] sm:$0xff] }
 0x2b3   : > { %v7108_v51 = vpop.f32.mrf.mxu0  ;;  %v7110_v21 = vpop.f32.mrf.mxu1  ;;  %11272 = vst [vmem:[#allocation161_spill] sm:$0xff] %v7113_v19  ;;  %v11281_v8 = vld [vmem:[#allocation42_spill] sm:$0xff]  ;;  %v11297_v6 = vld [vmem:[#allocation65_spill] sm:$0xff]  ;;  %v11307_v57 = vld [vmem:[#allocation95_spill] sm:$0xff] }
 0x2b4   : > { %v3018_v9 = vsub.f32 %v2642_v3, %v3014_v28  ;;  %v7099_v7 = vrot.slane %v3014_v28, %v7076_v34  ;;  %v7102_v25 = vrot.slane %v3014_v28, %v7083_v37  ;;  %4822 = vst.msk [vmem:[#allocation4] sm:$0x3] %vm6634_vm3, %v3014_v28  ;;  %11269 = vst [vmem:[#allocation158_spill] sm:$0xff] %v7106_v54  ;;  %v11276_v28 = vld [vmem:[#allocation37_spill] sm:$0xff] }
 0x2b5   : > { %11270 = vst [vmem:[#allocation159_spill] sm:$0xff] %v7108_v51  ;;  %11271 = vst [vmem:[#allocation160_spill] sm:$0xff] %v7110_v21  ;;  %v7115_v3 = vmax.f32 %v2752_v27, %v2753_v16  ;;  %v7119_v33 = vpop.f32.mrf.mxu0  ;;  %v7121_v37 = vpop.f32.mrf.mxu1  ;;  %v11279_v16 = vld [vmem:[#allocation40_spill] sm:$0xff]  ;;  %v11288_v51 = vld [vmem:[#allocation51_spill] sm:$0xff] }
 0x2b6   : > { %v3022_v17 = vmul.f32 1.442695, %v3018_v9  ;;  %11274 = vst [vmem:[#allocation163_spill] sm:$0xff] %v7119_v33  ;;  %11275 = vst [vmem:[#allocation164_spill] sm:$0xff] %v7121_v37  ;;  %v11278_v9 = vld [vmem:[#allocation39_spill] sm:$0xff]  ;;  %v11287_v33 = vld [vmem:[#allocation49_spill] sm:$0xff] }
 0x2b7   : > { %11273 = vst [vmem:[#allocation162_spill] sm:$0xff] %v7115_v3  ;;  %v7138_v21 = vpop.f32.mrf.mxu0  ;;  %v7140_v34 = vpop.f32.mrf.mxu1  ;;  %v11294_v27 = vld [vmem:[#allocation59_spill] sm:$0xff]  ;;  %v11317_v3 = vsub.f32 %v11278_v9, %v7099_v7  ;;  %v11324_v9 = vld [vmem:[#allocation130_spill] sm:$0xff] }
 0x2b8   : > { %11283 = vst [vmem:[#allocation37_spill] sm:$0xff] %v7138_v21  ;;  %11284 = vst [vmem:[#allocation38_spill] sm:$0xff] %v7140_v34  ;;  %5558 = vpow2.f32 %v3022_v17  ;;  %v11290_v21 = vld [vmem:[#allocation55_spill] sm:$0xff]  ;;  %v11291_v17 = vld [vmem:[#allocation57_spill] sm:$0xff] }
 0x2b9   : > { %v7156_v12 = vpop.f32.mrf.mxu0  ;;  %v7158_v24 = vpop.f32.mrf.mxu1  ;;  %v11296_v37 = vld [vmem:[#allocation63_spill] sm:$0xff] }
 0x2ba   : > { %11292 = vst [vmem:[#allocation39_spill] sm:$0xff] %v7156_v12  ;;  %11293 = vst [vmem:[#allocation40_spill] sm:$0xff] %v7158_v24 }
 0x2bb   : > { %v7176_v12 = vpop.f32.mrf.mxu0  ;;  %v7178_v19 = vpop.f32.mrf.mxu1 }
 0x2bc   : > { %11299 = vst [vmem:[#allocation41_spill] sm:$0xff] %v7176_v12  ;;  %11300 = vst [vmem:[#allocation42_spill] sm:$0xff] %v7178_v19  ;;  %v11308_v19 = vld [vmem:[#allocation97_spill] sm:$0xff] }
 0x2bd   : > { %v7196_v12 = vpop.f32.mrf.mxu0  ;;  %v7198_v54 = vpop.f32.mrf.mxu1 }
 0x2be   : > { %11301 = vst [vmem:[#allocation44_spill] sm:$0xff] %v7196_v12  ;;  %11302 = vst [vmem:[#allocation46_spill] sm:$0xff] %v7198_v54  ;;  %v11323_v54 = vsub.f32 %v11279_v16, %v7102_v25 }
 0x2bf   : > { %v7216_v56 = vpop.f32.mrf.mxu0  ;;  %v7218_v34 = vpop.f32.mrf.mxu1 }
 0x2c0   : > { %11305 = vst [vmem:[#allocation47_spill] sm:$0xff] %v7216_v56  ;;  %11306 = vst [vmem:[#allocation49_spill] sm:$0xff] %v7218_v34  ;;  %v11314_v34 = vsub.f32 %v11276_v28, %v7099_v7  ;;  %v3334_v28 = vmul.f32 1.442695, %v11317_v3  ;;  %v3336_v63 = vmul.f32 1.442695, %v11323_v54  ;;  %v11329_v54 = vsub.f32 %v11281_v8, %v7102_v25 }
 0x2c1   : > { %v7236_v56 = vpop.f32.mrf.mxu0  ;;  %v7238_v2 = vpop.f32.mrf.mxu1  ;;  %v11330_v3 = vsub.f32 %v11282_v38, %v7099_v7  ;;  %v11334_v8 = vsub.f32 %v11288_v51, %v7099_v7  ;;  %v11340_v51 = vsub.f32 %v11294_v27, %v7099_v7  ;;  %v11346_v27 = vsub.f32 %v11297_v6, %v7102_v25 }
 0x2c2   : > { %11310 = vst [vmem:[#allocation51_spill] sm:$0xff] %v7236_v56  ;;  %11311 = vst [vmem:[#allocation53_spill] sm:$0xff] %v7238_v2  ;;  %v3330_v24 = vmul.f32 1.442695, %v11314_v34  ;;  %v11315_v2 = vsub.f32 %v11277_v23, %v7102_v25  ;;  %v11326_v23 = vsub.f32 %v11280_v62, %v7099_v7  ;;  %v3340_v16 = vmul.f32 1.442695, %v11329_v54 }
 0x2c3   : > { %v7256_v56 = vpop.f32.mrf.mxu0  ;;  %v7258_v12 = vpop.f32.mrf.mxu1  ;;  %v11332_v62 = vsub.f32 %v11286_v14, %v7099_v7  ;;  %v3350_v54 = vmul.f32 1.442695, %v11334_v8  ;;  %v11338_v14 = vsub.f32 %v11290_v21, %v7099_v7  ;;  %v11350_v6 = vsub.f32 %v6728_v22, %v7102_v25 }
 0x2c4   : > { %11312 = vst [vmem:[#allocation55_spill] sm:$0xff] %v7256_v56  ;;  %11313 = vst [vmem:[#allocation57_spill] sm:$0xff] %v7258_v12  ;;  %v3332_v60 = vmul.f32 1.442695, %v11315_v2  ;;  %5560 = vpow2.f32 %v3330_v24  ;;  %v3842_v2 = vld [vmem:[#allocation5] sm:$0x3]  ;;  %v11331_v24 = vsub.f32 %v11285_v43, %v7102_v25  ;;  %v11337_v43 = vsub.f32 %v11289_v4, %v7102_v25 }
 0x2c5   : > { %v7270_v49 = vpop.eup %5558  ;;  %v7281_v34 = vpop.f32.mrf.mxu0  ;;  %v3342_v12 = vmul.f32 1.442695, %v11330_v3  ;;  %v3354_v3 = vmul.f32 1.442695, %v11338_v14  ;;  %v11342_v4 = vsub.f32 %v11296_v37, %v7099_v7  ;;  %v7357_v14 = vmul.f32 1.442695, %v11346_v27 }
 0x2c6   : > { %11316 = vst [vmem:[#allocation59_spill] sm:$0xff] %v7270_v49  ;;  %11318 = vst [vmem:[#allocation61_spill] sm:$0xff] %v7281_v34  ;;  %v7283_v56 = vpop.f32.mrf.mxu1  ;;  %v11325_v34 = vld [vmem:[#allocation132_spill] sm:$0xff]  ;;  %5562 = vpow2.f32 %v3332_v60  ;;  %v3344_v50 = vmul.f32 1.442695, %v11331_v24  ;;  %v11333_v60 = vsub.f32 %v11287_v33, %v7102_v25  ;;  %v11339_v33 = vsub.f32 %v11291_v17, %v7102_v25 }
 0x2c7   : > { %11319 = vst [vmem:[#allocation63_spill] sm:$0xff] %v7283_v56  ;;  %v3338_v56 = vmul.f32 1.442695, %v11326_v23  ;;  %v7301_v15 = vpop.f32.mrf.mxu0  ;;  %5564 = vpow2.f32 %v3334_v28  ;;  %v3346_v23 = vmul.f32 1.442695, %v11332_v62  ;;  %v7348_v21 = vmul.f32 %v7270_v49, %v3842_v2  ;;  %v11368_v49 = vld [vmem:[#allocation85_spill] sm:$0xff] }
 0x2c8   : > { %11327 = vst [vmem:[#allocation65_spill] sm:$0xff] %v7301_v15  ;;  %v7303_v31 = vpop.f32.mrf.mxu1  ;;  %5566 = vpow2.f32 %v3336_v63  ;;  %v3352_v28 = vmul.f32 1.442695, %v11337_v43  ;;  %v3356_v24 = vmul.f32 1.442695, %v11339_v33  ;;  %v11348_v37 = vsub.f32 %v6716_v32, %v7102_v25 }
 0x2c9   : > { %11328 = vst [vmem:[#allocation67_spill] sm:$0xff] %v7303_v31  ;;  %v3348_v31 = vmul.f32 1.442695, %v11333_v60  ;;  %v7323_v15 = vpop.f32.mrf.mxu0  ;;  %v3358_v62 = vmul.f32 1.442695, %v11340_v51  ;;  %v11341_v60 = vsub.f32 %v11295_v52, %v7102_v25  ;;  %11343 = vst [vmem:[#allocation97_spill] sm:$0xff] %v7348_v21  ;;  %5568 = vpow2.f32 %v3338_v56 }
 0x2ca   : > { %11335 = vst [vmem:[#allocation89_spill] sm:$0xff] %v7323_v15  ;;  %v7325_v38 = vpop.f32.mrf.mxu1  ;;  %v7345_v8 = vmul.f32 1.442695, %v11342_v4  ;;  %v11347_v52 = vsub.f32 %v11298_v39, %v7099_v7  ;;  %v7367_v2 = vmul.f32 1.442695, %v11348_v37  ;;  %5570 = vpow2.f32 %v3340_v16  ;;  %v11427_v15 = vld [vmem:[#allocation148_spill] sm:$0xff] }
 0x2cb   : > { %11336 = vst [vmem:[#allocation95_spill] sm:$0xff] %v7325_v38  ;;  %v3360_v63 = vmul.f32 1.442695, %v11341_v60  ;;  %v7350_v43 = vpop.f32.mrf.mxu0  ;;  %v11349_v51 = vsub.f32 %v6720_v20, %v7099_v7  ;;  %v7377_v60 = vmul.f32 1.442695, %v11350_v6  ;;  %v11351_v39 = vsub.f32 %v6732_v13, %v7099_v7  ;;  %v11425_v38 = vld [vmem:[#allocation153_spill] sm:$0xff] }
 0x2cc   : > { %11344 = vst [vmem:[#allocation100_spill] sm:$0xff] %v7350_v43  ;;  %v7352_v17 = vpop.f32.mrf.mxu1  ;;  %v7362_v33 = vmul.f32 1.442695, %v11347_v52  ;;  %5572 = vpow2.f32 %v3342_v12  ;;  %v11354_v20 = vsub.f32 %v6736_v5, %v7102_v25  ;;  %v11355_v22 = vsub.f32 %v6740_v30, %v7099_v7 }
 0x2cd   : > { %11345 = vst [vmem:[#allocation128_spill] sm:$0xff] %v7352_v17  ;;  %v7372_v56 = vmul.f32 1.442695, %v11349_v51  ;;  %v7382_v4 = vmul.f32 1.442695, %v11351_v39  ;;  %v7384_v27 = vpop.f32.mrf.mxu0  ;;  %v11356_v13 = vsub.f32 %v6748_v41, %v7102_v25  ;;  %5574 = vpow2.f32 %v3344_v50  ;;  %v11362_v50 = vld [vmem:[#allocation79_spill] sm:$0xff] }
 0x2ce   : > { %11352 = vst [vmem:[#allocation130_spill] sm:$0xff] %v7384_v27  ;;  %v7386_v32 = vpop.f32.mrf.mxu1  ;;  %v7391_v16 = vmul.f32 1.442695, %v11354_v20  ;;  %v7396_v52 = vmul.f32 1.442695, %v11355_v22  ;;  %v11357_v51 = vsub.f32 %v6752_v18, %v7099_v7  ;;  %v11358_v5 = vsub.f32 %v6758_v29, %v7102_v25  ;;  %v11420_v17 = vld [vmem:[#allocation158_spill] sm:$0xff] }
 0x2cf   : > { %11353 = vst [vmem:[#allocation132_spill] sm:$0xff] %v7386_v32  ;;  %v7401_v37 = vmul.f32 1.442695, %v11356_v13  ;;  %v11359_v30 = vsub.f32 %v6764_v58, %v7099_v7  ;;  %v7418_v20 = vpop.f32.mrf.mxu0  ;;  %5576 = vpow2.f32 %v3346_v23  ;;  %v11363_v18 = vsub.f32 %v11362_v50, %v7102_v25  ;;  %v11364_v13 = vld [vmem:[#allocation81_spill] sm:$0xff] }
 0x2d0   : > { %v7406_v12 = vmul.f32 1.442695, %v11357_v51  ;;  %v7411_v6 = vmul.f32 1.442695, %v11358_v5  ;;  %11360 = vst [vmem:[#allocation165_spill] sm:$0xff] %v7418_v20  ;;  %v7420_v41 = vpop.f32.mrf.mxu1  ;;  %v11365_v29 = vsub.f32 %v11364_v13, %v7099_v7  ;;  %v11366_v58 = vsub.f32 %v6784_v55, %v7102_v25 }
 0x2d1   : > { %v7416_v39 = vmul.f32 1.442695, %v11359_v30  ;;  %11361 = vst [vmem:[#allocation166_spill] sm:$0xff] %v7420_v41  ;;  %v7425_v22 = vmul.f32 1.442695, %v11363_v18  ;;  %5578 = vpow2.f32 %v3348_v31  ;;  %v11367_v30 = vsub.f32 %v6788_v0, %v7099_v7  ;;  %v11370_v41 = vld [vmem:[#allocation87_spill] sm:$0xff]  ;;  %v7452_v20 = vpop.f32.mrf.mxu0 }
 0x2d2   : > { %v7430_v51 = vmul.f32 1.442695, %v11365_v29  ;;  %v7435_v5 = vmul.f32 1.442695, %v11366_v58  ;;  %v11369_v50 = vsub.f32 %v11368_v49, %v7102_v25  ;;  %v11371_v13 = vsub.f32 %v11370_v41, %v7099_v7  ;;  %11372 = vst [vmem:[#allocation79_spill] sm:$0xff] %v7452_v20  ;;  %v7454_v55 = vpop.f32.mrf.mxu1  ;;  %v11375_v58 = vld [vmem:[#allocation91_spill] sm:$0xff] }
 0x2d3   : > { %v7440_v23 = vmul.f32 1.442695, %v11367_v30  ;;  %11373 = vst [vmem:[#allocation81_spill] sm:$0xff] %v7454_v55  ;;  %5580 = vpow2.f32 %v3350_v54  ;;  %v11374_v31 = vsub.f32 %v11303_v46, %v7102_v25  ;;  %v11376_v49 = vsub.f32 %v11375_v58, %v7099_v7  ;;  %v7486_v55 = vpop.f32.mrf.mxu0 }
 0x2d4   : > { %v7445_v18 = vmul.f32 1.442695, %v11369_v50  ;;  %v7450_v29 = vmul.f32 1.442695, %v11371_v13  ;;  %v11377_v41 = vsub.f32 %v6819_v59, %v7102_v25  ;;  %5582 = vpow2.f32 %v3352_v28  ;;  %11381 = vst [vmem:[#allocation85_spill] sm:$0xff] %v7486_v55  ;;  %v7488_v59 = vpop.f32.mrf.mxu1  ;;  %v7490_v28 = vpop.eup %5560 }
 0x2d5   : > { %v7459_v0 = vmul.f32 1.442695, %v11374_v31  ;;  %v7464_v30 = vmul.f32 1.442695, %v11376_v49  ;;  %v11378_v13 = vsub.f32 %v6823_v47, %v7099_v7  ;;  %v11379_v46 = vsub.f32 %v11307_v57, %v7102_v25  ;;  %11382 = vst [vmem:[#allocation87_spill] sm:$0xff] %v7488_v59  ;;  %11383 = vst [vmem:[#allocation91_spill] sm:$0xff] %v7490_v28 }
 0x2d6   : > { %v7469_v50 = vmul.f32 1.442695, %v11377_v41  ;;  %v11380_v58 = vsub.f32 %v11308_v19, %v7099_v7  ;;  %5584 = vpow2.f32 %v3354_v3  ;;  %v11384_v47 = vsub.f32 %v6843_v42, %v7102_v25 }
 0x2d7   : > { %v7474_v54 = vmul.f32 1.442695, %v11378_v13  ;;  %v7479_v31 = vmul.f32 1.442695, %v11379_v46  ;;  %v11385_v57 = vsub.f32 %v11309_v1, %v7099_v7  ;;  %v11386_v19 = vsub.f32 %v6860_v44, %v7102_v25  ;;  %v7524_v44 = vpop.f32.mrf.mxu0 }
 0x2d8   : > { %v7484_v49 = vmul.f32 1.442695, %v11380_v58  ;;  %v7495_v41 = vmul.f32 1.442695, %v11384_v47  ;;  %v7507_v58 = vpop.eup %5562  ;;  %5586 = vpow2.f32 %v3356_v24  ;;  %v11388_v3 = vsub.f32 %v6868_v48, %v7099_v7  ;;  %11391 = vst [vmem:[#allocation168_spill] sm:$0xff] %v7524_v44 }
 0x2d9   : > { %v7500_v13 = vmul.f32 1.442695, %v11385_v57  ;;  %v7505_v46 = vmul.f32 1.442695, %v11386_v19  ;;  %11387 = vst [vmem:[#allocation167_spill] sm:$0xff] %v7507_v58  ;;  %v11389_v42 = vsub.f32 %v6876_v40, %v7102_v25  ;;  %v11390_v1 = vsub.f32 %v6884_v61, %v7099_v7  ;;  %v7526_v19 = vpop.f32.mrf.mxu1  ;;  %v7528_v24 = vpop.eup %5564 }
 0x2da   : > { %v7512_v59 = vmul.f32 1.442695, %v11388_v3  ;;  %11392 = vst [vmem:[#allocation169_spill] sm:$0xff] %v7526_v19  ;;  %11393 = vst [vmem:[#allocation170_spill] sm:$0xff] %v7528_v24  ;;  %5588 = vpow2.f32 %v3358_v62  ;;  %v11394_v48 = vsub.f32 %v6892_v45, %v7102_v25  ;;  %v11395_v40 = vsub.f32 %v6900_v36, %v7099_v7  ;;  %v7545_v44 = vpop.eup %5566  ;;  %v11399_v45 = vld [vmem:[#allocation110_spill] sm:$0xff]  ;;  %v11401_v36 = vld [vmem:[#allocation112_spill] sm:$0xff] }
 0x2db   : > { %v7517_v47 = vmul.f32 1.442695, %v11389_v42  ;;  %v7522_v57 = vmul.f32 1.442695, %v11390_v1  ;;  %v11396_v61 = vsub.f32 %v6908_v26, %v7102_v25  ;;  %11397 = vst [vmem:[#allocation171_spill] sm:$0xff] %v7545_v44  ;;  %5590 = vpow2.f32 %v3360_v63  ;;  %v7562_v26 = vpop.f32.mrf.mxu0 }
 0x2dc   : > { %v7533_v3 = vmul.f32 1.442695, %v11394_v48  ;;  %v7538_v42 = vmul.f32 1.442695, %v11395_v40  ;;  %v11398_v62 = vsub.f32 %v6916_v10, %v7099_v7  ;;  %v11400_v48 = vsub.f32 %v11399_v45, %v7102_v25  ;;  %11403 = vst [vmem:[#allocation110_spill] sm:$0xff] %v7562_v26  ;;  %v7582_v26 = vpop.eup %5568 }
 0x2dd   : > { %v7543_v1 = vmul.f32 1.442695, %v11396_v61  ;;  %v11402_v40 = vsub.f32 %v11401_v36, %v7099_v7  ;;  %v7564_v61 = vpop.f32.mrf.mxu1  ;;  %5592 = vpow2.f32 %v7345_v8  ;;  %v11405_v10 = vsub.f32 %v6940_v53, %v7102_v25  ;;  %v11410_v8 = vld [vmem:[#allocation118_spill] sm:$0xff]  ;;  %v7601_v27 = vpop.eup %5570 }
 0x2de   : > { %v7550_v19 = vmul.f32 1.442695, %v11398_v62  ;;  %v7555_v55 = vmul.f32 1.442695, %v11400_v48  ;;  %11404 = vst [vmem:[#allocation112_spill] sm:$0xff] %v7564_v61  ;;  %v11406_v62 = vsub.f32 %v6948_v35, %v7099_v7  ;;  %v11407_v48 = vld [vmem:[#allocation116_spill] sm:$0xff]  ;;  %5594 = vpow2.f32 %v7357_v14  ;;  %v7610_v43 = vpop.eup %5572 }
 0x2df   : > { %v7560_v20 = vmul.f32 1.442695, %v11402_v40  ;;  %v7570_v63 = vmul.f32 1.442695, %v11405_v10  ;;  %v11408_v36 = vsub.f32 %v11407_v48, %v7102_v25  ;;  %11409 = vst [vmem:[#allocation116_spill] sm:$0xff] %v7582_v26  ;;  %v11411_v61 = vsub.f32 %v11410_v8, %v7099_v7  ;;  %v11413_v10 = vld [vmem:[#allocation120_spill] sm:$0xff]  ;;  %v7597_v48 = vpop.f32.mrf.mxu0 }
 0x2e0   : > { %v7575_v45 = vmul.f32 1.442695, %v11406_v62  ;;  %v11414_v32 = vsub.f32 %v11413_v10, %v7102_v25  ;;  %v3850_v62 = vadd.f32 %v7528_v24, %v7490_v28  ;;  %11416 = vst [vmem:[#allocation172_spill] sm:$0xff] %v7597_v48  ;;  %11418 = vst [vmem:[#allocation174_spill] sm:$0xff] %v7601_v27  ;;  %5596 = vpow2.f32 %v7362_v33  ;;  %v11423_v28 = vld [vmem:[#allocation151_spill] sm:$0xff] }
 0x2e1   : > { %v7580_v40 = vmul.f32 1.442695, %v11408_v36  ;;  %v7588_v53 = vmul.f32 1.442695, %v11411_v61  ;;  %v7599_v36 = vpop.f32.mrf.mxu1  ;;  %v3887_v14 = vadd.f32 %v7545_v44, %v7507_v58  ;;  %v11419_v61 = vld [vmem:[#allocation162_spill] sm:$0xff]  ;;  %v11421_v10 = vrot.slane %v11420_v17, 2  ;;  %v7620_v58 = vpop.f32.mrf.mxu0 }
 0x2e2   : > { %v7593_v35 = vmul.f32 1.442695, %v11414_v32  ;;  %11417 = vst [vmem:[#allocation173_spill] sm:$0xff] %v7599_v36  ;;  %v2755_v8 = vrot.slane %v11419_v61, 1  ;;  %11422 = vst [vmem:[#allocation162_spill] sm:$0xff] %v7610_v43  ;;  %5598 = vpow2.f32 %v7367_v2  ;;  %v3851_v24 = vadd.f32 %v7582_v26, %v3850_v62  ;;  %v11424_v36 = vld [vmem:[#allocation161_spill] sm:$0xff] }
 0x2e3   : > { %11412 = vst [vmem:[#allocation118_spill] sm:$0xff] %v7588_v53  ;;  %v2791_v32 = vmax.f32 %v11420_v17, %v11421_v10  ;;  %v2833_v48 = vmax.f32 %v11424_v36, %v11423_v28  ;;  %v11426_v33 = vld [vmem:[#allocation155_spill] sm:$0xff]  ;;  %11429 = vst [vmem:[#allocation158_spill] sm:$0xff] %v7620_v58  ;;  %v7624_v53 = vpop.eup %5574  ;;  %5600 = vpow2.f32 %v7372_v56  ;;  %v11432_v17 = vld [vmem:[#allocation122_spill] sm:$0xff]  ;;  %v3888_v36 = vadd.f32 %v7601_v27, %v3887_v14 }
 0x2e4   : > { %11415 = vst [vmem:[#allocation120_spill] sm:$0xff] %v7593_v35  ;;  %v11428_v21 = vmax.f32 %v11426_v33, %v11427_v15  ;;  %v7622_v35 = vpop.f32.mrf.mxu1  ;;  %11431 = vst [vmem:[#allocation155_spill] sm:$0xff] %v7624_v53  ;;  %v11433_v2 = vsub.f32 %v11432_v17, %v7099_v7  ;;  %v7633_v28 = vpop.eup %5576  ;;  %5602 = vpow2.f32 %v7377_v60  ;;  %v11435_v33 = vld [vmem:[#allocation156_spill] sm:$0xff]  ;;  %v11436_v15 = vld [vmem:[#allocation159_spill] sm:$0xff] }
 0x2e5   : > { %11430 = vst [vmem:[#allocation161_spill] sm:$0xff] %v7622_v35  ;;  %v2792_v10 = vrot.slane %v2791_v32, 1  ;;  %11434 = vst [vmem:[#allocation122_spill] sm:$0xff] %v7633_v28  ;;  %v7639_v35 = vpop.f32.mrf.mxu0  ;;  %v7643_v17 = vpop.eup %5578  ;;  %5604 = vpow2.f32 %v7382_v4  ;;  %v3889_v14 = vadd.f32 %v7624_v53, %v3888_v36 }
 0x2e6   : > { %v2797_v44 = vmax.f32 %v11428_v21, %v11425_v38  ;;  %v7630_v62 = vmul.f32 1.442695, %v11433_v2  ;;  %v3852_v21 = vadd.f32 %v7610_v43, %v3851_v24  ;;  %v2834_v38 = vmax.f32 %v2833_v48, %v11435_v33  ;;  %11437 = vst [vmem:[#allocation175_spill] sm:$0xff] %v7639_v35  ;;  %v7641_v56 = vpop.f32.mrf.mxu1  ;;  %11439 = vst [vmem:[#allocation177_spill] sm:$0xff] %v7643_v17  ;;  %v7648_v60 = vpop.eup %5580  ;;  %v11441_v24 = vld [vmem:[#allocation124_spill] sm:$0xff]  ;;  %v11443_v33 = vld [vmem:[#allocation163_spill] sm:$0xff] }
 0x2e7   : > { %11438 = vst [vmem:[#allocation176_spill] sm:$0xff] %v7641_v56  ;;  %v2756_v2 = vmax.f32 %v11419_v61, %v2755_v8  ;;  %v2793_v27 = vmax.f32 %v2791_v32, %v2792_v10  ;;  %11440 = vst [vmem:[#allocation178_spill] sm:$0xff] %v7648_v60  ;;  %5606 = vpow2.f32 %v7391_v16  ;;  %v7660_v4 = vpop.eup %5582  ;;  %v3890_v61 = vadd.f32 %v7643_v17, %v3889_v14  ;;  %v11446_v32 = vld [vmem:[#allocation37_spill] sm:$0xff]  ;;  %v11448_v10 = vld [vmem:[#allocation126_spill] sm:$0xff]  ;;  %v7679_v14 = vpop.f32.mrf.mxu0 }
 0x2e8   : > { %v2798_v26 = vmax.f32 %v2797_v44, %v11436_v15  ;;  %v11442_v44 = vsub.f32 %v11441_v24, %v7102_v25  ;;  %v3853_v15 = vadd.f32 %v7633_v28, %v3852_v21  ;;  %v2835_v43 = vmax.f32 %v2834_v38, %v11443_v33  ;;  %v7658_v56 = vpop.f32.mrf.mxu1  ;;  %11445 = vst [vmem:[#allocation179_spill] sm:$0xff] %v7660_v4  ;;  %v7665_v36 = vpop.eup %5584  ;;  %v11457_v33 = vld [vmem:[#allocation160_spill] sm:$0xff]  ;;  %v11516_v17 = vld [vmem:[#allocation66_spill] sm:$0xff] }
 0x2e9   : > { %11444 = vst [vmem:[#allocation124_spill] sm:$0xff] %v7658_v56  ;;  %5608 = vpow2.f32 %v7396_v52  ;;  %v2965_v8 = vcombine.low %v2756_v2, %v2793_v27  ;;  %11447 = vst [vmem:[#allocation180_spill] sm:$0xff] %v7665_v36  ;;  %v11449_v21 = vsub.f32 %v11448_v10, %v7099_v7  ;;  %v11450_v38 = vsub.f32 %v11322_v11, %v7102_v25  ;;  %v11455_v11 = vld [vmem:[#allocation144_spill] sm:$0xff] }
 0x2ea   : > { %v7654_v48 = vmul.f32 1.442695, %v11442_v44  ;;  %v2799_v16 = vmax.f32 %v2798_v26, %v11446_v32  ;;  %5610 = vpow2.f32 %v7401_v37  ;;  %v3854_v52 = vadd.f32 %v7648_v60, %v3853_v15  ;;  %11451 = vst [vmem:[#allocation126_spill] sm:$0xff] %v7679_v14  ;;  %v7681_v27 = vpop.f32.mrf.mxu1  ;;  %v7683_v26 = vpop.eup %5586  ;;  %v2643_v32 = vld [vmem:[#allocation4 + $0x2] sm:$0x3] }
 0x2eb   : > { %v7671_v24 = vmul.f32 1.442695, %v11449_v21  ;;  %v7676_v44 = vmul.f32 1.442695, %v11450_v38  ;;  %11452 = vst [vmem:[#allocation181_spill] sm:$0xff] %v7681_v27  ;;  %11453 = vst [vmem:[#allocation182_spill] sm:$0xff] %v7683_v26  ;;  %5612 = vpow2.f32 %v7406_v12  ;;  %v11454_v37 = vsub.f32 %v11324_v9, %v7099_v7  ;;  %v7693_v38 = vpop.eup %5588 }
 0x2ec   : > { %v3891_v10 = vadd.f32 %v7660_v4, %v3890_v61  ;;  %v2972_v21 = vrot.slane %v2965_v8, %v11455_v11  ;;  %11456 = vst [vmem:[#allocation183_spill] sm:$0xff] %v7693_v38  ;;  %5614 = vpow2.f32 %v7411_v6  ;;  %v3855_v15 = vadd.f32 %v7665_v36, %v3854_v52  ;;  %v11458_v27 = vld [vmem:[#allocation154_spill] sm:$0xff]  ;;  %v11459_v12 = vld [vmem:[#allocation39_spill] sm:$0xff]  ;;  %v7700_v28 = vpop.f32.mrf.mxu1  ;;  %v7702_v7 = vpop.eup %5590  ;;  %v11462_v8 = vld [vmem:[#allocation41_spill] sm:$0xff] }
 0x2ed   : > { %v7689_v2 = vmul.f32 1.442695, %v11454_v37  ;;  %v2868_v53 = vmax.f32 %v11458_v27, %v11457_v33  ;;  %v2836_v60 = vmax.f32 %v2835_v43, %v11459_v12  ;;  %11460 = vst [vmem:[#allocation184_spill] sm:$0xff] %v7700_v28  ;;  %11461 = vst [vmem:[#allocation185_spill] sm:$0xff] %v7702_v7  ;;  %5616 = vpow2.f32 %v7416_v39  ;;  %v7708_v37 = vpop.eup %5592  ;;  %v11465_v27 = vld [vmem:[#allocation164_spill] sm:$0xff]  ;;  %v11466_v12 = vld [vmem:[#allocation157_spill] sm:$0xff]  ;;  %v7719_v28 = vpop.f32.mrf.mxu0 }
 0x2ee   : > { %v3892_v9 = vadd.f32 %v7683_v26, %v3891_v10  ;;  %v2979_v61 = vrot.slane %v2972_v21, %v11455_v11  ;;  %v2800_v6 = vmax.f32 %v2799_v16, %v11462_v8  ;;  %11463 = vst [vmem:[#allocation186_spill] sm:$0xff] %v7708_v37  ;;  %5618 = vpow2.f32 %v7425_v22  ;;  %11467 = vst [vmem:[#allocation187_spill] sm:$0xff] %v7719_v28  ;;  %v7721_v10 = vpop.f32.mrf.mxu1  ;;  %v7723_v21 = vpop.eup %5594  ;;  %v11470_v8 = vld [vmem:[#allocation38_spill] sm:$0xff]  ;;  %v11506_v35 = vld [vmem:[#allocation56_spill] sm:$0xff] }
 0x2ef   : > { %v11464_v52 = vsub.f32 %v11325_v34, %v7102_v25  ;;  %v3856_v33 = vadd.f32 %v7693_v38, %v3855_v15  ;;  %v2905_v39 = vmax.f32 %v11466_v12, %v11465_v27  ;;  %11468 = vst [vmem:[#allocation188_spill] sm:$0xff] %v7721_v10  ;;  %11469 = vst [vmem:[#allocation189_spill] sm:$0xff] %v7723_v21  ;;  %5620 = vpow2.f32 %v7430_v51  ;;  %v7728_v34 = vpop.eup %5596  ;;  %v11473_v12 = vld [vmem:[#allocation44_spill] sm:$0xff] }
 0x2f0   : > { %v3893_v22 = vadd.f32 %v7702_v7, %v3892_v9  ;;  %v3015_v16 = vmax.f32 %v2643_v32, %v2979_v61  ;;  %v2869_v25 = vmax.f32 %v2868_v53, %v11470_v8  ;;  %11471 = vst [vmem:[#allocation190_spill] sm:$0xff] %v7728_v34  ;;  %5622 = vpow2.f32 %v7435_v5  ;;  %v7734_v10 = vpop.f32.mrf.mxu1  ;;  %v7736_v56 = vpop.eup %5598  ;;  %v11477_v61 = vld [vmem:[#allocation47_spill] sm:$0xff]  ;;  %v11481_v8 = vld [vmem:[#allocation42_spill] sm:$0xff]  ;;  %v11513_v36 = vld [vmem:[#allocation64_spill] sm:$0xff] }
 0x2f1   : > { %v7714_v43 = vmul.f32 1.442695, %v11464_v52  ;;  %v3857_v15 = vadd.f32 %v7708_v37, %v3856_v33  ;;  %v11472_v52 = vld [vmem:[#allocation40_spill] sm:$0xff]  ;;  %v2837_v28 = vmax.f32 %v2836_v60, %v11473_v12  ;;  %11474 = vst [vmem:[#allocation191_spill] sm:$0xff] %v7734_v10  ;;  %11475 = vst [vmem:[#allocation192_spill] sm:$0xff] %v7736_v56  ;;  %5624 = vpow2.f32 %v7440_v23  ;;  %v7745_v33 = vpop.eup %5600  ;;  %v7753_v12 = vpop.f32.mrf.mxu0  ;;  %v11523_v7 = vld [vmem:[#allocation71_spill] sm:$0xff] }
 0x2f2   : > { %v2906_v27 = vmax.f32 %v2905_v39, %v11472_v52  ;;  %v3894_v51 = vadd.f32 %v7723_v21, %v3893_v22  ;;  %v3019_v9 = vsub.f32 %v2643_v32, %v3015_v16  ;;  %4823 = vst.msk [vmem:[#allocation4 + $0x2] sm:$0x3] %vm6634_vm3, %v3015_v16  ;;  %v7743_v5 = vmax.f32 %v2800_v6, %v11477_v61  ;;  %v11480_v39 = vld [vmem:[#allocation150_spill] sm:$0xff]  ;;  %v7755_v32 = vpop.f32.mrf.mxu1  ;;  %v7757_v22 = vpop.eup %5602  ;;  %v11485_v61 = vld [vmem:[#allocation152_spill] sm:$0xff] }
 0x2f3   : > { %11479 = vst [vmem:[#allocation194_spill] sm:$0xff] %v7745_v33  ;;  %5626 = vpow2.f32 %v7445_v18  ;;  %v3858_v60 = vadd.f32 %v7728_v34, %v3857_v15  ;;  %v7750_v52 = vrot.slane %v3015_v16, %v11480_v39  ;;  %v2870_v23 = vmax.f32 %v2869_v25, %v11481_v8  ;;  %11482 = vst [vmem:[#allocation195_spill] sm:$0xff] %v7753_v12  ;;  %v11486_v18 = vld [vmem:[#allocation46_spill] sm:$0xff]  ;;  %v7765_v14 = vpop.eup %5604  ;;  %v11488_v8 = vld [vmem:[#allocation49_spill] sm:$0xff] }
 0x2f4   : > { %11478 = vst [vmem:[#allocation193_spill] sm:$0xff] %v7743_v5  ;;  %11483 = vst [vmem:[#allocation196_spill] sm:$0xff] %v7755_v32  ;;  %5628 = vpow2.f32 %v7450_v29  ;;  %v3895_v6 = vadd.f32 %v7736_v56, %v3894_v51  ;;  %v7762_v10 = vrot.slane %v3015_v16, %v11485_v61  ;;  %v2907_v15 = vmax.f32 %v2906_v27, %v11486_v18  ;;  %v11490_v32 = vld [vmem:[#allocation51_spill] sm:$0xff]  ;;  %v7775_v29 = vpop.f32.mrf.mxu1  ;;  %v7777_v51 = vpop.eup %5606  ;;  %v11494_v16 = vld [vmem:[#allocation53_spill] sm:$0xff] }
 0x2f5   : > { %11484 = vst [vmem:[#allocation197_spill] sm:$0xff] %v7757_v22  ;;  %11487 = vst [vmem:[#allocation198_spill] sm:$0xff] %v7765_v14  ;;  %5630 = vpow2.f32 %v7459_v0  ;;  %v3859_v25 = vadd.f32 %v7745_v33, %v3858_v60  ;;  %v7770_v39 = vmax.f32 %v2870_v23, %v11488_v8  ;;  %v7773_v12 = vmax.f32 %v2837_v28, %v11490_v32  ;;  %v11498_v8 = vld [vmem:[#allocation48_spill] sm:$0xff]  ;;  %v11556_v5 = vld [vmem:[#allocation98_spill] sm:$0xff] }
 0x2f6   : > { %11492 = vst [vmem:[#allocation201_spill] sm:$0xff] %v7775_v29  ;;  %11493 = vst [vmem:[#allocation202_spill] sm:$0xff] %v7777_v51  ;;  %5632 = vpow2.f32 %v7464_v30  ;;  %v3896_v27 = vadd.f32 %v7757_v22, %v3895_v6  ;;  %v7782_v18 = vmax.f32 %v2907_v15, %v11494_v16  ;;  %v7786_v61 = vpop.eup %5608  ;;  %v7790_v23 = vmul.f32 1.442695, %v3019_v9  ;;  %v7794_v30 = vpop.f32.mrf.mxu0  ;;  %v11502_v16 = vld [vmem:[#allocation50_spill] sm:$0xff]  ;;  %v11524_v56 = vld [vmem:[#allocation72_spill] sm:$0xff] }
 0x2f7   : > { %11489 = vst [vmem:[#allocation199_spill] sm:$0xff] %v7770_v39  ;;  %11491 = vst [vmem:[#allocation200_spill] sm:$0xff] %v7773_v12  ;;  %5634 = vpow2.f32 %v7469_v50  ;;  %v3860_v28 = vadd.f32 %v7765_v14, %v3859_v25  ;;  %v7796_v6 = vpop.f32.mrf.mxu1  ;;  %v7798_v15 = vpop.eup %5610  ;;  %v11503_v25 = vld [vmem:[#allocation52_spill] sm:$0xff]  ;;  %v11509_v50 = vld [vmem:[#allocation58_spill] sm:$0xff] }
 0x2f8   : > { %11495 = vst [vmem:[#allocation203_spill] sm:$0xff] %v7782_v18  ;;  %11497 = vst [vmem:[#allocation204_spill] sm:$0xff] %v7786_v61  ;;  %5636 = vpow2.f32 %v7474_v54  ;;  %v3897_v60 = vadd.f32 %v7777_v51, %v3896_v27  ;;  %v7806_v29 = vpop.eup %5612  ;;  %v7832_v58 = vpop.f32.mrf.mxu0  ;;  %v11527_v14 = vld [vmem:[#allocation74_spill] sm:$0xff]  ;;  %v11537_v22 = vld [vmem:[#allocation80_spill] sm:$0xff] }
 0x2f9   : > { %11499 = vst [vmem:[#allocation48_spill] sm:$0xff] %v7794_v30  ;;  %11500 = vst [vmem:[#allocation205_spill] sm:$0xff] %v7796_v6  ;;  %5638 = vpow2.f32 %v7479_v31  ;;  %v3861_v32 = vadd.f32 %v7786_v61, %v3860_v28  ;;  %v11505_v6 = vld [vmem:[#allocation54_spill] sm:$0xff]  ;;  %v7814_v4 = vpop.f32.mrf.mxu1  ;;  %v7816_v27 = vpop.eup %5614  ;;  %v11510_v31 = vld [vmem:[#allocation60_spill] sm:$0xff] }
 0x2fa   : > { %11501 = vst [vmem:[#allocation206_spill] sm:$0xff] %v7798_v15  ;;  %11504 = vst [vmem:[#allocation50_spill] sm:$0xff] %v7806_v29  ;;  %5640 = vpow2.f32 %v7484_v49  ;;  %v3898_v9 = vadd.f32 %v7798_v15, %v3897_v60  ;;  %v7824_v38 = vpop.eup %5616  ;;  %v11512_v30 = vld [vmem:[#allocation62_spill] sm:$0xff]  ;;  %v7868_v33 = vpop.f32.mrf.mxu0  ;;  %v11568_v12 = vld [vmem:[#allocation105_spill] sm:$0xff] }
 0x2fb   : > { %11507 = vst [vmem:[#allocation52_spill] sm:$0xff] %v7814_v4  ;;  %11508 = vst [vmem:[#allocation54_spill] sm:$0xff] %v7816_v27  ;;  %5642 = vpow2.f32 %v7495_v41  ;;  %v3862_v54 = vadd.f32 %v7806_v29, %v3861_v32  ;;  %v7834_v60 = vpop.eup %5618  ;;  %v11517_v41 = vld [vmem:[#allocation68_spill] sm:$0xff]  ;;  %v7842_v26 = vpop.f32.mrf.mxu1  ;;  %v11535_v29 = vld [vmem:[#allocation78_spill] sm:$0xff] }
 0x2fc   : > { %11511 = vst [vmem:[#allocation56_spill] sm:$0xff] %v7824_v38  ;;  %11514 = vst [vmem:[#allocation58_spill] sm:$0xff] %v7832_v58  ;;  %5644 = vpow2.f32 %v7500_v13  ;;  %v3899_v28 = vadd.f32 %v7816_v27, %v3898_v9  ;;  %v7844_v4 = vpop.eup %5620  ;;  %v11520_v58 = vld [vmem:[#allocation69_spill] sm:$0xff]  ;;  %v11521_v13 = vld [vmem:[#allocation70_spill] sm:$0xff] }
 0x2fd   : > { %11515 = vst [vmem:[#allocation60_spill] sm:$0xff] %v7834_v60  ;;  %11518 = vst [vmem:[#allocation62_spill] sm:$0xff] %v7842_v26  ;;  %5646 = vpow2.f32 %v7505_v46  ;;  %v3863_v49 = vadd.f32 %v7824_v38, %v3862_v54  ;;  %v7852_v37 = vpop.eup %5622  ;;  %v11526_v9 = vld [vmem:[#allocation73_spill] sm:$0xff]  ;;  %v11538_v27 = vld [vmem:[#allocation82_spill] sm:$0xff] }
 0x2fe   : > { %11519 = vst [vmem:[#allocation64_spill] sm:$0xff] %v7844_v4  ;;  %11522 = vst [vmem:[#allocation66_spill] sm:$0xff] %v7852_v37  ;;  %5648 = vpow2.f32 %v7512_v59  ;;  %v3900_v32 = vadd.f32 %v7834_v60, %v3899_v28  ;;  %v7860_v21 = vpop.eup %5624  ;;  %v7870_v28 = vpop.f32.mrf.mxu1  ;;  %v11549_v38 = vld [vmem:[#allocation92_spill] sm:$0xff] }
 0x2ff   : > { %11525 = vst [vmem:[#allocation68_spill] sm:$0xff] %v7860_v21  ;;  %5650 = vpow2.f32 %v7517_v47  ;;  %v3864_v54 = vadd.f32 %v7844_v4, %v3863_v49  ;;  %11528 = vst [vmem:[#allocation69_spill] sm:$0xff] %v7868_v33  ;;  %v11531_v47 = vld [vmem:[#allocation75_spill] sm:$0xff]  ;;  %v11532_v49 = vld [vmem:[#allocation76_spill] sm:$0xff]  ;;  %v7904_v4 = vpop.f32.mrf.mxu0 }
 0x300   : > { %11529 = vst [vmem:[#allocation70_spill] sm:$0xff] %v7870_v28  ;;  %v7872_v26 = vpop.eup %5626  ;;  %5652 = vpow2.f32 %v7522_v57  ;;  %v3901_v46 = vadd.f32 %v7852_v37, %v3900_v32  ;;  %v11534_v28 = vld [vmem:[#allocation77_spill] sm:$0xff]  ;;  %v11540_v57 = vld [vmem:[#allocation83_spill] sm:$0xff]  ;;  %11542 = vst [vmem:[#allocation75_spill] sm:$0xff] %v7904_v4 }
 0x301   : > { %11530 = vst [vmem:[#allocation71_spill] sm:$0xff] %v7872_v26  ;;  %v7880_v34 = vpop.eup %5628  ;;  %5654 = vpow2.f32 %v7533_v3  ;;  %v3865_v59 = vadd.f32 %v7860_v21, %v3864_v54  ;;  %v11541_v21 = vld [vmem:[#allocation84_spill] sm:$0xff]  ;;  %v7942_v18 = vpop.f32.mrf.mxu0  ;;  %v11564_v37 = vld [vmem:[#allocation103_spill] sm:$0xff] }
 0x302   : > { %11533 = vst [vmem:[#allocation72_spill] sm:$0xff] %v7880_v34  ;;  %v7888_v61 = vpop.eup %5630  ;;  %5656 = vpow2.f32 %v7538_v42  ;;  %v3902_v32 = vadd.f32 %v7872_v26, %v3901_v46  ;;  %v7906_v46 = vpop.f32.mrf.mxu1  ;;  %v11552_v26 = vld [vmem:[#allocation93_spill] sm:$0xff]  ;;  %v11555_v4 = vld [vmem:[#allocation96_spill] sm:$0xff]  ;;  %11557 = vst [vmem:[#allocation84_spill] sm:$0xff] %v7942_v18 }
 0x303   : > { %11536 = vst [vmem:[#allocation73_spill] sm:$0xff] %v7888_v61  ;;  %v7896_v15 = vpop.eup %5632  ;;  %5658 = vpow2.f32 %v7543_v1  ;;  %v3866_v54 = vadd.f32 %v7880_v34, %v3865_v59  ;;  %11543 = vst [vmem:[#allocation76_spill] sm:$0xff] %v7906_v46  ;;  %v11545_v1 = vld [vmem:[#allocation86_spill] sm:$0xff]  ;;  %v11546_v59 = vld [vmem:[#allocation88_spill] sm:$0xff]  ;;  %v7978_v11 = vpop.f32.mrf.mxu0 }
 0x304   : > { %11539 = vst [vmem:[#allocation74_spill] sm:$0xff] %v7896_v15  ;;  %v7908_v51 = vpop.eup %5634  ;;  %5660 = vpow2.f32 %v7550_v19  ;;  %v3903_v3 = vadd.f32 %v7888_v61, %v3902_v32  ;;  %v11548_v46 = vld [vmem:[#allocation90_spill] sm:$0xff]  ;;  %v7924_v0 = vpop.f32.mrf.mxu1 }
 0x305   : > { %11544 = vst [vmem:[#allocation77_spill] sm:$0xff] %v7908_v51  ;;  %v7916_v33 = vpop.eup %5636  ;;  %5662 = vpow2.f32 %v7555_v55  ;;  %v3867_v42 = vadd.f32 %v7896_v15, %v3866_v54  ;;  %11550 = vst [vmem:[#allocation80_spill] sm:$0xff] %v7924_v0  ;;  %v11553_v55 = vld [vmem:[#allocation94_spill] sm:$0xff]  ;;  %v8014_v39 = vpop.f32.mrf.mxu0 }
 0x306   : > { %11547 = vst [vmem:[#allocation78_spill] sm:$0xff] %v7916_v33  ;;  %v7926_v32 = vpop.eup %5638  ;;  %5664 = vpow2.f32 %v7560_v20  ;;  %v3904_v34 = vadd.f32 %v7908_v51, %v3903_v3  ;;  %v7944_v3 = vpop.f32.mrf.mxu1  ;;  %11573 = vst [vmem:[#allocation94_spill] sm:$0xff] %v7978_v11 }
 0x307   : > { %11551 = vst [vmem:[#allocation82_spill] sm:$0xff] %v7926_v32  ;;  %v7934_v15 = vpop.eup %5640  ;;  %5666 = vpow2.f32 %v7570_v63  ;;  %v3868_v19 = vadd.f32 %v7916_v33, %v3867_v42  ;;  %11558 = vst [vmem:[#allocation86_spill] sm:$0xff] %v7944_v3  ;;  %v11560_v63 = vld [vmem:[#allocation99_spill] sm:$0xff]  ;;  %v11561_v42 = vld [vmem:[#allocation101_spill] sm:$0xff] }
 0x308   : > { %11554 = vst [vmem:[#allocation83_spill] sm:$0xff] %v7934_v15  ;;  %v7946_v61 = vpop.eup %5642  ;;  %5668 = vpow2.f32 %v7575_v45  ;;  %v3905_v54 = vadd.f32 %v7926_v32, %v3904_v34  ;;  %v11563_v3 = vld [vmem:[#allocation102_spill] sm:$0xff]  ;;  %v11567_v33 = vld [vmem:[#allocation104_spill] sm:$0xff]  ;;  %11587 = vst [vmem:[#allocation103_spill] sm:$0xff] %v8014_v39 }
 0x309   : > { %11559 = vst [vmem:[#allocation88_spill] sm:$0xff] %v7946_v61  ;;  %v7954_v0 = vpop.eup %5644  ;;  %5670 = vpow2.f32 %v7580_v40  ;;  %v3869_v20 = vadd.f32 %v7934_v15, %v3868_v19  ;;  %v11566_v34 = vld [vmem:[#allocation118_spill] sm:$0xff]  ;;  %v11570_v19 = vld [vmem:[#allocation120_spill] sm:$0xff] }
 0x30a   : > { %11562 = vst [vmem:[#allocation90_spill] sm:$0xff] %v7954_v0  ;;  %v7962_v60 = vpop.eup %5646  ;;  %5672 = vpow2.f32 %v11566_v34  ;;  %v3906_v51 = vadd.f32 %v7946_v61, %v3905_v54  ;;  %v7980_v54 = vpop.f32.mrf.mxu1 }
 0x30b   : > { %11565 = vst [vmem:[#allocation92_spill] sm:$0xff] %v7962_v60  ;;  %v7970_v53 = vpop.eup %5648  ;;  %5674 = vpow2.f32 %v11570_v19  ;;  %v3870_v18 = vadd.f32 %v7954_v0, %v3869_v20  ;;  %11574 = vst [vmem:[#allocation96_spill] sm:$0xff] %v7980_v54  ;;  %v11576_v19 = vld [vmem:[#allocation108_spill] sm:$0xff]  ;;  %v11579_v54 = vld [vmem:[#allocation111_spill] sm:$0xff] }
 0x30c   : > { %11569 = vst [vmem:[#allocation93_spill] sm:$0xff] %v7970_v53  ;;  %v7982_v32 = vpop.eup %5650  ;;  %5676 = vpow2.f32 %v7630_v62  ;;  %v3907_v40 = vadd.f32 %v7962_v60, %v3906_v51  ;;  %v11582_v0 = vld [vmem:[#allocation114_spill] sm:$0xff]  ;;  %v11583_v60 = vld [vmem:[#allocation115_spill] sm:$0xff] }
 0x30d   : > { %11575 = vst [vmem:[#allocation98_spill] sm:$0xff] %v7982_v32  ;;  %v7990_v15 = vpop.eup %5652  ;;  %5678 = vpow2.f32 %v7654_v48  ;;  %v3871_v34 = vadd.f32 %v7970_v53, %v3870_v18 }
 0x30e   : > { %11578 = vst [vmem:[#allocation99_spill] sm:$0xff] %v7990_v15  ;;  %v7998_v45 = vpop.eup %5654  ;;  %5680 = vpow2.f32 %v7671_v24  ;;  %v3908_v51 = vadd.f32 %v7982_v32, %v3907_v40  ;;  %v8016_v40 = vpop.f32.mrf.mxu1 }
 0x30f   : > { %11581 = vst [vmem:[#allocation101_spill] sm:$0xff] %v7998_v45  ;;  %v8006_v20 = vpop.eup %5656  ;;  %5682 = vpow2.f32 %v7676_v44  ;;  %v3872_v18 = vadd.f32 %v7990_v15, %v3871_v34  ;;  %11588 = vst [vmem:[#allocation118_spill] sm:$0xff] %v8016_v40  ;;  %v11590_v44 = vld [vmem:[#allocation121_spill] sm:$0xff] }
 0x310   : > { %11584 = vst [vmem:[#allocation102_spill] sm:$0xff] %v8006_v20  ;;  %v8018_v61 = vpop.eup %5658  ;;  %5684 = vpow2.f32 %v7689_v2  ;;  %v3909_v48 = vadd.f32 %v7998_v45, %v3908_v51  ;;  %v11593_v40 = vld [vmem:[#allocation125_spill] sm:$0xff]  ;;  %v11600_v2 = vsub.f32 %v11498_v8, %v7750_v52  ;;  %v8055_v32 = vpop.f32.mrf.mxu1  ;;  %v11607_v8 = vsub.f32 %v11503_v25, %v7750_v52 }
 0x311   : > { %11589 = vst [vmem:[#allocation104_spill] sm:$0xff] %v8018_v61  ;;  %v8026_v11 = vpop.eup %5660  ;;  %5686 = vpow2.f32 %v7714_v43  ;;  %v3873_v24 = vadd.f32 %v8006_v20, %v3872_v18  ;;  %11603 = vst [vmem:[#allocation114_spill] sm:$0xff] %v8055_v32  ;;  %v11606_v20 = vld [vmem:[#allocation136_spill] sm:$0xff]  ;;  %v11609_v32 = vld [vmem:[#allocation138_spill] sm:$0xff] }
 0x312   : > { %11592 = vst [vmem:[#allocation105_spill] sm:$0xff] %v8026_v11  ;;  %v8034_v62 = vpop.eup %5662  ;;  %v3910_v51 = vadd.f32 %v8018_v61, %v3909_v48  ;;  %5688 = vpow2.f32 %v7790_v23  ;;  %v3458_v53 = vmul.f32 1.442695, %v11600_v2  ;;  %v11601_v23 = vsub.f32 %v11502_v16, %v7762_v10  ;;  %v8053_v61 = vpop.f32.mrf.mxu0  ;;  %v11616_v15 = vld [vmem:[#allocation145_spill] sm:$0xff] }
 0x313   : > { %11595 = vst [vmem:[#allocation120_spill] sm:$0xff] %v8034_v62  ;;  %v8042_v34 = vpop.eup %5664  ;;  %v3874_v18 = vadd.f32 %v8026_v11, %v3873_v24  ;;  %11602 = vst [vmem:[#allocation111_spill] sm:$0xff] %v8053_v61  ;;  %v3462_v2 = vmul.f32 1.442695, %v11607_v8  ;;  %v11611_v11 = vsub.f32 %v11505_v6, %v7762_v10  ;;  %v8095_v8 = vpop.f32.mrf.mxu1 }
 0x314   : > { %11598 = vst [vmem:[#allocation108_spill] sm:$0xff] %v8042_v34  ;;  %v3460_v48 = vmul.f32 1.442695, %v11601_v23  ;;  %v8057_v43 = vpop.eup %5666  ;;  %v3911_v45 = vadd.f32 %v8034_v62, %v3910_v51  ;;  %5690 = vpow2.f32 %v3458_v53  ;;  %11619 = vst [vmem:[#allocation145_spill] sm:$0xff] %v8095_v8  ;;  %v11625_v8 = vsub.f32 %v11512_v30, %v7762_v10 }
 0x315   : > { %11604 = vst [vmem:[#allocation115_spill] sm:$0xff] %v8057_v43  ;;  %v8067_v16 = vpop.eup %5668  ;;  %v3875_v23 = vadd.f32 %v8042_v34, %v3874_v18  ;;  %v3464_v62 = vmul.f32 1.442695, %v11611_v11  ;;  %v11614_v18 = vsub.f32 %v11506_v35, %v7750_v52  ;;  %v11617_v11 = vsub.f32 %v11509_v50, %v7762_v10 }
 0x316   : > { %11608 = vst [vmem:[#allocation121_spill] sm:$0xff] %v8067_v16  ;;  %v8077_v24 = vpop.eup %5670  ;;  %v3912_v39 = vadd.f32 %v8057_v43, %v3911_v45  ;;  %5692 = vpow2.f32 %v3460_v48  ;;  %v8093_v43 = vpop.f32.mrf.mxu0  ;;  %v11629_v30 = vsub.f32 %v11517_v41, %v7750_v52  ;;  %v11634_v41 = vsub.f32 %v11523_v7, %v7762_v10 }
 0x317   : > { %11612 = vst [vmem:[#allocation125_spill] sm:$0xff] %v8077_v24  ;;  %v3466_v34 = vmul.f32 1.442695, %v11614_v18  ;;  %v8085_v61 = vpop.eup %5672  ;;  %v3876_v51 = vadd.f32 %v8067_v16, %v3875_v23  ;;  %v3468_v45 = vmul.f32 1.442695, %v11617_v11  ;;  %11618 = vst [vmem:[#allocation138_spill] sm:$0xff] %v8093_v43  ;;  %5694 = vpow2.f32 %v3462_v2 }
 0x318   : > { %11615 = vst [vmem:[#allocation136_spill] sm:$0xff] %v8085_v61  ;;  %v8097_v53 = vpop.eup %5674  ;;  %v3913_v35 = vadd.f32 %v8077_v24, %v3912_v39  ;;  %v11621_v18 = vld [vmem:[#allocation147_spill] sm:$0xff]  ;;  %v11622_v23 = vsub.f32 %v11510_v31, %v7750_v52  ;;  %v11624_v11 = vld [vmem:[#allocation149_spill] sm:$0xff]  ;;  %5696 = vpow2.f32 %v3464_v62  ;;  %v3472_v39 = vmul.f32 1.442695, %v11625_v8  ;;  %v8131_v43 = vpop.f32.mrf.mxu0 }
 0x319   : > { %11620 = vst [vmem:[#allocation207_spill] sm:$0xff] %v8097_v53  ;;  %v8105_v6 = vpop.eup %5676  ;;  %v3877_v50 = vadd.f32 %v8085_v61, %v3876_v51  ;;  %5698 = vpow2.f32 %v3466_v34  ;;  %v11627_v31 = vsub.f32 %v11513_v36, %v7750_v52  ;;  %v11628_v51 = vsub.f32 %v11516_v17, %v7762_v10  ;;  %11631 = vst [vmem:[#allocation208_spill] sm:$0xff] %v8131_v43  ;;  %v8133_v36 = vpop.f32.mrf.mxu1 }
 0x31a   : > { %v3470_v48 = vmul.f32 1.442695, %v11622_v23  ;;  %11623 = vst [vmem:[#allocation147_spill] sm:$0xff] %v8105_v6  ;;  %v8113_v16 = vpop.eup %5678  ;;  %v3914_v2 = vadd.f32 %v8097_v53, %v3913_v35  ;;  %5700 = vpow2.f32 %v3468_v45  ;;  %v3478_v8 = vmul.f32 1.442695, %v11629_v30  ;;  %11632 = vst [vmem:[#allocation209_spill] sm:$0xff] %v8133_v36 }
 0x31b   : > { %11626 = vst [vmem:[#allocation149_spill] sm:$0xff] %v8113_v16  ;;  %v3474_v23 = vmul.f32 1.442695, %v11627_v31  ;;  %v3476_v25 = vmul.f32 1.442695, %v11628_v51  ;;  %v8122_v24 = vpop.eup %5680  ;;  %v3878_v62 = vadd.f32 %v8105_v6, %v3877_v50  ;;  %v11630_v34 = vsub.f32 %v11520_v58, %v7762_v10  ;;  %v11713_v53 = vld [vmem:[#allocation133_spill] sm:$0xff] }
 0x31c   : > { %v8135_v31 = vpop.eup %5682  ;;  %v3915_v17 = vadd.f32 %v8113_v16, %v3914_v2  ;;  %5702 = vpow2.f32 %v3470_v48  ;;  %v11633_v45 = vsub.f32 %v11521_v13, %v7750_v52  ;;  %v3484_v51 = vmul.f32 1.442695, %v11634_v41  ;;  %v11710_v16 = vld [vmem:[#allocation144_spill] sm:$0xff] }
 0x31d   : > { %v3480_v35 = vmul.f32 1.442695, %v11630_v34  ;;  %v8144_v30 = vpop.eup %5684  ;;  %v3879_v58 = vadd.f32 %v8122_v24, %v3878_v62  ;;  %5704 = vpow2.f32 %v3472_v39  ;;  %v11636_v34 = vsub.f32 %v11524_v56, %v7750_v52 }
 0x31e   : > { %v3482_v50 = vmul.f32 1.442695, %v11633_v45  ;;  %11635 = vst [vmem:[#allocation210_spill] sm:$0xff] %v8144_v30  ;;  %v11637_v48 = vsub.f32 %v11526_v9, %v7762_v10  ;;  %v8153_v43 = vpop.eup %5686  ;;  %v3916_v13 = vadd.f32 %v8135_v31, %v3915_v17  ;;  %5706 = vpow2.f32 %v3474_v23 }
 0x31f   : > { %v3486_v36 = vmul.f32 1.442695, %v11636_v34  ;;  %v11638_v7 = vsub.f32 %v11527_v14, %v7750_v52  ;;  %v11639_v39 = vsub.f32 %v11531_v47, %v7762_v10  ;;  %v8162_v41 = vpop.eup %5688  ;;  %v3880_v56 = vadd.f32 %v8144_v30, %v3879_v58  ;;  %v8173_v14 = vpop.f32.mrf.mxu1 }
 0x320   : > { %v3488_v2 = vmul.f32 1.442695, %v11637_v48  ;;  %11640 = vst [vmem:[#allocation211_spill] sm:$0xff] %v8162_v41  ;;  %5708 = vpow2.f32 %v3476_v25  ;;  %v11641_v9 = vsub.f32 %v11532_v49, %v7750_v52  ;;  %v11642_v23 = vsub.f32 %v11534_v28, %v7762_v10  ;;  %v8171_v48 = vpop.f32.mrf.mxu0  ;;  %11644 = vst [vmem:[#allocation213_spill] sm:$0xff] %v8173_v14 }
 0x321   : > { %v3490_v45 = vmul.f32 1.442695, %v11638_v7  ;;  %v3492_v62 = vmul.f32 1.442695, %v11639_v39  ;;  %11643 = vst [vmem:[#allocation212_spill] sm:$0xff] %v8171_v48  ;;  %v3917_v47 = vadd.f32 %v8153_v43, %v3916_v13  ;;  %5710 = vpow2.f32 %v3478_v8 }
 0x322   : > { %v3494_v34 = vmul.f32 1.442695, %v11641_v9  ;;  %v3496_v17 = vmul.f32 1.442695, %v11642_v23  ;;  %v11645_v7 = vsub.f32 %v11535_v29, %v7750_v52  ;;  %v11646_v25 = vsub.f32 %v11537_v22, %v7762_v10 }
 0x323   : > { %v3881_v39 = vrot.slane %v3880_v56, 4  ;;  %5712 = vpow2.f32 %v3480_v35  ;;  %v11647_v28 = vsub.f32 %v11538_v27, %v7750_v52  ;;  %v11648_v23 = vsub.f32 %v11540_v57, %v7762_v10  ;;  %v8198_v35 = vpop.eup %5690 }
 0x324   : > { %v3498_v58 = vmul.f32 1.442695, %v11645_v7  ;;  %v3500_v49 = vmul.f32 1.442695, %v11646_v25  ;;  %v3918_v13 = vrot.slane %v3917_v47, 4  ;;  %5714 = vpow2.f32 %v3482_v50  ;;  %11651 = vst [vmem:[#allocation214_spill] sm:$0xff] %v8198_v35 }
 0x325   : > { %v3502_v9 = vmul.f32 1.442695, %v11647_v28  ;;  %v3504_v41 = vmul.f32 1.442695, %v11648_v23  ;;  %v11649_v29 = vsub.f32 %v11541_v21, %v7750_v52  ;;  %v11650_v22 = vsub.f32 %v11545_v1, %v7762_v10  ;;  %v8210_v28 = vpop.f32.mrf.mxu0  ;;  %v8212_v23 = vpop.f32.mrf.mxu1 }
 0x326   : > { %v3882_v27 = vadd.f32 %v3881_v39, %v3880_v56  ;;  %5716 = vpow2.f32 %v3484_v51  ;;  %v11652_v57 = vsub.f32 %v11546_v59, %v7750_v52  ;;  %v11653_v50 = vsub.f32 %v11548_v46, %v7762_v10  ;;  %11654 = vst [vmem:[#allocation215_spill] sm:$0xff] %v8210_v28  ;;  %11655 = vst [vmem:[#allocation216_spill] sm:$0xff] %v8212_v23  ;;  %v8214_v1 = vpop.eup %5692 }
 0x327   : > { %v8191_v8 = vmul.f32 1.442695, %v11649_v29  ;;  %v8196_v7 = vmul.f32 1.442695, %v11650_v22  ;;  %11656 = vst [vmem:[#allocation217_spill] sm:$0xff] %v8214_v1  ;;  %v3919_v29 = vadd.f32 %v3918_v13, %v3917_v47  ;;  %5718 = vpow2.f32 %v3486_v36  ;;  %v8226_v46 = vpop.eup %5694  ;;  %v8264_v23 = vpop.f32.mrf.mxu1 }
 0x328   : > { %v8203_v25 = vmul.f32 1.442695, %v11652_v57  ;;  %v8208_v21 = vmul.f32 1.442695, %v11653_v50  ;;  %v11657_v51 = vsub.f32 %v11549_v38, %v7750_v52  ;;  %v11658_v59 = vsub.f32 %v11552_v26, %v7762_v10  ;;  %11659 = vst [vmem:[#allocation218_spill] sm:$0xff] %v8226_v46  ;;  %v8238_v47 = vpop.eup %5696  ;;  %11669 = vst [vmem:[#allocation222_spill] sm:$0xff] %v8264_v23 }
 0x329   : > { %v3883_v22 = vrot.slane %v3882_v27, 2  ;;  %5720 = vpow2.f32 %v3488_v2  ;;  %v11660_v57 = vsub.f32 %v11553_v55, %v7750_v52  ;;  %v11661_v36 = vsub.f32 %v11555_v4, %v7762_v10  ;;  %11662 = vst [vmem:[#allocation219_spill] sm:$0xff] %v8238_v47  ;;  %v8316_v48 = vpop.f32.mrf.mxu1 }
 0x32a   : > { %v8219_v56 = vmul.f32 1.442695, %v11657_v51  ;;  %v8224_v39 = vmul.f32 1.442695, %v11658_v59  ;;  %v3920_v13 = vrot.slane %v3919_v29, 2  ;;  %5722 = vpow2.f32 %v3490_v45  ;;  %v8250_v59 = vpop.eup %5698  ;;  %11686 = vst [vmem:[#allocation225_spill] sm:$0xff] %v8316_v48 }
 0x32b   : > { %v8231_v50 = vmul.f32 1.442695, %v11660_v57  ;;  %v8236_v38 = vmul.f32 1.442695, %v11661_v36  ;;  %v11663_v26 = vsub.f32 %v11556_v5, %v7750_v52  ;;  %v11664_v2 = vsub.f32 %v11560_v63, %v7762_v10  ;;  %11665 = vst [vmem:[#allocation220_spill] sm:$0xff] %v8250_v59  ;;  %v8266_v63 = vpop.eup %5700  ;;  %v8380_v61 = vpop.f32.mrf.mxu1 }
 0x32c   : > { %v3884_v57 = vadd.f32 %v3883_v22, %v3882_v27  ;;  %5724 = vpow2.f32 %v3492_v62  ;;  %v11666_v4 = vsub.f32 %v11561_v42, %v7750_v52  ;;  %v11667_v45 = vsub.f32 %v11563_v3, %v7762_v10  ;;  %11670 = vst [vmem:[#allocation223_spill] sm:$0xff] %v8266_v63  ;;  %v8278_v3 = vpop.eup %5702 }
 0x32d   : > { %v8243_v51 = vmul.f32 1.442695, %v11663_v26  ;;  %v8248_v55 = vmul.f32 1.442695, %v11664_v2  ;;  %v8262_v26 = vpop.f32.mrf.mxu0  ;;  %v3921_v2 = vadd.f32 %v3920_v13, %v3919_v29  ;;  %5726 = vpow2.f32 %v3494_v34  ;;  %11673 = vst [vmem:[#allocation224_spill] sm:$0xff] %v8278_v3  ;;  %v11675_v34 = vld [vmem:[#allocation106_spill] sm:$0xff]  ;;  %v8290_v13 = vpop.eup %5704 }
 0x32e   : > { %v8255_v36 = vmul.f32 1.442695, %v11666_v4  ;;  %v8260_v5 = vmul.f32 1.442695, %v11667_v45  ;;  %11668 = vst [vmem:[#allocation221_spill] sm:$0xff] %v8262_v26  ;;  %v11671_v62 = vsub.f32 %v11564_v37, %v7750_v52  ;;  %v11672_v42 = vsub.f32 %v11567_v33, %v7762_v10  ;;  %11677 = vst [vmem:[#allocation106_spill] sm:$0xff] %v8290_v13 }
 0x32f   : > { %v3885_v4 = vrot.slane %v3884_v57, 1  ;;  %5728 = vpow2.f32 %v3496_v17  ;;  %v11674_v45 = vsub.f32 %v11568_v12, %v7750_v52  ;;  %v11676_v29 = vsub.f32 %v11675_v34, %v7762_v10  ;;  %v11678_v33 = vld [vmem:[#allocation107_spill] sm:$0xff]  ;;  %v11682_v34 = vld [vmem:[#allocation109_spill] sm:$0xff] }
 0x330   : > { %v8271_v27 = vmul.f32 1.442695, %v11671_v62  ;;  %v8276_v22 = vmul.f32 1.442695, %v11672_v42  ;;  %v3922_v62 = vrot.slane %v3921_v2, 1  ;;  %5730 = vpow2.f32 %v3498_v58 }
 0x331   : > { %v8283_v23 = vmul.f32 1.442695, %v11674_v45  ;;  %v8288_v37 = vmul.f32 1.442695, %v11676_v29  ;;  %v11679_v42 = vsub.f32 %v11678_v33, %v7750_v52  ;;  %v11680_v17 = vsub.f32 %v11576_v19, %v7762_v10  ;;  %v8302_v45 = vpop.eup %5706 }
 0x332   : > { %11681 = vst [vmem:[#allocation107_spill] sm:$0xff] %v8302_v45  ;;  %v3886_v26 = vadd.f32 %v3885_v4, %v3884_v57  ;;  %5732 = vpow2.f32 %v3500_v49  ;;  %v11683_v29 = vsub.f32 %v11682_v34, %v7750_v52  ;;  %v11684_v58 = vsub.f32 %v11579_v54, %v7762_v10  ;;  %v8318_v19 = vpop.eup %5708  ;;  %v11688_v57 = vld [vmem:[#allocation113_spill] sm:$0xff] }
 0x333   : > { %v8295_v14 = vmul.f32 1.442695, %v11679_v42  ;;  %v8300_v12 = vmul.f32 1.442695, %v11680_v17  ;;  %v8314_v42 = vpop.f32.mrf.mxu0  ;;  %11687 = vst [vmem:[#allocation226_spill] sm:$0xff] %v8318_v19  ;;  %v3923_v17 = vadd.f32 %v3922_v62, %v3921_v2  ;;  %5734 = vpow2.f32 %v3502_v9  ;;  %v8330_v54 = vpop.eup %5710  ;;  %v11693_v2 = vld [vmem:[#allocation117_spill] sm:$0xff] }
 0x334   : > { %v8307_v28 = vmul.f32 1.442695, %v11683_v29  ;;  %v8312_v33 = vmul.f32 1.442695, %v11684_v58  ;;  %11685 = vst [vmem:[#allocation109_spill] sm:$0xff] %v8314_v42  ;;  %v11689_v49 = vsub.f32 %v11688_v57, %v7750_v52  ;;  %v11690_v34 = vsub.f32 %v11582_v0, %v7762_v10  ;;  %11691 = vst [vmem:[#allocation113_spill] sm:$0xff] %v8330_v54  ;;  %v8347_v0 = vpop.eup %5712 }
 0x335   : > { %5736 = vpow2.f32 %v3504_v41  ;;  %v11692_v58 = vsub.f32 %v11583_v60, %v7750_v52  ;;  %v11694_v9 = vsub.f32 %v11693_v2, %v7762_v10  ;;  %v11695_v57 = vld [vmem:[#allocation119_spill] sm:$0xff]  ;;  %11697 = vst [vmem:[#allocation117_spill] sm:$0xff] %v8347_v0  ;;  %v11698_v60 = vsub.f32 %v11590_v44, %v7762_v10  ;;  %v8360_v6 = vpop.eup %5714 }
 0x336   : > { %v8323_v4 = vmul.f32 1.442695, %v11689_v49  ;;  %v8328_v29 = vmul.f32 1.442695, %v11690_v34  ;;  %v11696_v49 = vsub.f32 %v11695_v57, %v7750_v52  ;;  %v4154_v34 = vcombine.low %v3886_v26, %v3923_v17  ;;  %11701 = vst [vmem:[#allocation119_spill] sm:$0xff] %v8360_v6 }
 0x337   : > { %v8335_v48 = vmul.f32 1.442695, %v11692_v58  ;;  %v8340_v62 = vmul.f32 1.442695, %v11694_v9  ;;  %5738 = vpow2.f32 %v8191_v8  ;;  %v8353_v41 = vmul.f32 1.442695, %v11698_v60 }
 0x338   : > { %v8345_v42 = vmul.f32 1.442695, %v11696_v49  ;;  %v11699_v58 = vld [vmem:[#allocation123_spill] sm:$0xff]  ;;  %5740 = vpow2.f32 %v8196_v7  ;;  %v11702_v57 = vsub.f32 %v11593_v40, %v7762_v10  ;;  %v11705_v49 = vld [vmem:[#allocation129_spill] sm:$0xff]  ;;  %v8382_v7 = vpop.eup %5716  ;;  %v4161_v40 = vrot.slane %v4154_v34, %v11710_v16 }
 0x339   : > { %v11700_v2 = vsub.f32 %v11699_v58, %v7750_v52  ;;  %v11703_v8 = vld [vmem:[#allocation127_spill] sm:$0xff]  ;;  %v11706_v60 = vsub.f32 %v11705_v49, %v7762_v10  ;;  %11709 = vst [vmem:[#allocation129_spill] sm:$0xff] %v8382_v7  ;;  %5742 = vpow2.f32 %v8203_v25  ;;  %v11714_v49 = vsub.f32 %v11713_v53, %v7762_v10  ;;  %v8396_v30 = vpop.eup %5718 }
 0x33a   : > { %v8366_v26 = vmul.f32 1.442695, %v11702_v57  ;;  %v11704_v17 = vsub.f32 %v11703_v8, %v7750_v52  ;;  %11708 = vst [vmem:[#allocation127_spill] sm:$0xff] %v8380_v61  ;;  %v11711_v57 = vld [vmem:[#allocation131_spill] sm:$0xff]  ;;  %5744 = vpow2.f32 %v8208_v21  ;;  %v11716_v61 = vld [vmem:[#allocation134_spill] sm:$0xff]  ;;  %v11718_v25 = vsub.f32 %v11606_v20, %v7762_v10  ;;  %v8411_v53 = vpop.eup %5720 }
 0x33b   : > { %v8358_v9 = vmul.f32 1.442695, %v11700_v2  ;;  %v8376_v58 = vmul.f32 1.442695, %v11706_v60  ;;  %v8378_v2 = vpop.f32.mrf.mxu0  ;;  %v11712_v8 = vsub.f32 %v11711_v57, %v7750_v52  ;;  %v8394_v60 = vmul.f32 1.442695, %v11714_v49  ;;  %v8422_v20 = vpop.eup %5722 }
 0x33c   : > { %v8371_v44 = vmul.f32 1.442695, %v11704_v17  ;;  %11707 = vst [vmem:[#allocation123_spill] sm:$0xff] %v8378_v2  ;;  %11715 = vst [vmem:[#allocation131_spill] sm:$0xff] %v8396_v30  ;;  %v11717_v2 = vsub.f32 %v11716_v61, %v7750_v52  ;;  %v8407_v57 = vmul.f32 1.442695, %v11718_v25  ;;  %v4168_v49 = vrot.slane %v4161_v40, %v11710_v16 }
 0x33d   : > { %v8389_v17 = vmul.f32 1.442695, %v11712_v8  ;;  %v3924_v8 = vadd.f32 %v8226_v46, %v8198_v35  ;;  %11719 = vst [vmem:[#allocation133_spill] sm:$0xff] %v8411_v53  ;;  %5746 = vpow2.f32 %v8219_v56  ;;  %v11720_v21 = vsub.f32 %v11609_v32, %v7750_v52  ;;  %11722 = vst [vmem:[#allocation227_spill] sm:$0xff] %v8422_v20  ;;  %v11723_v25 = vld [vmem:[#allocation140_spill] sm:$0xff]  ;;  %v11725_v40 = vld [vmem:[#allocation142_spill] sm:$0xff] }
 0x33e   : > { %v8402_v34 = vmul.f32 1.442695, %v11717_v2  ;;  %v3961_v2 = vadd.f32 %v8238_v47, %v8214_v1  ;;  %5748 = vpow2.f32 %v8224_v39  ;;  %v11724_v46 = vsub.f32 %v11723_v25, %v7762_v10  ;;  %v8440_v47 = vpop.eup %5724  ;;  %v11730_v1 = vld [vmem:[#allocation97_spill] sm:$0xff] }
 0x33f   : > { %v8418_v61 = vmul.f32 1.442695, %v11720_v21  ;;  %v11726_v56 = vsub.f32 %v11725_v40, %v7750_v52  ;;  %v3925_v32 = vadd.f32 %v8250_v59, %v3924_v8  ;;  %v8436_v21 = vpop.f32.mrf.mxu0  ;;  %v4218_v39 = vadd.f32 %v4168_v49, %v11730_v1  ;;  %v11736_v49 = vld [vmem:[#allocation57_spill] sm:$0xff] }
 0x340   : > { %v8428_v35 = vmul.f32 1.442695, %v11724_v46  ;;  %11728 = vst [vmem:[#allocation142_spill] sm:$0xff] %v8436_v21  ;;  %5750 = vpow2.f32 %v8231_v50  ;;  %v11731_v46 = vsub.f32 %v11616_v15, %v7762_v10  ;;  %v3962_v40 = vadd.f32 %v8266_v63, %v3961_v2  ;;  %v11737_v50 = vld [vmem:[#allocation199_spill] sm:$0xff] }
 0x341   : > { %11721 = vst [vmem:[#allocation134_spill] sm:$0xff] %v8418_v61  ;;  %v8433_v16 = vmul.f32 1.442695, %v11726_v56  ;;  %v8438_v61 = vpop.f32.mrf.mxu1  ;;  %v8450_v56 = vpop.eup %5726  ;;  %5752 = vpow2.f32 %v8236_v38  ;;  %v11734_v8 = vsub.f32 %v11621_v18, %v7750_v52  ;;  %v3926_v1 = vadd.f32 %v8278_v3, %v3925_v32  ;;  %4226 = vst.msk [vmem:[#allocation5] sm:$0x3] %vm6634_vm3, %v4218_v39  ;;  %v11739_v38 = vld [vmem:[#allocation61_spill] sm:$0xff] }
 0x342   : > { %11729 = vst [vmem:[#allocation228_spill] sm:$0xff] %v8438_v61  ;;  %v8447_v25 = vmul.f32 1.442695, %v11731_v46  ;;  %11733 = vst [vmem:[#allocation229_spill] sm:$0xff] %v8450_v56  ;;  %v2872_v61 = vmax.f32 %v11737_v50, %v11736_v49  ;;  %v8461_v21 = vpop.eup %5728  ;;  %5754 = vpow2.f32 %v8243_v51  ;;  %v3963_v2 = vadd.f32 %v8290_v13, %v3962_v40  ;;  %v11740_v46 = vld [vmem:[#allocation200_spill] sm:$0xff]  ;;  %v11742_v18 = vld [vmem:[#allocation66_spill] sm:$0xff]  ;;  %v8481_v13 = vpop.f32.mrf.mxu0 }
 0x343   : > { %11727 = vst [vmem:[#allocation140_spill] sm:$0xff] %v8433_v16  ;;  %v8456_v59 = vmul.f32 1.442695, %v11734_v8  ;;  %v2839_v63 = vmax.f32 %v11740_v46, %v11739_v38  ;;  %v11741_v52 = vld [vmem:[#allocation60_spill] sm:$0xff]  ;;  %5756 = vpow2.f32 %v8248_v55  ;;  %v3927_v32 = vadd.f32 %v8302_v45, %v3926_v1  ;;  %v11743_v50 = vld [vmem:[#allocation63_spill] sm:$0xff]  ;;  %v11745_v39 = vld [vmem:[#allocation65_spill] sm:$0xff]  ;;  %v8483_v46 = vpop.f32.mrf.mxu1 }
 0x344   : > { %11732 = vst [vmem:[#allocation97_spill] sm:$0xff] %v8447_v25  ;;  %v4245_v8 = vpack.c.bf16 %v11742_v18, %v11741_v52  ;;  %v11744_v49 = vld [vmem:[#allocation203_spill] sm:$0xff]  ;;  %v11746_v3 = vld [vmem:[#allocation193_spill] sm:$0xff]  ;;  %11749 = vst [vmem:[#allocation199_spill] sm:$0xff] %v8481_v13  ;;  %5758 = vpow2.f32 %v8255_v36  ;;  %v3964_v55 = vadd.f32 %v8318_v19, %v3963_v2 }
 0x345   : > { %11735 = vst [vmem:[#allocation230_spill] sm:$0xff] %v8456_v59  ;;  %v8471_v59 = vpop.eup %5730  ;;  %v2909_v15 = vmax.f32 %v11744_v49, %v11743_v50  ;;  %v11747_v51 = vld [vmem:[#allocation55_spill] sm:$0xff]  ;;  %11750 = vst [vmem:[#allocation200_spill] sm:$0xff] %v8483_v46  ;;  %v11751_v1 = vld [vmem:[#allocation56_spill] sm:$0xff]  ;;  %5760 = vpow2.f32 %v8260_v5  ;;  %v3928_v36 = vadd.f32 %v8330_v54, %v3927_v32 }
 0x346   : > { %v11748_v25 = vmax.f32 %v11746_v3, %v11747_v51  ;;  %v8485_v38 = vpop.eup %5732  ;;  %4378 = vmatprep.subr.bf16.mxu0 %v4245_v8  ;;  %v11752_v52 = vld [vmem:[#allocation64_spill] sm:$0xff]  ;;  %v11753_v49 = vld [vmem:[#allocation206_spill] sm:$0xff]  ;;  %v11755_v3 = vsub.f32 %v11624_v11, %v7762_v10  ;;  %5762 = vpow2.f32 %v8271_v27  ;;  %v8517_v27 = vpop.f32.mrf.mxu1 }
 0x347   : > { %v4244_v18 = vpack.c.bf16 %v11752_v52, %v11751_v1  ;;  %v11754_v50 = vld [vmem:[#allocation54_spill] sm:$0xff]  ;;  %v8493_v16 = vpop.eup %5734  ;;  %v3965_v1 = vadd.f32 %v8347_v0, %v3964_v55  ;;  %5764 = vpow2.f32 %v8276_v22  ;;  %v3929_v10 = vadd.f32 %v8360_v6, %v3928_v36  ;;  %v11760_v11 = vld [vmem:[#allocation100_spill] sm:$0xff]  ;;  %11763 = vst [vmem:[#allocation203_spill] sm:$0xff] %v8517_v27 }
 0x348   : > { %v2803_v40 = vmax.f32 %v11748_v25, %v11745_v39  ;;  %v4243_v45 = vpack.c.bf16 %v11754_v50, %v11753_v49  ;;  %v8499_v25 = vmul.f32 1.442695, %v11755_v3  ;;  %v11756_v39 = vld [vmem:[#allocation67_spill] sm:$0xff]  ;;  %v8503_v8 = vpop.eup %5736  ;;  %v11757_v50 = vld [vmem:[#allocation89_spill] sm:$0xff]  ;;  %5766 = vpow2.f32 %v8283_v23  ;;  %v11766_v22 = vld [vmem:[#allocation204_spill] sm:$0xff] }
 0x349   : > { %v2873_v2 = vmax.f32 %v2872_v61, %v11756_v39  ;;  %v2840_v52 = vmax.f32 %v2839_v63, %v11757_v50  ;;  %v11758_v49 = vld [vmem:[#allocation95_spill] sm:$0xff]  ;;  %4379 = vmatpush1.bf16.msra.mxu0 %v4244_v18  ;;  %v8509_v5 = vpop.eup %5738  ;;  %v11761_v61 = vld [vmem:[#allocation128_spill] sm:$0xff]  ;;  %v8515_v39 = vpop.f32.mrf.mxu0  ;;  %v3966_v63 = vadd.f32 %v8382_v7, %v3965_v1  ;;  %5768 = vpow2.f32 %v8288_v37  ;;  %v11773_v1 = vld [vmem:[#allocation165_spill] sm:$0xff] }
 0x34a   : > { %v2910_v51 = vmax.f32 %v2909_v15, %v11758_v49  ;;  %11759 = vst [vmem:[#allocation60_spill] sm:$0xff] %v8509_v5  ;;  %v2804_v32 = vmax.f32 %v2803_v40, %v11760_v11  ;;  %4380 = vmatprep.subr.bf16.mxu0 %v4243_v45  ;;  %11762 = vst [vmem:[#allocation66_spill] sm:$0xff] %v8515_v39  ;;  %v8519_v55 = vpop.eup %5740  ;;  %v11765_v15 = vld [vmem:[#allocation130_spill] sm:$0xff]  ;;  %v3930_v45 = vadd.f32 %v8396_v30, %v3929_v10  ;;  %v11769_v40 = vld [vmem:[#allocation132_spill] sm:$0xff] }
 0x34b   : > { %v2874_v3 = vmax.f32 %v2873_v2, %v11761_v61  ;;  %11764 = vst [vmem:[#allocation193_spill] sm:$0xff] %v8519_v55  ;;  %v2841_v18 = vmax.f32 %v2840_v52, %v11765_v15  ;;  %v11767_v49 = vld [vmem:[#allocation50_spill] sm:$0xff]  ;;  %v8526_v50 = vpop.eup %5742  ;;  %v11770_v61 = vld [vmem:[#allocation197_spill] sm:$0xff]  ;;  %5770 = vpow2.f32 %v8295_v14  ;;  %v3967_v23 = vadd.f32 %v8411_v53, %v3966_v63  ;;  %v8547_v14 = vpop.f32.mrf.mxu1 }
 0x34c   : > { %v4242_v36 = vpack.c.bf16 %v11767_v49, %v11766_v22  ;;  %11768 = vst [vmem:[#allocation56_spill] sm:$0xff] %v8526_v50  ;;  %v2911_v2 = vmax.f32 %v2910_v51, %v11769_v40  ;;  %v11771_v11 = vld [vmem:[#allocation202_spill] sm:$0xff]  ;;  %v8533_v0 = vpop.eup %5744  ;;  %v2805_v52 = vmax.f32 %v2804_v32, %v11773_v1  ;;  %5772 = vpow2.f32 %v8300_v12  ;;  %v11776_v51 = vld [vmem:[#allocation79_spill] sm:$0xff]  ;;  %v8545_v40 = vpop.f32.mrf.mxu0  ;;  %11779 = vst [vmem:[#allocation204_spill] sm:$0xff] %v8547_v14 }
 0x34d   : > { %v4241_v54 = vpack.c.bf16 %v11771_v11, %v11770_v61  ;;  %11772 = vst [vmem:[#allocation64_spill] sm:$0xff] %v8533_v0  ;;  %v11774_v49 = vld [vmem:[#allocation166_spill] sm:$0xff]  ;;  %v8539_v15 = vpop.eup %5746  ;;  %v3931_v37 = vadd.f32 %v8422_v20, %v3930_v45  ;;  %v2842_v10 = vmax.f32 %v2841_v18, %v11776_v51  ;;  %v11777_v11 = vld [vmem:[#allocation81_spill] sm:$0xff]  ;;  %11778 = vst [vmem:[#allocation54_spill] sm:$0xff] %v8545_v40  ;;  %5774 = vpow2.f32 %v8307_v28 }
 0x34e   : > { %v2875_v22 = vmax.f32 %v2874_v3, %v11774_v49  ;;  %4381 = vmatpush1.bf16.msra.mxu0 %v4242_v36  ;;  %11775 = vst [vmem:[#allocation206_spill] sm:$0xff] %v8539_v15  ;;  %v2912_v61 = vmax.f32 %v2911_v2, %v11777_v11  ;;  %v8549_v63 = vpop.eup %5748  ;;  %v3968_v32 = vadd.f32 %v8440_v47, %v3967_v23  ;;  %v11781_v3 = vld [vmem:[#allocation85_spill] sm:$0xff]  ;;  %v11782_v12 = vld [vmem:[#allocation194_spill] sm:$0xff]  ;;  %5776 = vpow2.f32 %v8312_v33  ;;  %v11785_v2 = vld [vmem:[#allocation87_spill] sm:$0xff] }
 0x34f   : > { %4382 = vmatprep.subr.bf16.mxu0 %v4241_v54  ;;  %11780 = vst [vmem:[#allocation50_spill] sm:$0xff] %v8549_v63  ;;  %v2806_v36 = vmax.f32 %v2805_v52, %v11781_v3  ;;  %v11783_v49 = vld [vmem:[#allocation198_spill] sm:$0xff]  ;;  %v8556_v54 = vpop.eup %5750  ;;  %v3932_v18 = vadd.f32 %v8450_v56, %v3931_v37  ;;  %v11786_v51 = vld [vmem:[#allocation189_spill] sm:$0xff]  ;;  %v11787_v1 = vld [vmem:[#allocation192_spill] sm:$0xff]  ;;  %5778 = vpow2.f32 %v8323_v4  ;;  %v8577_v4 = vpop.f32.mrf.mxu1 }
 0x350   : > { %v4240_v45 = vpack.c.bf16 %v11783_v49, %v11782_v12  ;;  %11784 = vst [vmem:[#allocation197_spill] sm:$0xff] %v8556_v54  ;;  %v2876_v11 = vmax.f32 %v2875_v22, %v11785_v2  ;;  %v4239_v19 = vpack.c.bf16 %v11787_v1, %v11786_v51  ;;  %v8563_v30 = vpop.eup %5752  ;;  %v3969_v28 = vadd.f32 %v8461_v21, %v3968_v32  ;;  %v11789_v23 = vld [vmem:[#allocation168_spill] sm:$0xff]  ;;  %v11790_v49 = vld [vmem:[#allocation169_spill] sm:$0xff]  ;;  %v11792_v22 = vld [vmem:[#allocation110_spill] sm:$0xff]  ;;  %v8575_v2 = vpop.f32.mrf.mxu0 }
 0x351   : > { %11788 = vst [vmem:[#allocation202_spill] sm:$0xff] %v8563_v30  ;;  %v2843_v52 = vmax.f32 %v2842_v10, %v11789_v23  ;;  %v2913_v12 = vmax.f32 %v2912_v61, %v11790_v49  ;;  %v8569_v3 = vpop.eup %5754  ;;  %5780 = vpow2.f32 %v8328_v29  ;;  %v3933_v33 = vadd.f32 %v8471_v59, %v3932_v18  ;;  %v11793_v37 = vld [vmem:[#allocation112_spill] sm:$0xff]  ;;  %11794 = vst [vmem:[#allocation198_spill] sm:$0xff] %v8575_v2  ;;  %v11797_v61 = vld [vmem:[#allocation186_spill] sm:$0xff] }
 0x352   : > { %4383 = vmatpush1.bf16.msra.mxu0 %v4240_v45  ;;  %11791 = vst [vmem:[#allocation194_spill] sm:$0xff] %v8569_v3  ;;  %v2807_v1 = vmax.f32 %v2806_v36, %v11792_v22  ;;  %v2877_v51 = vmax.f32 %v2876_v11, %v11793_v37  ;;  %11795 = vst [vmem:[#allocation189_spill] sm:$0xff] %v8577_v4  ;;  %v8579_v32 = vpop.eup %5756  ;;  %5782 = vpow2.f32 %v8335_v48  ;;  %v11798_v45 = vld [vmem:[#allocation190_spill] sm:$0xff]  ;;  %v11800_v18 = vld [vmem:[#allocation185_spill] sm:$0xff]  ;;  %v8607_v7 = vpop.f32.mrf.mxu0 }
 0x353   : > { %4384 = vmatprep.subr.bf16.mxu0 %v4239_v19  ;;  %11796 = vst [vmem:[#allocation192_spill] sm:$0xff] %v8579_v32  ;;  %v3970_v10 = vadd.f32 %v8485_v38, %v3969_v28  ;;  %v4238_v29 = vpack.c.bf16 %v11798_v45, %v11797_v61  ;;  %v11799_v49 = vld [vmem:[#allocation182_spill] sm:$0xff]  ;;  %v8587_v23 = vpop.eup %5758  ;;  %5784 = vpow2.f32 %v8340_v62  ;;  %v3934_v11 = vadd.f32 %v8493_v16, %v3933_v33  ;;  %v11802_v36 = vld [vmem:[#allocation172_spill] sm:$0xff]  ;;  %v11803_v22 = vld [vmem:[#allocation173_spill] sm:$0xff] }
 0x354   : > { %v4237_v19 = vpack.c.bf16 %v11800_v18, %v11799_v49  ;;  %11801 = vst [vmem:[#allocation186_spill] sm:$0xff] %v8587_v23  ;;  %v2844_v37 = vmax.f32 %v2843_v52, %v11802_v36  ;;  %v2914_v6 = vmax.f32 %v2913_v12, %v11803_v22  ;;  %v8593_v53 = vpop.eup %5760  ;;  %5786 = vpow2.f32 %v8345_v42  ;;  %v11805_v28 = vld [vmem:[#allocation158_spill] sm:$0xff]  ;;  %v11806_v49 = vld [vmem:[#allocation161_spill] sm:$0xff]  ;;  %v11808_v52 = vld [vmem:[#allocation180_spill] sm:$0xff] }
 0x355   : > { %11804 = vst [vmem:[#allocation190_spill] sm:$0xff] %v8593_v53  ;;  %v3971_v48 = vadd.f32 %v8503_v8, %v3970_v10  ;;  %v2808_v61 = vmax.f32 %v2807_v1, %v11805_v28  ;;  %v2878_v45 = vmax.f32 %v2877_v51, %v11806_v49  ;;  %v8599_v18 = vpop.eup %5762  ;;  %5788 = vpow2.f32 %v8353_v41  ;;  %v11809_v12 = vld [vmem:[#allocation183_spill] sm:$0xff]  ;;  %v11810_v22 = vld [vmem:[#allocation177_spill] sm:$0xff]  ;;  %11812 = vst [vmem:[#allocation185_spill] sm:$0xff] %v8607_v7  ;;  %v8609_v10 = vpop.f32.mrf.mxu1 }
 0x356   : > { %4385 = vmatpush1.bf16.msra.mxu0 %v4238_v29  ;;  %11807 = vst [vmem:[#allocation182_spill] sm:$0xff] %v8599_v18  ;;  %v3935_v62 = vadd.f32 %v8509_v5, %v3934_v11  ;;  %v4236_v33 = vpack.c.bf16 %v11809_v12, %v11808_v52  ;;  %v11811_v36 = vld [vmem:[#allocation179_spill] sm:$0xff]  ;;  %11813 = vst [vmem:[#allocation180_spill] sm:$0xff] %v8609_v10  ;;  %v8611_v1 = vpop.eup %5764  ;;  %5790 = vpow2.f32 %v8358_v9  ;;  %v11816_v11 = vld [vmem:[#allocation176_spill] sm:$0xff] }
 0x357   : > { %4386 = vmatprep.subr.bf16.mxu0 %v4237_v19  ;;  %v4235_v42 = vpack.c.bf16 %v11811_v36, %v11810_v22  ;;  %11814 = vst [vmem:[#allocation183_spill] sm:$0xff] %v8611_v1  ;;  %v3972_v51 = vadd.f32 %v8519_v55, %v3971_v48  ;;  %v11815_v41 = vld [vmem:[#allocation175_spill] sm:$0xff]  ;;  %v2915_v19 = vmax.f32 %v2914_v6, %v11816_v11  ;;  %v8617_v49 = vpop.eup %5766  ;;  %5792 = vpow2.f32 %v8366_v26  ;;  %v11818_v36 = vld [vmem:[#allocation126_spill] sm:$0xff]  ;;  %v11819_v12 = vld [vmem:[#allocation124_spill] sm:$0xff] }
 0x358   : > { %v2845_v29 = vmax.f32 %v2844_v37, %v11815_v41  ;;  %11817 = vst [vmem:[#allocation177_spill] sm:$0xff] %v8617_v49  ;;  %v3936_v22 = vadd.f32 %v8526_v50, %v3935_v62  ;;  %v2809_v52 = vmax.f32 %v2808_v61, %v11818_v36  ;;  %v2879_v28 = vmax.f32 %v2878_v45, %v11819_v12  ;;  %v8623_v5 = vpop.eup %5768  ;;  %v11821_v37 = vld [vmem:[#allocation122_spill] sm:$0xff]  ;;  %v11824_v41 = vld [vmem:[#allocation155_spill] sm:$0xff]  ;;  %v11827_v12 = vld [vmem:[#allocation181_spill] sm:$0xff]  ;;  %v8637_v36 = vpop.f32.mrf.mxu0 }
 0x359   : > { %11820 = vst [vmem:[#allocation179_spill] sm:$0xff] %v8623_v5  ;;  %5794 = vpow2.f32 %v8371_v44  ;;  %v3973_v9 = vadd.f32 %v8533_v0, %v3972_v51  ;;  %v11822_v48 = vld [vmem:[#allocation178_spill] sm:$0xff]  ;;  %v8631_v26 = vpop.eup %5770  ;;  %v11826_v45 = vld [vmem:[#allocation187_spill] sm:$0xff]  ;;  %v2916_v44 = vmax.f32 %v2915_v19, %v11827_v12  ;;  %v11835_v12 = vld [vmem:[#allocation188_spill] sm:$0xff]  ;;  %v4261_v50 = vpack.c.bf16 %v8153_v43, %v8135_v31 }
 0x35a   : > { %4387 = vmatpush1.bf16.msra.mxu0 %v4236_v33  ;;  %v4234_v6 = vpack.c.bf16 %v11822_v48, %v11821_v37  ;;  %v11823_v11 = vld [vmem:[#allocation174_spill] sm:$0xff]  ;;  %11825 = vst [vmem:[#allocation122_spill] sm:$0xff] %v8631_v26  ;;  %5796 = vpow2.f32 %v8376_v58  ;;  %v3937_v61 = vadd.f32 %v8539_v15, %v3936_v22  ;;  %v2846_v62 = vmax.f32 %v2845_v29, %v11826_v45  ;;  %v8639_v33 = vpop.f32.mrf.mxu1  ;;  %v8641_v51 = vpop.eup %5772  ;;  %v11832_v58 = vld [vmem:[#allocation184_spill] sm:$0xff]  ;;  %v11841_v43 = vld [vmem:[#allocation69_spill] sm:$0xff] }
 0x35b   : > { %v4233_v55 = vpack.c.bf16 %v11824_v41, %v11823_v11  ;;  %4388 = vmatprep.subr.bf16.mxu0 %v4235_v42  ;;  %11828 = vst [vmem:[#allocation178_spill] sm:$0xff] %v8637_v36  ;;  %11829 = vst [vmem:[#allocation174_spill] sm:$0xff] %v8639_v33  ;;  %5798 = vpow2.f32 %v8389_v17  ;;  %v3974_v41 = vadd.f32 %v8549_v63, %v3973_v9  ;;  %v11831_v11 = vld [vmem:[#allocation195_spill] sm:$0xff]  ;;  %v8647_v22 = vpop.eup %5774  ;;  %v11834_v29 = vld [vmem:[#allocation48_spill] sm:$0xff] }
 0x35c   : > { %11830 = vst [vmem:[#allocation155_spill] sm:$0xff] %v8641_v51  ;;  %v2810_v37 = vmax.f32 %v2809_v52, %v11831_v11  ;;  %v2880_v48 = vmax.f32 %v2879_v28, %v11832_v58  ;;  %11833 = vst [vmem:[#allocation231_spill] sm:$0xff] %v8647_v22  ;;  %v3938_v42 = vadd.f32 %v8556_v54, %v3937_v61  ;;  %v8654_v0 = vpop.eup %5776  ;;  %5800 = vpow2.f32 %v8394_v60  ;;  %v11837_v52 = vld [vmem:[#allocation116_spill] sm:$0xff]  ;;  %v11838_v28 = vld [vmem:[#allocation162_spill] sm:$0xff]  ;;  %v8667_v60 = vpop.f32.mrf.mxu0 }
 0x35d   : > { %v2847_v19 = vmax.f32 %v2846_v62, %v11834_v29  ;;  %v2917_v45 = vmax.f32 %v2916_v44, %v11835_v12  ;;  %11836 = vst [vmem:[#allocation232_spill] sm:$0xff] %v8654_v0  ;;  %v3975_v17 = vadd.f32 %v8563_v30, %v3974_v41  ;;  %v4232_v9 = vpack.c.bf16 %v11838_v28, %v11837_v52  ;;  %v11839_v58 = vld [vmem:[#allocation58_spill] sm:$0xff]  ;;  %v8661_v61 = vpop.eup %5778  ;;  %v11840_v44 = vld [vmem:[#allocation191_spill] sm:$0xff]  ;;  %v11842_v29 = vld [vmem:[#allocation196_spill] sm:$0xff]  ;;  %v8669_v41 = vpop.f32.mrf.mxu1 }
 0x35e   : > { %4389 = vmatpush1.bf16.msra.mxu0 %v4234_v6  ;;  %v2811_v11 = vmax.f32 %v2810_v37, %v11839_v58  ;;  %v3939_v62 = vadd.f32 %v8569_v3, %v3938_v42  ;;  %v2881_v12 = vmax.f32 %v2880_v48, %v11840_v44  ;;  %11843 = vst [vmem:[#allocation116_spill] sm:$0xff] %v8667_v60  ;;  %11844 = vst [vmem:[#allocation162_spill] sm:$0xff] %v8669_v41  ;;  %v8671_v6 = vpop.eup %5780  ;;  %v11845_v37 = vld [vmem:[#allocation75_spill] sm:$0xff]  ;;  %v11846_v58 = vld [vmem:[#allocation210_spill] sm:$0xff] }
 0x35f   : > { %4390 = vmatprep.subr.bf16.mxu0 %v4233_v55  ;;  %v2848_v31 = vmax.f32 %v2847_v19, %v11841_v43  ;;  %v2918_v54 = vmax.f32 %v2917_v45, %v11842_v29  ;;  %v3976_v52 = vadd.f32 %v8579_v32, %v3975_v17  ;;  %v4260_v42 = vpack.c.bf16 %v11846_v58, %v8122_v24  ;;  %v11847_v55 = vld [vmem:[#allocation207_spill] sm:$0xff]  ;;  %v11848_v3 = vld [vmem:[#allocation149_spill] sm:$0xff]  ;;  %v8679_v44 = vpop.eup %5782  ;;  %v11852_v24 = vld [vmem:[#allocation84_spill] sm:$0xff] }
 0x360   : > { %v2812_v28 = vmax.f32 %v2811_v11, %v11845_v37  ;;  %v4259_v48 = vpack.c.bf16 %v11848_v3, %v11847_v55  ;;  %5802 = vpow2.f32 %v8402_v34  ;;  %v3940_v45 = vadd.f32 %v8587_v23, %v3939_v62  ;;  %v11849_v19 = vld [vmem:[#allocation167_spill] sm:$0xff]  ;;  %v11851_v15 = vld [vmem:[#allocation201_spill] sm:$0xff]  ;;  %v8686_v17 = vpop.eup %5784  ;;  %v11854_v55 = vld [vmem:[#allocation94_spill] sm:$0xff] }
 0x361   : > { %v11850_v29 = vld [vmem:[#allocation171_spill] sm:$0xff]  ;;  %v2882_v30 = vmax.f32 %v2881_v12, %v11851_v15  ;;  %v3977_v11 = vadd.f32 %v8593_v53, %v3976_v52  ;;  %v2849_v58 = vmax.f32 %v2848_v31, %v11852_v24  ;;  %v11853_v37 = vld [vmem:[#allocation205_spill] sm:$0xff]  ;;  %v8692_v63 = vpop.eup %5786  ;;  %v11855_v62 = vld [vmem:[#allocation52_spill] sm:$0xff]  ;;  %v8702_v31 = vpop.f32.mrf.mxu1  ;;  %5804 = vpow2.f32 %v8407_v57 }
 0x362   : > { %v4231_v43 = vpack.c.bf16 %v11850_v29, %v11849_v19  ;;  %4391 = vmatpush1.bf16.msra.mxu0 %v4232_v9  ;;  %v2919_v3 = vmax.f32 %v2918_v54, %v11853_v37  ;;  %v2813_v32 = vmax.f32 %v2812_v28, %v11854_v55  ;;  %v3941_v34 = vadd.f32 %v8599_v18, %v3940_v45  ;;  %v11856_v19 = vld [vmem:[#allocation136_spill] sm:$0xff]  ;;  %v11857_v12 = vld [vmem:[#allocation147_spill] sm:$0xff]  ;;  %v11859_v41 = vld [vmem:[#allocation125_spill] sm:$0xff]  ;;  %v8700_v9 = vpop.f32.mrf.mxu0  ;;  %v8704_v54 = vpop.eup %5788 }
 0x363   : > { %v2883_v29 = vmax.f32 %v2882_v30, %v11855_v62  ;;  %v4258_v15 = vpack.c.bf16 %v11857_v12, %v11856_v19  ;;  %v11858_v23 = vld [vmem:[#allocation115_spill] sm:$0xff]  ;;  %11860 = vst [vmem:[#allocation210_spill] sm:$0xff] %v8700_v9  ;;  %11861 = vst [vmem:[#allocation207_spill] sm:$0xff] %v8702_v31  ;;  %v3978_v28 = vadd.f32 %v8611_v1, %v3977_v11  ;;  %v11863_v55 = vld [vmem:[#allocation170_spill] sm:$0xff]  ;;  %v8711_v53 = vpop.eup %5790  ;;  %v8732_v57 = vpop.f32.mrf.mxu1 }
 0x364   : > { %4392 = vmatprep.subr.bf16.mxu0 %v4231_v43  ;;  %v11862_v37 = vld [vmem:[#allocation91_spill] sm:$0xff]  ;;  %v11865_v30 = vld [vmem:[#allocation62_spill] sm:$0xff]  ;;  %v3942_v19 = vadd.f32 %v8617_v49, %v3941_v34  ;;  %v11868_v31 = vld [vmem:[#allocation108_spill] sm:$0xff]  ;;  %v8718_v20 = vpop.eup %5792  ;;  %11876 = vst [vmem:[#allocation167_spill] sm:$0xff] %v8732_v57 }
 0x365   : > { %v4230_v45 = vpack.c.bf16 %v11863_v55, %v11862_v37  ;;  %v11864_v43 = vld [vmem:[#allocation103_spill] sm:$0xff]  ;;  %v2920_v62 = vmax.f32 %v2919_v3, %v11865_v30  ;;  %v11867_v18 = vld [vmem:[#allocation70_spill] sm:$0xff]  ;;  %v11869_v10 = vld [vmem:[#allocation121_spill] sm:$0xff]  ;;  %v3979_v37 = vadd.f32 %v8623_v5, %v3978_v28 }
 0x366   : > { %v2850_v24 = vmax.f32 %v2849_v58, %v11864_v43  ;;  %v11866_v12 = vld [vmem:[#allocation111_spill] sm:$0xff]  ;;  %v2884_v33 = vmax.f32 %v2883_v29, %v11867_v18  ;;  %v11870_v11 = vld [vmem:[#allocation138_spill] sm:$0xff]  ;;  %v11871_v3 = vld [vmem:[#allocation76_spill] sm:$0xff]  ;;  %v8724_v30 = vpop.eup %5794  ;;  %v8730_v43 = vpop.f32.mrf.mxu0 }
 0x367   : > { %v2814_v52 = vmax.f32 %v2813_v32, %v11866_v12  ;;  %4393 = vmatpush1.bf16.msra.mxu0 %v4230_v45  ;;  %v2921_v55 = vmax.f32 %v2920_v62, %v11871_v3  ;;  %v11872_v34 = vld [vmem:[#allocation134_spill] sm:$0xff]  ;;  %v3943_v32 = vadd.f32 %v8631_v26, %v3942_v19  ;;  %v11873_v29 = vld [vmem:[#allocation208_spill] sm:$0xff]  ;;  %11875 = vst [vmem:[#allocation149_spill] sm:$0xff] %v8730_v43  ;;  %v8734_v28 = vpop.eup %5796  ;;  %v11882_v49 = vld [vmem:[#allocation97_spill] sm:$0xff] }
 0x368   : > { %v2851_v58 = vmax.f32 %v2850_v24, %v11870_v11  ;;  %5806 = vpow2.f32 %v11872_v34  ;;  %4394 = vmatprep.subr.bf16.mxu0 %v4261_v50  ;;  %v11874_v18 = vld [vmem:[#allocation80_spill] sm:$0xff]  ;;  %v3980_v24 = vadd.f32 %v8641_v51, %v3979_v37  ;;  %v11878_v34 = vld [vmem:[#allocation86_spill] sm:$0xff]  ;;  %v8740_v19 = vpop.eup %5798  ;;  %v11883_v37 = vld [vmem:[#allocation221_spill] sm:$0xff] }
 0x369   : > { %v2815_v56 = vmax.f32 %v2814_v52, %v11873_v29  ;;  %v2885_v12 = vmax.f32 %v2884_v33, %v11874_v18  ;;  %5808 = vpow2.f32 %v8428_v35  ;;  %v11877_v62 = vld [vmem:[#allocation212_spill] sm:$0xff]  ;;  %v2922_v3 = vmax.f32 %v2921_v55, %v11878_v34  ;;  %v11880_v52 = vld [vmem:[#allocation215_spill] sm:$0xff]  ;;  %v8750_v55 = vpop.eup %5800  ;;  %v11885_v34 = vld [vmem:[#allocation230_spill] sm:$0xff] }
 0x36a   : > { %v2852_v45 = vmax.f32 %v2851_v58, %v11877_v62  ;;  %v11879_v50 = vld [vmem:[#allocation140_spill] sm:$0xff]  ;;  %v3944_v33 = vadd.f32 %v8647_v22, %v3943_v32  ;;  %v3981_v35 = vadd.f32 %v8654_v0, %v3980_v24  ;;  %v11884_v58 = vld [vmem:[#allocation118_spill] sm:$0xff]  ;;  %v11886_v32 = vld [vmem:[#allocation109_spill] sm:$0xff] }
 0x36b   : > { %5810 = vpow2.f32 %v11879_v50  ;;  %v2816_v18 = vmax.f32 %v2815_v56, %v11880_v52  ;;  %v11881_v29 = vld [vmem:[#allocation96_spill] sm:$0xff]  ;;  %4395 = vmatpush2.bf16.msra.mxu0 %v4260_v42  ;;  %v2923_v62 = vmax.f32 %v2922_v3, %v11884_v58  ;;  %v11887_v52 = vld [vmem:[#allocation114_spill] sm:$0xff]  ;;  %v11890_v3 = vld [vmem:[#allocation123_spill] sm:$0xff] }
 0x36c   : > { %v2886_v11 = vmax.f32 %v2885_v12, %v11881_v29  ;;  %5812 = vpow2.f32 %v11882_v49  ;;  %v2853_v5 = vmax.f32 %v2852_v45, %v11883_v37  ;;  %v3945_v50 = vadd.f32 %v8661_v61, %v3944_v33  ;;  %4396 = vmatprep.subr.bf16.mxu0 %v4259_v48  ;;  %v8756_v29 = vpop.f32.mrf.mxu0  ;;  %v8758_v49 = vpop.f32.mrf.mxu1  ;;  %v11891_v45 = vld [vmem:[#allocation145_spill] sm:$0xff]  ;;  %v11892_v33 = vld [vmem:[#allocation104_spill] sm:$0xff] }
 0x36d   : > { %5814 = vpow2.f32 %v11885_v34  ;;  %v2817_v56 = vmax.f32 %v2816_v18, %v11886_v32  ;;  %11888 = vst [vmem:[#allocation171_spill] sm:$0xff] %v8756_v29  ;;  %11889 = vst [vmem:[#allocation136_spill] sm:$0xff] %v8758_v49  ;;  %v3982_v42 = vadd.f32 %v8671_v6, %v3981_v35  ;;  %v2924_v58 = vmax.f32 %v2923_v62, %v11891_v45  ;;  %v11893_v48 = vld [vmem:[#allocation120_spill] sm:$0xff]  ;;  %v11894_v18 = vld [vmem:[#allocation142_spill] sm:$0xff]  ;;  %v8769_v1 = vpop.eup %5802 }
 0x36e   : > { %v2887_v12 = vmax.f32 %v2886_v11, %v11887_v52  ;;  %5816 = vpow2.f32 %v8499_v25  ;;  %v2854_v24 = vmax.f32 %v2853_v5, %v11890_v3  ;;  %v3946_v34 = vadd.f32 %v8679_v44, %v3945_v50  ;;  %v11895_v11 = vld [vmem:[#allocation209_spill] sm:$0xff]  ;;  %11896 = vst [vmem:[#allocation147_spill] sm:$0xff] %v8769_v1  ;;  %v11897_v25 = vld [vmem:[#allocation102_spill] sm:$0xff] }
 0x36f   : > { %v4255_v37 = vpack.c.bf16 %v11893_v48, %v11892_v33  ;;  %v2818_v32 = vmax.f32 %v2817_v56, %v11894_v18  ;;  %v3983_v22 = vadd.f32 %v8686_v17, %v3982_v42  ;;  %4397 = vmatpush2.bf16.msra.mxu0 %v4258_v15  ;;  %v11898_v35 = vld [vmem:[#allocation105_spill] sm:$0xff]  ;;  %v11900_v33 = vpack.c.bf16 %v11859_v41, %v11858_v23  ;;  %v11901_v56 = vld [vmem:[#allocation98_spill] sm:$0xff]  ;;  %v11903_v42 = vld [vmem:[#allocation216_spill] sm:$0xff]  ;;  %v8784_v18 = vpop.f32.mrf.mxu0 }
 0x370   : > { %v2888_v52 = vmax.f32 %v2887_v12, %v11895_v11  ;;  %v4254_v26 = vpack.c.bf16 %v11898_v35, %v11897_v25  ;;  %v2855_v5 = vmax.f32 %v2854_v24, %v8481_v13  ;;  %v11899_v62 = vld [vmem:[#allocation213_spill] sm:$0xff]  ;;  %v3947_v50 = vadd.f32 %v8692_v63, %v3946_v34  ;;  %11904 = vst [vmem:[#allocation115_spill] sm:$0xff] %v8784_v18  ;;  %v8786_v25 = vpop.f32.mrf.mxu1  ;;  %v11907_v35 = vld [vmem:[#allocation99_spill] sm:$0xff]  ;;  %v11908_v23 = vld [vmem:[#allocation222_spill] sm:$0xff] }
 0x371   : > { %v2925_v45 = vmax.f32 %v2924_v58, %v11899_v62  ;;  %4398 = vmatprep.subr.bf16.mxu0 %v11900_v33  ;;  %v11902_v12 = vld [vmem:[#allocation101_spill] sm:$0xff]  ;;  %v2819_v11 = vmax.f32 %v2818_v32, %v8515_v39  ;;  %11905 = vst [vmem:[#allocation125_spill] sm:$0xff] %v8786_v25  ;;  %v3984_v24 = vadd.f32 %v8704_v54, %v3983_v22 }
 0x372   : > { %v4253_v48 = vpack.c.bf16 %v11902_v12, %v11901_v56  ;;  %v2889_v15 = vmax.f32 %v2888_v52, %v11903_v42  ;;  %v11906_v58 = vld [vmem:[#allocation93_spill] sm:$0xff]  ;;  %v2856_v62 = vmax.f32 %v2855_v5, %v8545_v40  ;;  %v3948_v33 = vadd.f32 %v8711_v53, %v3947_v50  ;;  %v11909_v56 = vld [vmem:[#allocation88_spill] sm:$0xff]  ;;  %v8806_v40 = vpop.eup %5804 }
 0x373   : > { %v4252_v34 = vpack.c.bf16 %v11907_v35, %v11906_v58  ;;  %v2926_v41 = vmax.f32 %v2925_v45, %v11908_v23  ;;  %v11910_v12 = vld [vmem:[#allocation92_spill] sm:$0xff]  ;;  %v2820_v52 = vmax.f32 %v2819_v11, %v8575_v2  ;;  %v11911_v42 = vld [vmem:[#allocation225_spill] sm:$0xff]  ;;  %v3985_v13 = vadd.f32 %v8718_v20, %v3984_v24  ;;  %v11913_v58 = vld [vmem:[#allocation83_spill] sm:$0xff]  ;;  %11916 = vst [vmem:[#allocation91_spill] sm:$0xff] %v8806_v40 }
 0x374   : > { %v4251_v32 = vpack.c.bf16 %v11910_v12, %v11909_v56  ;;  %v2890_v39 = vmax.f32 %v2889_v15, %v11911_v42  ;;  %v11912_v22 = vpack.c.bf16 %v11869_v10, %v11868_v31  ;;  %v11914_v35 = vld [vmem:[#allocation90_spill] sm:$0xff]  ;;  %v2857_v45 = vmax.f32 %v2856_v62, %v8607_v7  ;;  %v11915_v23 = vld [vmem:[#allocation127_spill] sm:$0xff]  ;;  %v11917_v11 = vld [vmem:[#allocation77_spill] sm:$0xff]  ;;  %v8813_v31 = vpop.f32.mrf.mxu0 }
 0x375   : > { %v2927_v50 = vmax.f32 %v2926_v41, %v11915_v23  ;;  %v3949_v56 = vadd.f32 %v8724_v30, %v3948_v33  ;;  %v11918_v15 = vld [vmem:[#allocation82_spill] sm:$0xff]  ;;  %v2821_v24 = vmax.f32 %v2820_v52, %v8637_v36  ;;  %v11919_v42 = vld [vmem:[#allocation228_spill] sm:$0xff]  ;;  %11920 = vst [vmem:[#allocation170_spill] sm:$0xff] %v8813_v31  ;;  %v8817_v5 = vpop.eup %5806  ;;  %v3986_v62 = vadd.f32 %v8734_v28, %v3985_v13  ;;  %v11932_v7 = vld [vmem:[#allocation119_spill] sm:$0xff] }
 0x376   : > { %4399 = vmatpush2.bf16.msra.mxu0 %v11912_v22  ;;  %v2891_v10 = vmax.f32 %v2890_v39, %v11919_v42  ;;  %v8815_v22 = vpop.f32.mrf.mxu1  ;;  %11922 = vst [vmem:[#allocation121_spill] sm:$0xff] %v8817_v5  ;;  %v8824_v12 = vpop.eup %5808  ;;  %v11933_v2 = vld [vmem:[#allocation131_spill] sm:$0xff] }
 0x377   : > { %4400 = vmatprep.subr.bf16.mxu0 %v4255_v37  ;;  %11921 = vst [vmem:[#allocation108_spill] sm:$0xff] %v8815_v22  ;;  %v2858_v37 = vmax.f32 %v2857_v45, %v8667_v60  ;;  %v2928_v33 = vmax.f32 %v2927_v50, %v8483_v46  ;;  %11923 = vst [vmem:[#allocation134_spill] sm:$0xff] %v8824_v12  ;;  %v3950_v52 = vadd.f32 %v8740_v19, %v3949_v56  ;;  %v11925_v46 = vld [vmem:[#allocation229_spill] sm:$0xff] }
 0x378   : > { %v2822_v39 = vmax.f32 %v2821_v24, %v8700_v9  ;;  %v2892_v42 = vmax.f32 %v2891_v10, %v8517_v27  ;;  %v8831_v36 = vpop.eup %5810  ;;  %v3987_v13 = vadd.f32 %v8750_v55, %v3986_v62  ;;  %v11924_v27 = vld [vmem:[#allocation227_spill] sm:$0xff]  ;;  %v8847_v9 = vpop.f32.mrf.mxu1 }
 0x379   : > { %v2859_v50 = vmax.f32 %v2858_v37, %v8730_v43  ;;  %v2929_v41 = vmax.f32 %v2928_v33, %v8547_v14  ;;  %v8838_v56 = vpop.eup %5812  ;;  %v3951_v24 = vadd.f32 %v8769_v1, %v3950_v52  ;;  %11927 = vst [vmem:[#allocation97_spill] sm:$0xff] %v8847_v9  ;;  %v11928_v33 = vld [vmem:[#allocation129_spill] sm:$0xff]  ;;  %v11930_v52 = vld [vmem:[#allocation180_spill] sm:$0xff] }
 0x37a   : > { %4401 = vmatpush2.bf16.msra.mxu0 %v4254_v26  ;;  %v2823_v10 = vmax.f32 %v2822_v39, %v8756_v29  ;;  %v2893_v23 = vmax.f32 %v2892_v42, %v8577_v4  ;;  %v8845_v26 = vpop.f32.mrf.mxu0  ;;  %v8849_v45 = vpop.eup %5814  ;;  %v3988_v37 = vadd.f32 %v8806_v40, %v3987_v13  ;;  %v11929_v14 = vld [vmem:[#allocation133_spill] sm:$0xff]  ;;  %v11931_v4 = vld [vmem:[#allocation174_spill] sm:$0xff] }
 0x37b   : > { %4402 = vmatprep.subr.bf16.mxu0 %v4253_v48  ;;  %11926 = vst [vmem:[#allocation140_spill] sm:$0xff] %v8845_v26  ;;  %v2860_v48 = vmax.f32 %v2859_v50, %v8784_v18  ;;  %v2930_v39 = vmax.f32 %v2929_v41, %v11930_v52  ;;  %v8856_v29 = vpop.eup %5816  ;;  %v3952_v42 = vadd.f32 %v8817_v5, %v3951_v24  ;;  %v11935_v43 = vld [vmem:[#allocation117_spill] sm:$0xff]  ;;  %v11936_v41 = vld [vmem:[#allocation162_spill] sm:$0xff]  ;;  %v8872_v3 = vpop.f32.mrf.mxu1 }
 0x37c   : > { %v2824_v62 = vmax.f32 %v2823_v10, %v8813_v31  ;;  %v2894_v60 = vmax.f32 %v2893_v23, %v11931_v4  ;;  %v3989_v13 = vadd.f32 %v8824_v12, %v3988_v37  ;;  %v11937_v10 = vld [vmem:[#allocation207_spill] sm:$0xff]  ;;  %11940 = vst [vmem:[#allocation230_spill] sm:$0xff] %v8872_v3  ;;  %v11942_v40 = vld [vmem:[#allocation106_spill] sm:$0xff]  ;;  %v11955_v23 = vld [vmem:[#allocation73_spill] sm:$0xff] }
 0x37d   : > { %v2861_v50 = vmax.f32 %v2860_v48, %v8845_v26  ;;  %v2931_v52 = vmax.f32 %v2930_v39, %v11936_v41  ;;  %v3953_v18 = vadd.f32 %v8831_v36, %v3952_v42  ;;  %v11941_v12 = vld [vmem:[#allocation223_spill] sm:$0xff]  ;;  %v11945_v26 = vpack.c.bf16 %v11914_v35, %v11913_v58  ;;  %v11952_v35 = vld [vmem:[#allocation74_spill] sm:$0xff] }
 0x37e   : > { %4403 = vmatpush2.bf16.msra.mxu0 %v4252_v34  ;;  %v2825_v24 = vrot.slane %v2824_v62, 4  ;;  %v2895_v31 = vmax.f32 %v2894_v60, %v11937_v10  ;;  %v3990_v34 = vadd.f32 %v8838_v56, %v3989_v13  ;;  %v11944_v60 = vld [vmem:[#allocation224_spill] sm:$0xff] }
 0x37f   : > { %4404 = vmatprep.subr.bf16.mxu0 %v4251_v32  ;;  %v2862_v37 = vrot.slane %v2861_v50, 4  ;;  %v2932_v48 = vmax.f32 %v2931_v52, %v8732_v57  ;;  %v3954_v39 = vadd.f32 %v8849_v45, %v3953_v18  ;;  %v11948_v18 = vpack.c.bf16 %v11918_v15, %v11917_v11 }
 0x380   : > { %v2826_v42 = vmax.f32 %v2824_v62, %v2825_v24  ;;  %v2896_v32 = vmax.f32 %v2895_v31, %v8758_v49  ;;  %v3991_v5 = vadd.f32 %v8856_v29, %v3990_v34  ;;  %v8895_v49 = vpop.f32.mrf.mxu1  ;;  %v11956_v24 = vld [vmem:[#allocation13_spill] sm:$0xff]  ;;  %v11957_v34 = vld [vmem:[#allocation15_spill] sm:$0xff] }
 0x381   : > { %v2863_v13 = vmax.f32 %v2861_v50, %v2862_v37  ;;  %v2933_v52 = vmax.f32 %v2932_v48, %v8786_v25  ;;  %v3955_v57 = vrot.slane %v3954_v39, 4  ;;  %11951 = vst [vmem:[#allocation104_spill] sm:$0xff] %v8895_v49  ;;  %v11954_v25 = vld [vmem:[#allocation71_spill] sm:$0xff]  ;;  %v5459_v4 = vpack.c.bf16 %v11957_v34, %v11956_v24 }
 0x382   : > { %4405 = vmatpush2.bf16.msra.mxu0 %v11945_v26  ;;  %v2827_v31 = vrot.slane %v2826_v42, 2  ;;  %v2897_v62 = vmax.f32 %v2896_v32, %v8815_v22  ;;  %v3992_v58 = vrot.slane %v3991_v5, 4  ;;  %v11953_v26 = vld [vmem:[#allocation78_spill] sm:$0xff]  ;;  %v4247_v11 = vpack.c.bf16 %v11955_v23, %v11954_v25  ;;  %v12039_v23 = vld [vmem:[#allocation217_spill] sm:$0xff] }
 0x383   : > { %4406 = vmatprep.subr.bf16.mxu0 %v11948_v18  ;;  %v4248_v50 = vpack.c.bf16 %v11953_v26, %v11952_v35  ;;  %v2864_v37 = vrot.slane %v2863_v13, 2  ;;  %v2934_v48 = vmax.f32 %v2933_v52, %v8847_v9  ;;  %v3956_v1 = vadd.f32 %v3955_v57, %v3954_v39  ;;  %v11958_v35 = vld [vmem:[#allocation68_spill] sm:$0xff] }
 0x384   : > { %v2828_v15 = vmax.f32 %v2826_v42, %v2827_v31  ;;  %v2898_v18 = vmax.f32 %v2897_v62, %v8872_v3  ;;  %v3993_v32 = vadd.f32 %v3992_v58, %v3991_v5  ;;  %v11959_v26 = vld [vmem:[#allocation72_spill] sm:$0xff]  ;;  %v11960_v42 = vld [vmem:[#allocation50_spill] sm:$0xff]  ;;  %v11983_v3 = vld [vmem:[#allocation19_spill] sm:$0xff] }
 0x385   : > { %v2865_v22 = vmax.f32 %v2863_v13, %v2864_v37  ;;  %v2935_v10 = vmax.f32 %v2934_v48, %v8895_v49  ;;  %v3957_v41 = vrot.slane %v3956_v1, 2  ;;  %v4246_v52 = vpack.c.bf16 %v11959_v26, %v11958_v35  ;;  %v11961_v13 = vld [vmem:[#allocation202_spill] sm:$0xff]  ;;  %v11963_v35 = vld [vmem:[#allocation197_spill] sm:$0xff]  ;;  %v12038_v37 = vld [vmem:[#allocation219_spill] sm:$0xff] }
 0x386   : > { %4407 = vmatpush2.bf16.msra.mxu0 %v4248_v50  ;;  %v2829_v57 = vrot.slane %v2828_v15, 1  ;;  %v3994_v39 = vrot.slane %v3993_v32, 2  ;;  %v4277_v31 = vpack.c.bf16 %v11961_v13, %v11960_v42  ;;  %v2899_v62 = vrot.slane %v2898_v18, 4  ;;  %v12042_v49 = vld [vmem:[#allocation85_spill] sm:$0xff] }
 0x387   : > { %4408 = vmatprep.subr.bf16.mxu0 %v4247_v11  ;;  %v2866_v9 = vrot.slane %v2865_v22, 1  ;;  %v2936_v25 = vrot.slane %v2935_v10, 4  ;;  %v3958_v5 = vadd.f32 %v3957_v41, %v3956_v1  ;;  %v11962_v11 = vld [vmem:[#allocation206_spill] sm:$0xff] }
 0x388   : > { %v3995_v34 = vadd.f32 %v3994_v39, %v3993_v32  ;;  %v2830_v58 = vmax.f32 %v2828_v15, %v2829_v57  ;;  %v4276_v26 = vpack.c.bf16 %v11963_v35, %v11962_v11  ;;  %v11964_v15 = vld [vmem:[#allocation11_spill] sm:$0xff]  ;;  %v11967_v39 = vld [vmem:[#allocation193_spill] sm:$0xff]  ;;  %v11984_v35 = vpack.c.bf16 %v8503_v8, %v8485_v38 }
 0x389   : > { %v2867_v50 = vmax.f32 %v2865_v22, %v2866_v9  ;;  %v3959_v48 = vrot.slane %v3958_v5, 1  ;;  %v2937_v32 = vmax.f32 %v2935_v10, %v2936_v25  ;;  %v11971_v10 = vld [vmem:[#allocation144_spill] sm:$0xff]  ;;  %v11991_v8 = vpack.c.bf16 %v8461_v21, %v8440_v47  ;;  %v12037_v21 = vld [vmem:[#allocation165_spill] sm:$0xff] }
 0x38a   : > { %4409 = vmatpush2.bf16.msra.mxu0 %v4246_v52  ;;  %v3996_v42 = vrot.slane %v3995_v34, 1  ;;  %v11965_v52 = vld [vmem:[#allocation10_spill] sm:$0xff] }
 0x38b   : > { %4451 = vmatprep.subr.bf16.mxu0 %v4277_v31  ;;  %v2980_v13 = vcombine.low %v2830_v58, %v2867_v50  ;;  %v3960_v22 = vadd.f32 %v3959_v48, %v3958_v5  ;;  %v11966_v57 = vpack.c.bf16 %v11964_v15, %v11965_v52  ;;  %v11968_v31 = vld [vmem:[#allocation64_spill] sm:$0xff]  ;;  %v2900_v58 = vmax.f32 %v2898_v18, %v2899_v62  ;;  %v12041_v18 = vld [vmem:[#allocation79_spill] sm:$0xff] }
 0x38c   : > { %v4275_v11 = vpack.c.bf16 %v11968_v31, %v11967_v39  ;;  %v3997_v24 = vadd.f32 %v3996_v42, %v3995_v34  ;;  %v11972_v5 = vld [vmem:[#allocation60_spill] sm:$0xff]  ;;  %v11982_v39 = vld [vmem:[#allocation17_spill] sm:$0xff] }
 0x38d   : > { %4411 = vmatmul.mubr.bf16.vlgmr.msra.gmra.mxu0 %v11966_v57  ;;  %v2987_v25 = vrot.slane %v2980_v13, %v11971_v10  ;;  %v11973_v50 = vld [vmem:[#allocation56_spill] sm:$0xff]  ;;  %v3843_v13 = vld [vmem:[#allocation5 + $0x2] sm:$0x3]  ;;  %v5461_v52 = vpack.c.bf16 %v11983_v3, %v11982_v39  ;;  %v11990_v3 = vpack.c.bf16 %v8493_v16, %v8471_v59  ;;  %v11993_v39 = vpack.c.bf16 %v11929_v14, %v11928_v33  ;;  %v11994_v16 = vld [vmem:[#allocation150_spill] sm:$0xff] }
 0x38e   : > { %4420 = vmatprep.mubr.bf16.mxu0 %v5459_v4  ;;  %4452 = vmatpush1.bf16.msra.mxu0 %v4276_v26  ;;  %v4274_v48 = vpack.c.bf16 %v11973_v50, %v11972_v5  ;;  %v2644_v15 = vld [vmem:[#allocation4 + $0x4] sm:$0x3]  ;;  %v4169_v34 = vcombine.low %v3960_v22, %v3997_v24  ;;  %v2938_v26 = vrot.slane %v2937_v32, 2  ;;  %v2901_v50 = vrot.slane %v2900_v58, 2  ;;  %v11985_v24 = vld [vmem:[#allocation211_spill] sm:$0xff] }
 0x38f   : > { %4453 = vmatprep.subr.bf16.mxu0 %v4275_v11  ;;  %v2994_v4 = vrot.slane %v2987_v25, %v11971_v10  ;;  %v3847_v22 = vmul.f32 %v11985_v24, %v3843_v13  ;;  %v12029_v14 = vld [vmem:[#allocation55_spill] sm:$0xff]  ;;  %v12033_v33 = vld [vmem:[#allocation100_spill] sm:$0xff] }
 0x390   : > { %v4176_v11 = vrot.slane %v4169_v34, %v11971_v10  ;;  %v2939_v62 = vmax.f32 %v2937_v32, %v2938_v26  ;;  %v11987_v34 = vld [vmem:[#allocation14_spill] sm:$0xff]  ;;  %v2902_v38 = vmax.f32 %v2900_v58, %v2901_v50  ;;  %v11992_v32 = vpack.c.bf16 %v11925_v46, %v11924_v27  ;;  %v11995_v58 = vld [vmem:[#allocation152_spill] sm:$0xff] }
 0x391   : > { %v3016_v5 = vmax.f32 %v2644_v15, %v2994_v4  ;;  %v11998_v46 = vpack.c.bf16 %v11933_v2, %v11932_v7  ;;  %v12001_v50 = vld [vmem:[#allocation226_spill] sm:$0xff]  ;;  %v12005_v2 = vld [vmem:[#allocation135_spill] sm:$0xff]  ;;  %v12040_v26 = vpack.c.bf16 %v12038_v37, %v12039_v23 }
 0x392   : > { %4454 = vmatpush1.bf16.msra.mxu0 %v4274_v48  ;;  %v4183_v25 = vrot.slane %v4176_v11, %v11971_v10  ;;  %v11988_v48 = vld [vmem:[#allocation12_spill] sm:$0xff]  ;;  %v12046_v37 = vld [vmem:[#allocation158_spill] sm:$0xff] }
 0x393   : > { %4455 = vmatprep.subr.bf16.mxu0 %v11984_v35  ;;  %v3020_v41 = vsub.f32 %v2644_v15, %v3016_v5  ;;  %4824 = vst.msk [vmem:[#allocation4 + $0x4] sm:$0x3] %vm6634_vm3, %v3016_v5  ;;  %v11989_v4 = vpack.c.bf16 %v11987_v34, %v11988_v48  ;;  %v2940_v35 = vrot.slane %v2939_v62, 1  ;;  %v2903_v15 = vrot.slane %v2902_v38, 1  ;;  %v12004_v34 = vld [vmem:[#allocation134_spill] sm:$0xff]  ;;  %v12006_v48 = vld [vmem:[#allocation137_spill] sm:$0xff] }
 0x394   : > { %v4219_v42 = vadd.f32 %v4183_v25, %v3847_v22  ;;  %v8973_v59 = vrot.slane %v3016_v5, %v11994_v16  ;;  %v12002_v22 = vpack.c.bf16 %v11935_v43, %v12001_v50  ;;  %v12003_v25 = vld [vmem:[#allocation91_spill] sm:$0xff]  ;;  %v12035_v16 = vld [vmem:[#allocation220_spill] sm:$0xff] }
 0x395   : > { %4421 = vmatmul.mubr.bf16.gmra.mxu0 %v11989_v4  ;;  %v8978_v47 = vmax.f32 %v2939_v62, %v2940_v35  ;;  %v3026_v27 = vmul.f32 1.442695, %v3020_v41  ;;  %v8985_v13 = vmax.f32 %v2902_v38, %v2903_v15  ;;  %v4293_v62 = vpack.c.bf16 %v8856_v29, %v8838_v56  ;;  %v12007_v43 = vld [vmem:[#allocation147_spill] sm:$0xff]  ;;  %v12008_v38 = vld [vmem:[#allocation121_spill] sm:$0xff] }
 0x396   : > { %4456 = vmatpush1.bf16.msra.mxu0 %v11990_v3  ;;  %4483 = vmatprep.mubr.bf16.mxu0 %v5461_v52  ;;  %4227 = vst.msk [vmem:[#allocation5 + $0x2] sm:$0x3] %vm6634_vm3, %v4219_v42  ;;  %v8976_v52 = vrot.slane %v3016_v5, %v11995_v58  ;;  %v3202_v41 = vsub.f32 %v12005_v2, %v8973_v59  ;;  %v12009_v29 = vld [vmem:[#allocation139_spill] sm:$0xff]  ;;  %v12010_v35 = vld [vmem:[#allocation141_spill] sm:$0xff]  ;;  %v12034_v58 = vld [vmem:[#allocation130_spill] sm:$0xff] }
 0x397   : > { %4457 = vmatprep.subr.bf16.mxu0 %v11991_v8  ;;  %v3204_v56 = vsub.f32 %v12009_v29, %v8973_v59  ;;  %v12011_v15 = vld [vmem:[#allocation143_spill] sm:$0xff]  ;;  %5818 = vpow2.f32 %v3026_v27  ;;  %v12015_v42 = vld [vmem:[#allocation153_spill] sm:$0xff]  ;;  %v12036_v9 = vpack.c.bf16 %v11944_v60, %v12035_v16  ;;  %v12044_v16 = vld [vmem:[#allocation110_spill] sm:$0xff] }
 0x398   : > { %v3203_v4 = vsub.f32 %v12006_v48, %v8976_v52  ;;  %v12014_v48 = vld [vmem:[#allocation151_spill] sm:$0xff]  ;;  %v3210_v3 = vsub.f32 %v12015_v42, %v8973_v59  ;;  %v12016_v29 = vld [vmem:[#allocation113_spill] sm:$0xff]  ;;  %v3586_v31 = vmul.f32 1.442695, %v3202_v41  ;;  %v12048_v41 = vld [vmem:[#allocation214_spill] sm:$0xff] }
 0x399   : > { %v3209_v11 = vsub.f32 %v12014_v48, %v8976_v52  ;;  %v12017_v8 = vld [vmem:[#allocation107_spill] sm:$0xff]  ;;  %v12023_v48 = vpack.c.bf16 %v11942_v40, %v11941_v12  ;;  %v12030_v40 = vld [vmem:[#allocation61_spill] sm:$0xff]  ;;  %v3590_v1 = vmul.f32 1.442695, %v3204_v56  ;;  %v12047_v12 = vld [vmem:[#allocation218_spill] sm:$0xff] }
 0x39a   : > { %4458 = vmatpush1.bf16.msra.mxu0 %v11992_v32  ;;  %v3205_v32 = vsub.f32 %v12010_v35, %v8976_v52  ;;  %v12018_v7 = vpack.c.bf16 %v12016_v29, %v12017_v8  ;;  %v12019_v35 = vld [vmem:[#allocation156_spill] sm:$0xff]  ;;  %v12020_v5 = vld [vmem:[#allocation159_spill] sm:$0xff]  ;;  %v12032_v29 = vld [vmem:[#allocation89_spill] sm:$0xff]  ;;  %v3588_v57 = vmul.f32 1.442695, %v3203_v4  ;;  %5820 = vpow2.f32 %v3586_v31 }
 0x39b   : > { %4459 = vmatprep.subr.bf16.mxu0 %v11993_v39  ;;  %v3206_v39 = vsub.f32 %v12011_v15, %v8973_v59  ;;  %v3211_v15 = vsub.f32 %v12019_v35, %v8976_v52  ;;  %v12021_v27 = vld [vmem:[#allocation163_spill] sm:$0xff]  ;;  %v12026_v35 = vld [vmem:[#allocation44_spill] sm:$0xff]  ;;  %v12049_v31 = vpack.c.bf16 %v12047_v12, %v12048_v41  ;;  %v12051_v60 = vld [vmem:[#allocation126_spill] sm:$0xff] }
 0x39c   : > { %v3213_v24 = vsub.f32 %v12021_v27, %v8976_v52  ;;  %v12024_v42 = vld [vmem:[#allocation39_spill] sm:$0xff]  ;;  %v3592_v8 = vmul.f32 1.442695, %v3205_v32  ;;  %5822 = vpow2.f32 %v3588_v57  ;;  %v12045_v32 = vld [vmem:[#allocation172_spill] sm:$0xff]  ;;  %v3600_v57 = vmul.f32 1.442695, %v3209_v11 }
 0x39d   : > { %v12028_v27 = vld [vmem:[#allocation51_spill] sm:$0xff]  ;;  %v3594_v0 = vmul.f32 1.442695, %v3206_v39  ;;  %5824 = vpow2.f32 %v3590_v1  ;;  %v12054_v12 = vld [vmem:[#allocation48_spill] sm:$0xff]  ;;  %v3604_v39 = vmul.f32 1.442695, %v3211_v15  ;;  %v12062_v11 = vpack.c.bf16 %v12004_v34, %v12003_v25 }
 0x39e   : > { %4460 = vmatpush1.bf16.msra.mxu0 %v11998_v46  ;;  %v12012_v46 = vld [vmem:[#allocation146_spill] sm:$0xff]  ;;  %5826 = vpow2.f32 %v3592_v8  ;;  %v12056_v8 = vld [vmem:[#allocation69_spill] sm:$0xff]  ;;  %v12066_v1 = vld [vmem:[#allocation208_spill] sm:$0xff] }
 0x39f   : > { %4461 = vmatprep.subr.bf16.mxu0 %v12002_v22  ;;  %v3207_v50 = vsub.f32 %v12012_v46, %v8976_v52  ;;  %v12013_v22 = vld [vmem:[#allocation148_spill] sm:$0xff]  ;;  %v3212_v46 = vsub.f32 %v12020_v5, %v8973_v59  ;;  %v12027_v5 = vld [vmem:[#allocation47_spill] sm:$0xff]  ;;  %5828 = vpow2.f32 %v3594_v0  ;;  %v12058_v0 = vpack.c.bf16 %v8849_v45, %v8831_v36  ;;  %v3844_v41 = vld [vmem:[#allocation5 + $0x4] sm:$0x3] }
 0x3a0   : > { %v3208_v2 = vsub.f32 %v12013_v22, %v8973_v59  ;;  %v12022_v22 = vld [vmem:[#allocation37_spill] sm:$0xff]  ;;  %v12068_v15 = vld [vmem:[#allocation215_spill] sm:$0xff]  ;;  %v12076_v45 = vpack.c.bf16 %v8750_v55, %v8734_v28  ;;  %v12090_v55 = vsub.f32 %v12026_v35, %v8976_v52  ;;  %v12096_v35 = vpack.c.bf16 %v8718_v20, %v8704_v54 }
 0x3a1   : > { %v3596_v56 = vmul.f32 1.442695, %v3207_v50  ;;  %v12052_v50 = vld [vmem:[#allocation187_spill] sm:$0xff]  ;;  %v3606_v23 = vmul.f32 1.442695, %v3212_v46  ;;  %v12070_v46 = vld [vmem:[#allocation109_spill] sm:$0xff]  ;;  %v12102_v20 = vsub.f32 %v12029_v14, %v8973_v59 }
 0x3a2   : > { %4462 = vmatpush1.bf16.msra.mxu0 %v12018_v7  ;;  %v12025_v7 = vld [vmem:[#allocation41_spill] sm:$0xff]  ;;  %v3598_v51 = vmul.f32 1.442695, %v3208_v2  ;;  %v3602_v2 = vmul.f32 1.442695, %v3210_v3  ;;  %v12071_v36 = vld [vmem:[#allocation123_spill] sm:$0xff] }
 0x3a3   : > { %4463 = vmatprep.subr.bf16.mxu0 %v12023_v48  ;;  %v12031_v48 = vld [vmem:[#allocation65_spill] sm:$0xff]  ;;  %5830 = vpow2.f32 %v3596_v56  ;;  %v12061_v56 = vld [vmem:[#allocation94_spill] sm:$0xff]  ;;  %v3616_v4 = vmul.f32 1.442695, %v12090_v55  ;;  %v3622_v54 = vmul.f32 1.442695, %v12102_v20  ;;  %v12108_v20 = vsub.f32 %v12034_v58, %v8976_v52 }
 0x3a4   : > { %5832 = vpow2.f32 %v3598_v51  ;;  %v9098_v3 = vpop.eup %5818  ;;  %v12063_v51 = vld [vmem:[#allocation103_spill] sm:$0xff] }
 0x3a5   : > { %12059 = vst [vmem:[#allocation120_spill] sm:$0xff] %v9098_v3  ;;  %5834 = vpow2.f32 %v3600_v57  ;;  %v12067_v57 = vld [vmem:[#allocation212_spill] sm:$0xff] }
 0x3a6   : > { %4464 = vmatpush1.bf16.msra.mxu0 %v12036_v9  ;;  %v3608_v9 = vmul.f32 1.442695, %v3213_v24  ;;  %5836 = vpow2.f32 %v3602_v2  ;;  %v12072_v2 = vpack.c.bf16 %v12008_v38, %v12007_v43  ;;  %v12085_v38 = vsub.f32 %v12025_v7, %v8973_v59 }
 0x3a7   : > { %4465 = vmatprep.subr.bf16.mxu0 %v12040_v26  ;;  %v12053_v26 = vld [vmem:[#allocation195_spill] sm:$0xff]  ;;  %5838 = vpow2.f32 %v3604_v39  ;;  %v9147_v25 = vpop.eup %5820  ;;  %v12091_v7 = vpack.c.bf16 %v8740_v19, %v8724_v30  ;;  %v12098_v30 = vld [vmem:[#allocation140_spill] sm:$0xff] }
 0x3a8   : > { %5840 = vpow2.f32 %v3606_v23  ;;  %12081 = vst [vmem:[#allocation102_spill] sm:$0xff] %v9147_v25  ;;  %v3614_v43 = vmul.f32 1.442695, %v12085_v38  ;;  %v12088_v23 = vld [vmem:[#allocation149_spill] sm:$0xff] }
 0x3a9   : > { %5842 = vpow2.f32 %v3608_v9  ;;  %v12080_v9 = vsub.f32 %v12024_v42, %v8976_v52 }
 0x3aa   : > { %4466 = vmatpush1.bf16.msra.mxu0 %v12049_v31  ;;  %v12055_v31 = vld [vmem:[#allocation58_spill] sm:$0xff] }
 0x3ab   : > { %4467 = vmatprep.subr.bf16.mxu0 %v4293_v62  ;;  %v12057_v62 = vld [vmem:[#allocation75_spill] sm:$0xff]  ;;  %v3612_v39 = vmul.f32 1.442695, %v12080_v9  ;;  %v12094_v9 = vld [vmem:[#allocation170_spill] sm:$0xff] }
 0x3ae   : > { %4468 = vmatpush2.bf16.msra.mxu0 %v12058_v0  ;;  %v12065_v0 = vld [vmem:[#allocation138_spill] sm:$0xff] }
 0x3af   : > { %4469 = vmatprep.subr.bf16.mxu0 %v12062_v11  ;;  %v12075_v11 = vsub.f32 %v12022_v22, %v8973_v59  ;;  %v12095_v22 = vsub.f32 %v12027_v5, %v8973_v59  ;;  %v12103_v5 = vsub.f32 %v12030_v40, %v8976_v52  ;;  %v3632_v40 = vmul.f32 1.442695, %v12108_v20  ;;  %v9245_v20 = vld [vmem:[#allocation4 + $0x6] sm:$0x3] }
 0x3b0   : > { %12118 = vst [vmem:[#allocation77_spill] sm:$0xff] %v9245_v20 }
 0x3b1   : > { %v3610_v34 = vmul.f32 1.442695, %v12075_v11  ;;  %v12089_v11 = vld [vmem:[#allocation171_spill] sm:$0xff]  ;;  %v3618_v24 = vmul.f32 1.442695, %v12095_v22 }
 0x3b2   : > { %4470 = vmatpush2.bf16.msra.mxu0 %v12072_v2  ;;  %v9158_v2 = vpop.eup %5822  ;;  %v3624_v22 = vmul.f32 1.442695, %v12103_v5  ;;  %v12109_v5 = vpack.c.bf16 %v8711_v53, %v8692_v63 }
 0x3b3   : > { %4471 = vmatprep.subr.bf16.mxu0 %v12076_v45  ;;  %12086 = vst [vmem:[#allocation105_spill] sm:$0xff] %v9158_v2  ;;  %v9172_v38 = vpop.eup %5824  ;;  %v12093_v45 = vld [vmem:[#allocation115_spill] sm:$0xff]  ;;  %5844 = vpow2.f32 %v3610_v34  ;;  %v9192_v34 = vmul.f32 %v9098_v3, %v3844_v41  ;;  %v12106_v41 = vsub.f32 %v12032_v29, %v8976_v52 }
 0x3b4   : > { %12092 = vst [vmem:[#allocation98_spill] sm:$0xff] %v9172_v38  ;;  %v9184_v55 = vpop.eup %5826  ;;  %5846 = vpow2.f32 %v3612_v39  ;;  %v12104_v39 = vsub.f32 %v12031_v48, %v8973_v59  ;;  %v3998_v63 = vadd.f32 %v9172_v38, %v9147_v25  ;;  %v12193_v25 = vld [vmem:[#allocation23_spill] sm:$0xff] }
 0x3b5   : > { %12097 = vst [vmem:[#allocation101_spill] sm:$0xff] %v9184_v55  ;;  %12100 = vst [vmem:[#allocation93_spill] sm:$0xff] %v9192_v34  ;;  %v9194_v42 = vpop.eup %5828  ;;  %5848 = vpow2.f32 %v3614_v43  ;;  %v12107_v43 = vsub.f32 %v12033_v33, %v8973_v59  ;;  %v12246_v34 = vld [vmem:[#allocation87_spill] sm:$0xff] }
 0x3b6   : > { %4472 = vmatpush2.bf16.msra.mxu0 %v12091_v7  ;;  %v12099_v7 = vsub.f32 %v12028_v27, %v8976_v52  ;;  %12101 = vst [vmem:[#allocation99_spill] sm:$0xff] %v9194_v42  ;;  %v9205_v27 = vpop.eup %5830  ;;  %5850 = vpow2.f32 %v3616_v4  ;;  %v12111_v4 = vsub.f32 %v12037_v21, %v8973_v59  ;;  %v4035_v21 = vadd.f32 %v9184_v55, %v9158_v2  ;;  %v12208_v55 = vld [vmem:[#allocation150_spill] sm:$0xff] }
 0x3b7   : > { %4473 = vmatprep.subr.bf16.mxu0 %v12096_v35  ;;  %v3626_v35 = vmul.f32 1.442695, %v12104_v39  ;;  %12105 = vst [vmem:[#allocation88_spill] sm:$0xff] %v9205_v27  ;;  %v3630_v14 = vmul.f32 1.442695, %v12107_v43  ;;  %v9219_v48 = vpop.eup %5832  ;;  %5852 = vpow2.f32 %v3618_v24  ;;  %v12112_v39 = vsub.f32 %v12041_v18, %v8976_v52 }
 0x3b8   : > { %v3620_v28 = vmul.f32 1.442695, %v12099_v7  ;;  %v3628_v7 = vmul.f32 1.442695, %v12106_v41  ;;  %12110 = vst [vmem:[#allocation92_spill] sm:$0xff] %v9219_v48  ;;  %v12113_v41 = vsub.f32 %v12042_v49, %v8973_v59  ;;  %v12114_v43 = vpack.c.bf16 %v8686_v17, %v8671_v6  ;;  %v9233_v53 = vpop.eup %5834  ;;  %v12126_v17 = vld [vmem:[#allocation155_spill] sm:$0xff] }
 0x3b9   : > { %v3634_v29 = vmul.f32 1.442695, %v12111_v4  ;;  %v3636_v33 = vmul.f32 1.442695, %v12112_v39  ;;  %12115 = vst [vmem:[#allocation83_spill] sm:$0xff] %v9233_v53  ;;  %v12116_v18 = vcombine.low %v8985_v13, %v8978_v47  ;;  %v9243_v49 = vpop.eup %5836  ;;  %v3999_v47 = vadd.f32 %v9194_v42, %v3998_v63  ;;  %v12125_v63 = vld [vmem:[#allocation232_spill] sm:$0xff] }
 0x3ba   : > { %4474 = vmatpush2.bf16.msra.mxu0 %v12109_v5  ;;  %v3638_v58 = vmul.f32 1.442695, %v12113_v41  ;;  %5854 = vpow2.f32 %v3620_v28  ;;  %12117 = vst [vmem:[#allocation90_spill] sm:$0xff] %v9243_v49  ;;  %v9253_v5 = vpop.eup %5838  ;;  %v4036_v13 = vadd.f32 %v9205_v27, %v4035_v21  ;;  %v12120_v4 = vpack.c.bf16 %v8679_v44, %v8661_v61  ;;  %v12122_v41 = vld [vmem:[#allocation168_spill] sm:$0xff]  ;;  %v12140_v6 = vld [vmem:[#allocation183_spill] sm:$0xff]  ;;  %v12219_v27 = vld [vmem:[#allocation22_spill] sm:$0xff] }
 0x3bb   : > { %4475 = vmatprep.subr.bf16.mxu0 %v12114_v43  ;;  %v3002_v24 = vrot.slane %v12116_v18, %v11971_v10  ;;  %5856 = vpow2.f32 %v3622_v54  ;;  %12119 = vst [vmem:[#allocation82_spill] sm:$0xff] %v9253_v5  ;;  %v9261_v39 = vpop.eup %5840  ;;  %v12123_v43 = vsub.f32 %v12122_v41, %v8976_v52  ;;  %v12127_v21 = vpack.c.bf16 %v12125_v63, %v12126_v17  ;;  %v12209_v42 = vld [vmem:[#allocation152_spill] sm:$0xff] }
 0x3bc   : > { %5858 = vpow2.f32 %v3624_v22  ;;  %12121 = vst [vmem:[#allocation227_spill] sm:$0xff] %v9261_v39  ;;  %v12124_v22 = vsub.f32 %v12044_v16, %v8973_v59  ;;  %v9274_v61 = vpop.eup %5842  ;;  %v4000_v44 = vadd.f32 %v9219_v48, %v3999_v47  ;;  %v12130_v16 = vsub.f32 %v12045_v32, %v8976_v52  ;;  %v12132_v32 = vld [vmem:[#allocation231_spill] sm:$0xff] }
 0x3bd   : > { %v3009_v54 = vrot.slane %v3002_v24, %v11971_v10  ;;  %5860 = vpow2.f32 %v3626_v35  ;;  %v3640_v18 = vmul.f32 1.442695, %v12123_v43  ;;  %12128 = vst [vmem:[#allocation229_spill] sm:$0xff] %v9274_v61  ;;  %v4037_v35 = vadd.f32 %v9233_v53, %v4036_v13  ;;  %v12139_v24 = vld [vmem:[#allocation179_spill] sm:$0xff]  ;;  %v12223_v53 = vld [vmem:[#allocation33_spill] sm:$0xff] }
 0x3be   : > { %4476 = vmatpush2.bf16.msra.mxu0 %v12120_v4  ;;  %v3642_v28 = vmul.f32 1.442695, %v12124_v22  ;;  %5862 = vpow2.f32 %v3628_v7  ;;  %v3644_v41 = vmul.f32 1.442695, %v12130_v16  ;;  %v4001_v7 = vadd.f32 %v9243_v49, %v4000_v44 }
 0x3bf   : > { %4477 = vmatprep.subr.bf16.mxu0 %v12127_v21  ;;  %v9279_v4 = vmax.f32 %v9245_v20, %v3009_v54  ;;  %5864 = vpow2.f32 %v3630_v14  ;;  %v4038_v47 = vadd.f32 %v9253_v5, %v4037_v35  ;;  %v12133_v54 = vld [vmem:[#allocation122_spill] sm:$0xff]  ;;  %v12135_v63 = vsub.f32 %v12046_v37, %v8973_v59  ;;  %v12136_v21 = vld [vmem:[#allocation175_spill] sm:$0xff] }
 0x3c0   : > { %5866 = vpow2.f32 %v3632_v40  ;;  %v12134_v22 = vpack.c.bf16 %v12132_v32, %v12133_v54  ;;  %v12137_v44 = vsub.f32 %v12136_v21, %v8976_v52  ;;  %v12138_v16 = vsub.f32 %v12051_v60, %v8973_v59  ;;  %v9310_v17 = vpop.eup %5844  ;;  %v12150_v21 = vld [vmem:[#allocation177_spill] sm:$0xff]  ;;  %v12238_v5 = vld [vmem:[#allocation67_spill] sm:$0xff] }
 0x3c1   : > { %12129 = vst [vmem:[#allocation129_spill] sm:$0xff] %v9279_v4  ;;  %4825 = vst.msk [vmem:[#allocation4 + $0x6] sm:$0x3] %vm6634_vm3, %v9279_v4  ;;  %5868 = vpow2.f32 %v3634_v29  ;;  %v3646_v40 = vmul.f32 1.442695, %v12135_v63  ;;  %v12141_v43 = vpack.c.bf16 %v12139_v24, %v12140_v6  ;;  %v12143_v29 = vsub.f32 %v12052_v50, %v8976_v52 }
 0x3c2   : > { %4478 = vmatpush2.bf16.msra.mxu0 %v12134_v22  ;;  %v3648_v35 = vmul.f32 1.442695, %v12137_v44  ;;  %v3650_v13 = vmul.f32 1.442695, %v12138_v16  ;;  %12142 = vst [vmem:[#allocation133_spill] sm:$0xff] %v9310_v17  ;;  %5870 = vpow2.f32 %v3636_v33  ;;  %v4002_v32 = vadd.f32 %v9261_v39, %v4001_v7  ;;  %v9317_v22 = vpop.eup %5846  ;;  %v12151_v44 = vld [vmem:[#allocation182_spill] sm:$0xff] }
 0x3c3   : > { %4479 = vmatprep.subr.bf16.mxu0 %v12141_v43  ;;  %v3652_v37 = vmul.f32 1.442695, %v12143_v29  ;;  %v4039_v54 = vadd.f32 %v9274_v61, %v4038_v47  ;;  %12144 = vst [vmem:[#allocation119_spill] sm:$0xff] %v9317_v22  ;;  %5872 = vpow2.f32 %v3638_v58  ;;  %v12145_v60 = vsub.f32 %v12053_v26, %v8973_v59  ;;  %v9328_v43 = vpop.eup %5848  ;;  %v12234_v61 = vld [vmem:[#allocation57_spill] sm:$0xff] }
 0x3c4   : > { %v12146_v6 = vsub.f32 %v12054_v12, %v8976_v52  ;;  %v12147_v33 = vsub.f32 %v12055_v31, %v8973_v59  ;;  %12148 = vst [vmem:[#allocation131_spill] sm:$0xff] %v9328_v43  ;;  %5874 = vpow2.f32 %v3640_v18  ;;  %v12149_v7 = vsub.f32 %v12056_v8, %v8976_v52  ;;  %v9338_v12 = vpop.eup %5850  ;;  %v12155_v18 = vld [vmem:[#allocation84_spill] sm:$0xff] }
 0x3c5   : > { %v3654_v63 = vmul.f32 1.442695, %v12145_v60  ;;  %v4003_v58 = vadd.f32 %v9310_v17, %v4002_v32  ;;  %v4040_v26 = vadd.f32 %v9317_v22, %v4039_v54  ;;  %v12152_v16 = vpack.c.bf16 %v12150_v21, %v12151_v44  ;;  %12153 = vst [vmem:[#allocation117_spill] sm:$0xff] %v9338_v12  ;;  %v12158_v54 = vld [vmem:[#allocation190_spill] sm:$0xff]  ;;  %v9352_v21 = vpop.eup %5852  ;;  %v12240_v22 = vld [vmem:[#allocation128_spill] sm:$0xff] }
 0x3c6   : > { %v3656_v24 = vmul.f32 1.442695, %v12146_v6  ;;  %v3658_v50 = vmul.f32 1.442695, %v12147_v33  ;;  %v3660_v47 = vmul.f32 1.442695, %v12149_v7  ;;  %5876 = vpow2.f32 %v3642_v28 }
 0x3c7   : > { %4480 = vmatpush2.bf16.msra.mxu0 %v12152_v16  ;;  %v12154_v31 = vsub.f32 %v12057_v62, %v8973_v59  ;;  %v12156_v60 = vsub.f32 %v12155_v18, %v8976_v52  ;;  %v12157_v32 = vsub.f32 %v12061_v56, %v8973_v59  ;;  %v12159_v33 = vld [vmem:[#allocation192_spill] sm:$0xff]  ;;  %12161 = vst [vmem:[#allocation223_spill] sm:$0xff] %v9352_v21  ;;  %5878 = vpow2.f32 %v3644_v41  ;;  %v12164_v56 = vld [vmem:[#allocation111_spill] sm:$0xff] }
 0x3c8   : > { %v12160_v7 = vpack.c.bf16 %v12158_v54, %v12159_v33  ;;  %v12162_v28 = vsub.f32 %v12063_v51, %v8976_v52  ;;  %v4004_v44 = vadd.f32 %v9328_v43, %v4003_v58  ;;  %v4041_v16 = vadd.f32 %v9338_v12, %v4040_v26  ;;  %v12244_v12 = vld [vmem:[#allocation166_spill] sm:$0xff] }
 0x3c9   : > { %v3662_v29 = vmul.f32 1.442695, %v12154_v31  ;;  %v3664_v8 = vmul.f32 1.442695, %v12156_v60  ;;  %v3666_v6 = vmul.f32 1.442695, %v12157_v32  ;;  %v9359_v31 = vpop.eup %5854  ;;  %5880 = vpow2.f32 %v3646_v40 }
 0x3ca   : > { %4481 = vmatprep.subr.bf16.mxu0 %v12160_v7  ;;  %v3668_v62 = vmul.f32 1.442695, %v12162_v28  ;;  %12163 = vst [vmem:[#allocation106_spill] sm:$0xff] %v9359_v31  ;;  %v12165_v18 = vsub.f32 %v12164_v56, %v8973_v59  ;;  %v12166_v32 = vsub.f32 %v12065_v0, %v8976_v52  ;;  %v12167_v51 = vsub.f32 %v12066_v1, %v8973_v59  ;;  %v9374_v58 = vpop.eup %5856  ;;  %v12170_v0 = vld [vmem:[#allocation186_spill] sm:$0xff] }
 0x3cb   : > { %12168 = vst [vmem:[#allocation224_spill] sm:$0xff] %v9374_v58  ;;  %5882 = vpow2.f32 %v3648_v35  ;;  %v12169_v40 = vsub.f32 %v12067_v57, %v8976_v52  ;;  %v4005_v33 = vadd.f32 %v9352_v21, %v4004_v44  ;;  %v4042_v7 = vadd.f32 %v9359_v31, %v4041_v16  ;;  %v12171_v28 = vld [vmem:[#allocation194_spill] sm:$0xff]  ;;  %v12252_v21 = vld [vmem:[#allocation161_spill] sm:$0xff]  ;;  %v12258_v31 = vld [vmem:[#allocation184_spill] sm:$0xff] }
 0x3cc   : > { %v3670_v60 = vmul.f32 1.442695, %v12165_v18  ;;  %v9367_v54 = vmul.f32 1.442695, %v12166_v32  ;;  %v9372_v41 = vmul.f32 1.442695, %v12167_v51  ;;  %v12172_v56 = vpack.c.bf16 %v12170_v0, %v12171_v28  ;;  %v9386_v18 = vpop.eup %5858 }
 0x3cd   : > { %v9379_v26 = vmul.f32 1.442695, %v12169_v40  ;;  %12173 = vst [vmem:[#allocation74_spill] sm:$0xff] %v9386_v18  ;;  %5884 = vpow2.f32 %v3650_v13  ;;  %v12174_v1 = vsub.f32 %v12068_v15, %v8973_v59  ;;  %v12175_v32 = vld [vmem:[#allocation221_spill] sm:$0xff]  ;;  %v12177_v44 = vsub.f32 %v12070_v46, %v8973_v59  ;;  %v9403_v40 = vpop.eup %5860 }
 0x3ce   : > { %4482 = vmatpush2.bf16.msra.mxu0 %v12172_v56  ;;  %v12176_v57 = vsub.f32 %v12175_v32, %v8976_v52  ;;  %12178 = vst [vmem:[#allocation78_spill] sm:$0xff] %v9403_v40  ;;  %5886 = vpow2.f32 %v3652_v37  ;;  %v12179_v13 = vsub.f32 %v12071_v36, %v8976_v52  ;;  %v4006_v15 = vadd.f32 %v9374_v58, %v4005_v33  ;;  %v9412_v56 = vpop.eup %5862  ;;  %v12185_v36 = vld [vmem:[#allocation66_spill] sm:$0xff] }
 0x3cf   : > { %v9391_v35 = vmul.f32 1.442695, %v12174_v1  ;;  %v9401_v16 = vmul.f32 1.442695, %v12177_v44  ;;  %v4043_v28 = vadd.f32 %v9386_v18, %v4042_v7  ;;  %12180 = vst [vmem:[#allocation71_spill] sm:$0xff] %v9412_v56  ;;  %5888 = vpow2.f32 %v3654_v63  ;;  %v12181_v1 = vld [vmem:[#allocation142_spill] sm:$0xff]  ;;  %v9432_v63 = vpop.eup %5864 }
 0x3d0   : > { %v9396_v51 = vmul.f32 1.442695, %v12176_v57  ;;  %v9408_v0 = vmul.f32 1.442695, %v12179_v13  ;;  %v12182_v46 = vsub.f32 %v12181_v1, %v8973_v59  ;;  %v12183_v57 = vld [vmem:[#allocation199_spill] sm:$0xff]  ;;  %v12186_v13 = vsub.f32 %v12185_v36, %v8973_v59  ;;  %v12187_v33 = vld [vmem:[#allocation18_spill] sm:$0xff]  ;;  %v9444_v38 = vpop.eup %5866 }
 0x3d1   : > { %v12184_v37 = vsub.f32 %v12183_v57, %v8976_v52  ;;  %v12188_v7 = vld [vmem:[#allocation16_spill] sm:$0xff]  ;;  %12190 = vst [vmem:[#allocation73_spill] sm:$0xff] %v9432_v63  ;;  %5890 = vpow2.f32 %v3656_v24  ;;  %v12191_v1 = vld [vmem:[#allocation54_spill] sm:$0xff]  ;;  %v4007_v57 = vadd.f32 %v9403_v40, %v4006_v15  ;;  %v12194_v36 = vld [vmem:[#allocation21_spill] sm:$0xff] }
 0x3d2   : > { %v9417_v32 = vmul.f32 1.442695, %v12182_v46  ;;  %v9427_v19 = vmul.f32 1.442695, %v12186_v13  ;;  %v12189_v3 = vpack.c.bf16 %v12187_v33, %v12188_v7  ;;  %v12192_v46 = vsub.f32 %v12191_v1, %v8976_v52  ;;  %12196 = vst [vmem:[#allocation13_spill] sm:$0xff] %v9444_v38  ;;  %v12199_v7 = vld [vmem:[#allocation185_spill] sm:$0xff] }
 0x3d3   : > { %v9422_v44 = vmul.f32 1.442695, %v12184_v37  ;;  %v4044_v37 = vadd.f32 %v9412_v56, %v4043_v28  ;;  %v12195_v13 = vpack.c.bf16 %v12193_v25, %v12194_v36  ;;  %5892 = vpow2.f32 %v3658_v50  ;;  %v12201_v15 = vld [vmem:[#allocation178_spill] sm:$0xff]  ;;  %v9461_v25 = vpop.eup %5868  ;;  %v12204_v36 = vld [vmem:[#allocation116_spill] sm:$0xff]  ;;  %v12264_v40 = vld [vmem:[#allocation201_spill] sm:$0xff] }
 0x3d4   : > { %4484 = vmatmul.mubr.bf16.vlgmr.msra.gmra.mxu0 %v12189_v3  ;;  %v9437_v20 = vmul.f32 1.442695, %v12192_v46  ;;  %v12197_v3 = vld [vmem:[#allocation198_spill] sm:$0xff]  ;;  %v12200_v1 = vsub.f32 %v12199_v7, %v8976_v52  ;;  %v12202_v28 = vsub.f32 %v12201_v15, %v8973_v59  ;;  %12203 = vst [vmem:[#allocation15_spill] sm:$0xff] %v9461_v25  ;;  %5894 = vpow2.f32 %v3660_v47  ;;  %v9470_v7 = vpop.eup %5870 }
 0x3d5   : > { %4493 = vmatprep.mubr.bf16.mxu0 %v12195_v13  ;;  %v12198_v33 = vsub.f32 %v12197_v3, %v8973_v59  ;;  %v12205_v50 = vsub.f32 %v12204_v36, %v8976_v52  ;;  %v4008_v3 = vadd.f32 %v9432_v63, %v4007_v57  ;;  %5896 = vpow2.f32 %v3662_v29  ;;  %v12270_v56 = vld [vmem:[#allocation70_spill] sm:$0xff] }
 0x3d6   : > { %v9454_v46 = vmul.f32 1.442695, %v12200_v1  ;;  %v9459_v2 = vmul.f32 1.442695, %v12202_v28  ;;  %v12206_v1 = vld [vmem:[#allocation210_spill] sm:$0xff]  ;;  %v9479_v47 = vrot.slane %v9279_v4, %v12208_v55  ;;  %v9483_v36 = vrot.slane %v9279_v4, %v12209_v42 }
 0x3d7   : > { %v9449_v24 = vmul.f32 1.442695, %v12198_v33  ;;  %v9466_v13 = vmul.f32 1.442695, %v12205_v50  ;;  %v4045_v33 = vadd.f32 %v9444_v38, %v4044_v37  ;;  %v12207_v15 = vsub.f32 %v12206_v1, %v8973_v59  ;;  %v9485_v50 = vpop.eup %5872 }
 0x3d8   : > { %12210 = vst [vmem:[#allocation68_spill] sm:$0xff] %v9485_v50  ;;  %5898 = vpow2.f32 %v3664_v8  ;;  %v12211_v57 = vsub.f32 %v12088_v23, %v8976_v52  ;;  %v4009_v37 = vadd.f32 %v9461_v25, %v4008_v3  ;;  %v12212_v55 = vsub.f32 %v12089_v11, %v8973_v59  ;;  %v12276_v25 = vld [vmem:[#allocation96_spill] sm:$0xff] }
 0x3d9   : > { %v9475_v28 = vmul.f32 1.442695, %v12207_v15  ;;  %v4046_v1 = vadd.f32 %v9470_v7, %v4045_v33  ;;  %v9494_v15 = vpop.eup %5874  ;;  %5900 = vpow2.f32 %v3666_v6  ;;  %v12213_v8 = vsub.f32 %v12093_v45, %v8976_v52 }
 0x3da   : > { %v9490_v29 = vmul.f32 1.442695, %v12211_v57  ;;  %v9499_v42 = vmul.f32 1.442695, %v12212_v55  ;;  %v12214_v23 = vsub.f32 %v12094_v9, %v8973_v59  ;;  %v9511_v3 = vpop.eup %5876  ;;  %5902 = vpow2.f32 %v3668_v62  ;;  %v12217_v9 = vld [vmem:[#allocation157_spill] sm:$0xff]  ;;  %v12218_v62 = vld [vmem:[#allocation160_spill] sm:$0xff] }
 0x3db   : > { %v9504_v4 = vmul.f32 1.442695, %v12213_v8  ;;  %v12215_v6 = vsub.f32 %v12098_v30, %v8976_v52  ;;  %v4010_v11 = vadd.f32 %v9485_v50, %v4009_v37  ;;  %v4047_v55 = vadd.f32 %v9494_v15, %v4046_v1  ;;  %v9520_v45 = vpop.eup %5878  ;;  %v12216_v8 = vld [vmem:[#allocation154_spill] sm:$0xff]  ;;  %v12220_v52 = vld [vmem:[#allocation20_spill] sm:$0xff] }
 0x3dc   : > { %v9509_v57 = vmul.f32 1.442695, %v12214_v23  ;;  %5904 = vpow2.f32 %v3670_v60  ;;  %v12221_v30 = vpack.c.bf16 %v12219_v27, %v12220_v52  ;;  %v12222_v1 = vld [vmem:[#allocation164_spill] sm:$0xff]  ;;  %v12224_v23 = vld [vmem:[#allocation31_spill] sm:$0xff]  ;;  %v12226_v27 = vld [vmem:[#allocation38_spill] sm:$0xff] }
 0x3dd   : > { %v9516_v33 = vmul.f32 1.442695, %v12215_v6  ;;  %v9531_v6 = vpop.eup %5880  ;;  %5906 = vpow2.f32 %v9367_v54  ;;  %v4011_v37 = vadd.f32 %v9511_v3, %v4010_v11  ;;  %v4048_v60 = vadd.f32 %v9520_v45, %v4047_v55  ;;  %v12227_v54 = vld [vmem:[#allocation40_spill] sm:$0xff]  ;;  %v12228_v11 = vld [vmem:[#allocation42_spill] sm:$0xff]  ;;  %v12233_v55 = vld [vmem:[#allocation53_spill] sm:$0xff] }
 0x3de   : > { %4494 = vmatmul.mubr.bf16.gmra.mxu0 %v12221_v30  ;;  %v12225_v49 = vpack.c.bf16 %v12223_v53, %v12224_v23  ;;  %v9541_v48 = vpop.eup %5882  ;;  %5908 = vpow2.f32 %v9372_v41  ;;  %v12230_v23 = vld [vmem:[#allocation46_spill] sm:$0xff]  ;;  %v12232_v30 = vld [vmem:[#allocation49_spill] sm:$0xff]  ;;  %v12236_v41 = vld [vmem:[#allocation63_spill] sm:$0xff] }
 0x3df   : > { %v9550_v39 = vpop.eup %5884  ;;  %5910 = vpow2.f32 %v9379_v26  ;;  %v4012_v53 = vadd.f32 %v9531_v6, %v4011_v37  ;;  %v12239_v26 = vld [vmem:[#allocation95_spill] sm:$0xff] }
 0x3e0   : > { %4629 = vmatprep.mubr.bf16.mxu0 %v12225_v49  ;;  %12229 = vst [vmem:[#allocation72_spill] sm:$0xff] %v9550_v39  ;;  %v4049_v49 = vadd.f32 %v9541_v48, %v4048_v60  ;;  %v9557_v59 = vpop.eup %5886  ;;  %5912 = vpow2.f32 %v9391_v35  ;;  %v12242_v35 = vld [vmem:[#allocation132_spill] sm:$0xff] }
 0x3e1   : > { %12231 = vst [vmem:[#allocation50_spill] sm:$0xff] %v9557_v59  ;;  %v9566_v43 = vpop.eup %5888  ;;  %5914 = vpow2.f32 %v9396_v51  ;;  %v4013_v37 = vadd.f32 %v9550_v39, %v4012_v53  ;;  %v12245_v51 = vld [vmem:[#allocation81_spill] sm:$0xff] }
 0x3e2   : > { %12235 = vst [vmem:[#allocation202_spill] sm:$0xff] %v9566_v43  ;;  %v4050_v60 = vadd.f32 %v9557_v59, %v4049_v49  ;;  %v9573_v17 = vpop.eup %5890  ;;  %5916 = vpow2.f32 %v9401_v16  ;;  %v12248_v16 = vld [vmem:[#allocation169_spill] sm:$0xff]  ;;  %v12250_v59 = vld [vmem:[#allocation112_spill] sm:$0xff] }
 0x3e3   : > { %12237 = vst [vmem:[#allocation206_spill] sm:$0xff] %v9573_v17  ;;  %v9582_v14 = vpop.eup %5892  ;;  %5918 = vpow2.f32 %v9408_v0  ;;  %v4014_v53 = vadd.f32 %v9566_v43, %v4013_v37  ;;  %v12251_v0 = vld [vmem:[#allocation173_spill] sm:$0xff] }
 0x3e4   : > { %12241 = vst [vmem:[#allocation197_spill] sm:$0xff] %v9582_v14  ;;  %v4051_v49 = vadd.f32 %v9573_v17, %v4050_v60  ;;  %v9589_v39 = vpop.eup %5894  ;;  %5920 = vpow2.f32 %v9417_v32  ;;  %v12254_v32 = vld [vmem:[#allocation176_spill] sm:$0xff] }
 0x3e5   : > { %12243 = vst [vmem:[#allocation11_spill] sm:$0xff] %v9589_v39  ;;  %v9598_v58 = vpop.eup %5896  ;;  %5922 = vpow2.f32 %v9422_v44  ;;  %v4015_v37 = vadd.f32 %v9582_v14, %v4014_v53  ;;  %v12256_v17 = vld [vmem:[#allocation124_spill] sm:$0xff]  ;;  %v12257_v44 = vld [vmem:[#allocation181_spill] sm:$0xff] }
 0x3e6   : > { %12247 = vst [vmem:[#allocation10_spill] sm:$0xff] %v9598_v58  ;;  %v4052_v60 = vadd.f32 %v9589_v39, %v4051_v49  ;;  %v9605_v43 = vpop.eup %5898  ;;  %5924 = vpow2.f32 %v9427_v19  ;;  %v12260_v19 = vld [vmem:[#allocation188_spill] sm:$0xff]  ;;  %v12262_v39 = vld [vmem:[#allocation191_spill] sm:$0xff] }
 0x3e7   : > { %12249 = vst [vmem:[#allocation193_spill] sm:$0xff] %v9605_v43  ;;  %v9614_v18 = vpop.eup %5900  ;;  %5926 = vpow2.f32 %v9437_v20  ;;  %v4016_v53 = vadd.f32 %v9598_v58, %v4015_v37  ;;  %v12263_v20 = vld [vmem:[#allocation196_spill] sm:$0xff] }
 0x3e8   : > { %12253 = vst [vmem:[#allocation64_spill] sm:$0xff] %v9614_v18  ;;  %v4053_v49 = vadd.f32 %v9605_v43, %v4052_v60  ;;  %v9621_v14 = vpop.eup %5902  ;;  %5928 = vpow2.f32 %v9449_v24  ;;  %v12266_v24 = vld [vmem:[#allocation205_spill] sm:$0xff]  ;;  %v12268_v43 = vld [vmem:[#allocation52_spill] sm:$0xff] }
 0x3e9   : > { %12255 = vst [vmem:[#allocation60_spill] sm:$0xff] %v9621_v14  ;;  %v9630_v63 = vpop.eup %5904  ;;  %5930 = vpow2.f32 %v9454_v46  ;;  %v4017_v37 = vadd.f32 %v9614_v18, %v4016_v53  ;;  %v12269_v46 = vld [vmem:[#allocation62_spill] sm:$0xff] }
 0x3ea   : > { %12259 = vst [vmem:[#allocation56_spill] sm:$0xff] %v9630_v63  ;;  %v4054_v60 = vadd.f32 %v9621_v14, %v4053_v49  ;;  %v9637_v58 = vpop.eup %5906  ;;  %5932 = vpow2.f32 %v9459_v2  ;;  %v12272_v2 = vld [vmem:[#allocation76_spill] sm:$0xff] }
 0x3eb   : > { %12261 = vst [vmem:[#allocation17_spill] sm:$0xff] %v9637_v58  ;;  %v9646_v38 = vpop.eup %5908  ;;  %5934 = vpow2.f32 %v9466_v13  ;;  %v4018_v53 = vadd.f32 %v9630_v63, %v4017_v37  ;;  %v12274_v14 = vld [vmem:[#allocation80_spill] sm:$0xff]  ;;  %v12275_v13 = vld [vmem:[#allocation86_spill] sm:$0xff] }
 0x3ec   : > { %12265 = vst [vmem:[#allocation19_spill] sm:$0xff] %v9646_v38  ;;  %v4055_v49 = vadd.f32 %v9637_v58, %v4054_v60  ;;  %v9653_v18 = vpop.eup %5910  ;;  %5936 = vpow2.f32 %v9475_v28 }
 0x3ed   : > { %12267 = vst [vmem:[#allocation14_spill] sm:$0xff] %v9653_v18  ;;  %v9662_v50 = vpop.eup %5912  ;;  %5938 = vpow2.f32 %v9490_v29  ;;  %v4019_v37 = vadd.f32 %v9646_v38, %v4018_v53  ;;  %v12294_v29 = vld [vmem:[#allocation222_spill] sm:$0xff] }
 0x3ee   : > { %12271 = vst [vmem:[#allocation12_spill] sm:$0xff] %v9662_v50  ;;  %v4056_v60 = vadd.f32 %v9653_v18, %v4055_v49  ;;  %v9669_v63 = vpop.eup %5914  ;;  %5940 = vpow2.f32 %v9499_v42  ;;  %v12278_v42 = vsub.f32 %v12216_v8, %v9479_v47  ;;  %v12286_v18 = vld [vmem:[#allocation145_spill] sm:$0xff] }
 0x3ef   : > { %12273 = vst [vmem:[#allocation226_spill] sm:$0xff] %v9669_v63  ;;  %v9678_v10 = vpop.eup %5916  ;;  %5942 = vpow2.f32 %v9504_v4  ;;  %v4020_v53 = vadd.f32 %v9662_v50, %v4019_v37  ;;  %v12282_v4 = vsub.f32 %v12217_v9, %v9483_v36  ;;  %v12287_v9 = vld [vmem:[#allocation209_spill] sm:$0xff] }
 0x3f0   : > { %12277 = vst [vmem:[#allocation91_spill] sm:$0xff] %v9678_v10  ;;  %v4057_v49 = vadd.f32 %v9669_v63, %v4056_v60  ;;  %v3714_v28 = vmul.f32 1.442695, %v12278_v42  ;;  %v9686_v38 = vpop.eup %5918  ;;  %5944 = vpow2.f32 %v9509_v57  ;;  %v12284_v57 = vsub.f32 %v12218_v62, %v9479_v47 }
 0x3f1   : > { %12279 = vst [vmem:[#allocation134_spill] sm:$0xff] %v9686_v38  ;;  %v3716_v37 = vmul.f32 1.442695, %v12282_v4  ;;  %v9696_v50 = vpop.eup %5920  ;;  %5946 = vpow2.f32 %v9516_v33  ;;  %v4021_v8 = vadd.f32 %v9678_v10, %v4020_v53  ;;  %v12289_v33 = vsub.f32 %v12222_v1, %v9483_v36  ;;  %v12293_v4 = vld [vmem:[#allocation216_spill] sm:$0xff]  ;;  %v12299_v1 = vld [vmem:[#allocation225_spill] sm:$0xff] }
 0x3f2   : > { %12283 = vst [vmem:[#allocation135_spill] sm:$0xff] %v9696_v50  ;;  %v4058_v60 = vadd.f32 %v9686_v38, %v4057_v49  ;;  %v3718_v42 = vmul.f32 1.442695, %v12284_v57  ;;  %v9704_v52 = vpop.eup %5922  ;;  %5948 = vpow2.f32 %v3714_v28  ;;  %v12291_v63 = vsub.f32 %v12226_v27, %v9479_v47 }
 0x3f3   : > { %12285 = vst [vmem:[#allocation137_spill] sm:$0xff] %v9704_v52  ;;  %v3720_v53 = vmul.f32 1.442695, %v12289_v33  ;;  %v9715_v49 = vpop.eup %5924  ;;  %v4022_v62 = vadd.f32 %v9696_v50, %v4021_v8  ;;  %5950 = vpow2.f32 %v3716_v37  ;;  %v12295_v33 = vsub.f32 %v12227_v54, %v9483_v36  ;;  %v12304_v54 = vld [vmem:[#allocation228_spill] sm:$0xff] }
 0x3f4   : > { %12290 = vst [vmem:[#allocation147_spill] sm:$0xff] %v9715_v49  ;;  %v4059_v57 = vadd.f32 %v9704_v52, %v4058_v60  ;;  %v3722_v10 = vmul.f32 1.442695, %v12291_v63  ;;  %v9722_v38 = vpop.eup %5926  ;;  %5952 = vpow2.f32 %v3718_v42  ;;  %v12297_v63 = vsub.f32 %v12228_v11, %v9479_v47  ;;  %v12300_v52 = vld [vmem:[#allocation127_spill] sm:$0xff] }
 0x3f5   : > { %12292 = vst [vmem:[#allocation121_spill] sm:$0xff] %v9722_v38  ;;  %v3724_v8 = vmul.f32 1.442695, %v12295_v33  ;;  %v9731_v50 = vpop.eup %5928  ;;  %v4023_v28 = vadd.f32 %v9715_v49, %v4022_v62  ;;  %5954 = vpow2.f32 %v3720_v53  ;;  %v12301_v33 = vsub.f32 %v12230_v23, %v9483_v36  ;;  %v12309_v23 = vld [vmem:[#allocation203_spill] sm:$0xff] }
 0x3f6   : > { %12296 = vst [vmem:[#allocation139_spill] sm:$0xff] %v9731_v50  ;;  %v4060_v27 = vadd.f32 %v9722_v38, %v4059_v57  ;;  %v3726_v60 = vmul.f32 1.442695, %v12297_v63  ;;  %v9738_v58 = vpop.eup %5930  ;;  %5956 = vpow2.f32 %v3722_v10  ;;  %v12303_v57 = vsub.f32 %v12232_v30, %v9479_v47  ;;  %v12305_v38 = vld [vmem:[#allocation200_spill] sm:$0xff] }
 0x3f7   : > { %12298 = vst [vmem:[#allocation141_spill] sm:$0xff] %v9738_v58  ;;  %v3728_v62 = vmul.f32 1.442695, %v12301_v33  ;;  %v9747_v49 = vpop.eup %5932  ;;  %v4024_v42 = vadd.f32 %v9731_v50, %v4023_v28  ;;  %5958 = vpow2.f32 %v3724_v8  ;;  %v12306_v33 = vsub.f32 %v12233_v55, %v9483_v36  ;;  %v12315_v55 = vld [vmem:[#allocation189_spill] sm:$0xff] }
 0x3f8   : > { %12302 = vst [vmem:[#allocation143_spill] sm:$0xff] %v9747_v49  ;;  %v4061_v11 = vadd.f32 %v9738_v58, %v4060_v27  ;;  %v3730_v63 = vmul.f32 1.442695, %v12303_v57  ;;  %v9754_v37 = vpop.eup %5934  ;;  %5960 = vpow2.f32 %v3726_v60  ;;  %v12308_v27 = vsub.f32 %v12234_v61, %v9479_v47 }
 0x3f9   : > { %v3732_v28 = vmul.f32 1.442695, %v12306_v33  ;;  %v9763_v50 = vpop.eup %5936  ;;  %v4025_v10 = vadd.f32 %v9747_v49, %v4024_v42  ;;  %5962 = vpow2.f32 %v3728_v62  ;;  %v12311_v33 = vsub.f32 %v12236_v41, %v9483_v36  ;;  %v12321_v41 = vld [vmem:[#allocation174_spill] sm:$0xff] }
 0x3fa   : > { %12307 = vst [vmem:[#allocation146_spill] sm:$0xff] %v9763_v50  ;;  %v4062_v30 = vadd.f32 %v9754_v37, %v4061_v11  ;;  %v3734_v57 = vmul.f32 1.442695, %v12308_v27  ;;  %v9770_v53 = vpop.eup %5938  ;;  %5964 = vpow2.f32 %v3730_v63  ;;  %v12313_v11 = vsub.f32 %v12238_v5, %v9479_v47 }
 0x3fb   : > { %v3736_v42 = vmul.f32 1.442695, %v12311_v33  ;;  %v9779_v49 = vpop.eup %5940  ;;  %v4026_v60 = vadd.f32 %v9763_v50, %v4025_v10  ;;  %5966 = vpow2.f32 %v3732_v28  ;;  %v12317_v33 = vsub.f32 %v12239_v26, %v9483_v36 }
 0x3fc   : > { %12312 = vst [vmem:[#allocation148_spill] sm:$0xff] %v9779_v49  ;;  %v4063_v61 = vadd.f32 %v9770_v53, %v4062_v30  ;;  %v3738_v27 = vmul.f32 1.442695, %v12313_v11  ;;  %v9786_v8 = vpop.eup %5942  ;;  %5968 = vpow2.f32 %v3734_v57  ;;  %v12319_v30 = vsub.f32 %v12240_v22, %v9479_v47 }
 0x3fd   : > { %12314 = vst [vmem:[#allocation151_spill] sm:$0xff] %v9786_v8  ;;  %v3740_v10 = vmul.f32 1.442695, %v12317_v33  ;;  %v9795_v50 = vpop.eup %5944  ;;  %v4027_v63 = vadd.f32 %v9779_v49, %v4026_v60  ;;  %5970 = vpow2.f32 %v3736_v42  ;;  %v12323_v33 = vsub.f32 %v12242_v35, %v9483_v36 }
 0x3fe   : > { %12318 = vst [vmem:[#allocation153_spill] sm:$0xff] %v9795_v50  ;;  %v4064_v5 = vadd.f32 %v9786_v8, %v4063_v61  ;;  %v3742_v11 = vmul.f32 1.442695, %v12319_v30  ;;  %v9802_v62 = vpop.eup %5946  ;;  %5972 = vpow2.f32 %v3738_v27  ;;  %v12324_v22 = vsub.f32 %v12244_v12, %v9479_v47  ;;  %v12332_v8 = vld [vmem:[#allocation125_spill] sm:$0xff] }
 0x3ff   : > { %12320 = vst [vmem:[#allocation113_spill] sm:$0xff] %v9802_v62  ;;  %v3744_v60 = vmul.f32 1.442695, %v12323_v33  ;;  %v4028_v61 = vadd.f32 %v9795_v50, %v4027_v63  ;;  %v9816_v49 = vpop.eup %5948  ;;  %5974 = vpow2.f32 %v3740_v10  ;;  %v12328_v35 = vsub.f32 %v12245_v51, %v9483_v36 }
 0x400   : > { %v4065_v57 = vadd.f32 %v9802_v62, %v4064_v5  ;;  %v3746_v30 = vmul.f32 1.442695, %v12324_v22  ;;  %12325 = vst [vmem:[#allocation107_spill] sm:$0xff] %v9816_v49  ;;  %v9825_v33 = vpop.eup %5950  ;;  %5976 = vpow2.f32 %v3742_v11  ;;  %v12330_v12 = vsub.f32 %v12246_v34, %v9479_v47 }
 0x401   : > { %v3748_v63 = vmul.f32 1.442695, %v12328_v35  ;;  %12329 = vst [vmem:[#allocation156_spill] sm:$0xff] %v9825_v33  ;;  %v4029_v27 = vrot.slane %v4028_v61, 4  ;;  %v9830_v50 = vpop.eup %5952  ;;  %5978 = vpow2.f32 %v3744_v60  ;;  %v12334_v51 = vsub.f32 %v12248_v16, %v9483_v36 }
 0x402   : > { %v4066_v5 = vrot.slane %v4065_v57, 4  ;;  %v3750_v22 = vmul.f32 1.442695, %v12330_v12  ;;  %12331 = vst [vmem:[#allocation159_spill] sm:$0xff] %v9830_v50  ;;  %v9839_v58 = vpop.eup %5954  ;;  %5980 = vpow2.f32 %v3746_v30  ;;  %v12336_v34 = vsub.f32 %v12250_v59, %v9479_v47 }
 0x403   : > { %v3752_v35 = vmul.f32 1.442695, %v12334_v51  ;;  %12335 = vst [vmem:[#allocation163_spill] sm:$0xff] %v9839_v58  ;;  %v4030_v11 = vadd.f32 %v4029_v27, %v4028_v61  ;;  %v9844_v42 = vpop.eup %5956  ;;  %5982 = vpow2.f32 %v3748_v63  ;;  %v12338_v26 = vsub.f32 %v12251_v0, %v9483_v36 }
 0x404   : > { %v4067_v62 = vadd.f32 %v4066_v5, %v4065_v57  ;;  %v3754_v12 = vmul.f32 1.442695, %v12336_v34  ;;  %12337 = vst [vmem:[#allocation37_spill] sm:$0xff] %v9844_v42  ;;  %v12339_v16 = vsub.f32 %v12252_v21, %v9479_v47  ;;  %v12340_v61 = vsub.f32 %v12256_v17, %v9479_v47  ;;  %v9857_v30 = vpop.eup %5958 }
 0x405   : > { %v3756_v60 = vmul.f32 1.442695, %v12338_v26  ;;  %v4031_v59 = vrot.slane %v4030_v11, 2  ;;  %5984 = vpow2.f32 %v3750_v22  ;;  %v12341_v63 = vsub.f32 %v12257_v44, %v9483_v36  ;;  %v9862_v0 = vpop.eup %5960 }
 0x406   : > { %v9852_v51 = vmul.f32 1.442695, %v12339_v16  ;;  %v3762_v57 = vmul.f32 1.442695, %v12340_v61  ;;  %v4068_v27 = vrot.slane %v4067_v62, 2  ;;  %12342 = vst [vmem:[#allocation39_spill] sm:$0xff] %v9862_v0  ;;  %5986 = vpow2.f32 %v3752_v35  ;;  %v9873_v22 = vpop.eup %5962 }
 0x407   : > { %v3764_v5 = vmul.f32 1.442695, %v12341_v63  ;;  %v12343_v21 = vsub.f32 %v12254_v32, %v9483_v36  ;;  %v12344_v17 = vsub.f32 %v12258_v31, %v9479_v47  ;;  %v12345_v16 = vsub.f32 %v12260_v19, %v9483_v36  ;;  %v9878_v10 = vpop.eup %5964 }
 0x408   : > { %v4032_v28 = vadd.f32 %v4031_v59, %v4030_v11  ;;  %v4069_v44 = vadd.f32 %v4068_v27, %v4067_v62  ;;  %5988 = vpow2.f32 %v3754_v12  ;;  %v12346_v35 = vsub.f32 %v12262_v39, %v9479_v47  ;;  %v9889_v12 = vpop.eup %5966 }
 0x409   : > { %v3760_v26 = vmul.f32 1.442695, %v12343_v21  ;;  %v3766_v34 = vmul.f32 1.442695, %v12344_v17  ;;  %v3768_v61 = vmul.f32 1.442695, %v12345_v16  ;;  %5990 = vpow2.f32 %v3762_v57  ;;  %v9894_v17 = vpop.eup %5968 }
 0x40a   : > { %v3770_v63 = vmul.f32 1.442695, %v12346_v35  ;;  %v12347_v31 = vsub.f32 %v12263_v20, %v9483_v36  ;;  %v12348_v19 = vsub.f32 %v12264_v40, %v9479_v47  ;;  %v12349_v11 = vsub.f32 %v12266_v24, %v9483_v36 }
 0x40b   : > { %v4033_v59 = vrot.slane %v4032_v28, 1  ;;  %v4070_v39 = vrot.slane %v4069_v44, 1  ;;  %5992 = vpow2.f32 %v3764_v5  ;;  %v12350_v57 = vsub.f32 %v12268_v43, %v9479_v47  ;;  %v9905_v5 = vpop.eup %5970 }
 0x40c   : > { %v3772_v32 = vmul.f32 1.442695, %v12347_v31  ;;  %v3774_v21 = vmul.f32 1.442695, %v12348_v19  ;;  %v3776_v62 = vmul.f32 1.442695, %v12349_v11  ;;  %5994 = vpow2.f32 %v3766_v34 }
 0x40d   : > { %v3778_v27 = vmul.f32 1.442695, %v12350_v57  ;;  %v12351_v40 = vsub.f32 %v12269_v46, %v9483_v36  ;;  %v12352_v24 = vsub.f32 %v12270_v56, %v9479_v47  ;;  %v12353_v35 = vsub.f32 %v12272_v2, %v9483_v36  ;;  %v9910_v57 = vpop.eup %5972 }
 0x40e   : > { %v4034_v19 = vadd.f32 %v4033_v59, %v4032_v28  ;;  %v4071_v43 = vadd.f32 %v4070_v39, %v4069_v44  ;;  %5996 = vpow2.f32 %v3768_v61  ;;  %v12354_v34 = vsub.f32 %v12274_v14, %v9479_v47  ;;  %v9921_v44 = vpop.eup %5974 }
 0x40f   : > { %v3780_v20 = vmul.f32 1.442695, %v12351_v40  ;;  %v3782_v16 = vmul.f32 1.442695, %v12352_v24  ;;  %v3784_v31 = vmul.f32 1.442695, %v12353_v35  ;;  %5998 = vpow2.f32 %v3770_v63  ;;  %v9927_v59 = vpop.eup %5976 }
 0x410   : > { %v3786_v11 = vmul.f32 1.442695, %v12354_v34  ;;  %v12355_v56 = vsub.f32 %v12275_v13, %v9483_v36  ;;  %v4072_v2 = vadd.f32 %v9830_v50, %v9816_v49  ;;  %v4109_v28 = vadd.f32 %v9839_v58, %v9825_v33  ;;  %v9933_v24 = vpop.eup %5978  ;;  %v12356_v35 = vld [vmem:[#allocation144_spill] sm:$0xff]  ;;  %v12409_v33 = vld [vmem:[#allocation17_spill] sm:$0xff] }
 0x411   : > { %v4184_v61 = vcombine.low %v4034_v19, %v4071_v43  ;;  %6000 = vpow2.f32 %v3772_v32  ;;  %v4309_v14 = vpack.c.bf16 %v9541_v48, %v9520_v45  ;;  %v4308_v63 = vpack.c.bf16 %v9531_v6, %v9511_v3  ;;  %v12357_v48 = vld [vmem:[#allocation15_spill] sm:$0xff]  ;;  %v12358_v45 = vld [vmem:[#allocation68_spill] sm:$0xff]  ;;  %v12360_v6 = vld [vmem:[#allocation13_spill] sm:$0xff] }
 0x412   : > { %v9915_v46 = vmul.f32 1.442695, %v12355_v56  ;;  %6002 = vpow2.f32 %v3774_v21  ;;  %v4073_v13 = vadd.f32 %v9844_v42, %v4072_v2  ;;  %v4110_v39 = vadd.f32 %v9857_v30, %v4109_v28  ;;  %v12359_v3 = vld [vmem:[#allocation71_spill] sm:$0xff]  ;;  %v9940_v21 = vpop.eup %5980  ;;  %v12405_v42 = vld [vmem:[#allocation229_spill] sm:$0xff]  ;;  %v12411_v58 = vld [vmem:[#allocation56_spill] sm:$0xff] }
 0x413   : > { %v4307_v40 = vpack.c.bf16 %v9494_v15, %v9470_v7  ;;  %v4191_v32 = vrot.slane %v4184_v61, %v12356_v35  ;;  %6004 = vpow2.f32 %v3776_v62  ;;  %4524 = vmatprep.subr.bf16.mxu1 %v4309_v14  ;;  %v4306_v19 = vpack.c.bf16 %v12358_v45, %v12357_v48  ;;  %v12361_v7 = vld [vmem:[#allocation78_spill] sm:$0xff]  ;;  %v12362_v15 = vld [vmem:[#allocation73_spill] sm:$0xff]  ;;  %v9946_v28 = vpop.eup %5982  ;;  %v12365_v45 = vld [vmem:[#allocation223_spill] sm:$0xff] }
 0x414   : > { %v4305_v43 = vpack.c.bf16 %v12360_v6, %v12359_v3  ;;  %6006 = vpow2.f32 %v3756_v60  ;;  %v4074_v34 = vadd.f32 %v9862_v0, %v4073_v13  ;;  %v4111_v56 = vadd.f32 %v9873_v22, %v4110_v39  ;;  %4525 = vmatpush1.bf16.msra.mxu1 %v4308_v63  ;;  %v12363_v61 = vld [vmem:[#allocation106_spill] sm:$0xff]  ;;  %v12366_v60 = vld [vmem:[#allocation224_spill] sm:$0xff]  ;;  %v9954_v13 = vpop.eup %5984 }
 0x415   : > { %v4304_v2 = vpack.c.bf16 %v12362_v15, %v12361_v7  ;;  %v4198_v62 = vrot.slane %v4191_v32, %v12356_v35  ;;  %6008 = vpow2.f32 %v9852_v51  ;;  %4526 = vmatprep.subr.bf16.mxu1 %v4307_v40  ;;  %v12364_v14 = vld [vmem:[#allocation74_spill] sm:$0xff]  ;;  %v4302_v3 = vpack.c.bf16 %v12366_v60, %v12365_v45  ;;  %v9961_v7 = vpop.eup %5986  ;;  %v12368_v51 = vld [vmem:[#allocation93_spill] sm:$0xff] }
 0x416   : > { %v4303_v48 = vpack.c.bf16 %v12364_v14, %v12363_v61  ;;  %6010 = vpow2.f32 %v3760_v26  ;;  %v12367_v63 = vsub.f32 %v12276_v25, %v9479_v47  ;;  %v4075_v6 = vadd.f32 %v9878_v10, %v4074_v34  ;;  %v12369_v15 = vld [vmem:[#allocation118_spill] sm:$0xff]  ;;  %v9970_v35 = vpop.eup %5988 }
 0x417   : > { %v4112_v32 = vadd.f32 %v9889_v12, %v4111_v56  ;;  %v4220_v40 = vadd.f32 %v4198_v62, %v12368_v51  ;;  %6012 = vpow2.f32 %v3778_v27  ;;  %v12370_v61 = vsub.f32 %v12369_v15, %v9483_v36  ;;  %v12371_v45 = vld [vmem:[#allocation114_spill] sm:$0xff]  ;;  %v9977_v27 = vpop.eup %5990 }
 0x418   : > { %v3790_v39 = vmul.f32 1.442695, %v12367_v63  ;;  %v12372_v26 = vsub.f32 %v12371_v45, %v9479_v47  ;;  %6014 = vpow2.f32 %v3780_v20  ;;  %v12373_v25 = vsub.f32 %v12286_v18, %v9483_v36  ;;  %4527 = vmatpush1.bf16.msra.mxu1 %v4306_v19  ;;  %v12376_v20 = vld [vmem:[#allocation213_spill] sm:$0xff]  ;;  %v9990_v19 = vpop.eup %5992 }
 0x419   : > { %v3792_v14 = vmul.f32 1.442695, %v12370_v61  ;;  %v4076_v56 = vadd.f32 %v9894_v17, %v4075_v6  ;;  %v4113_v62 = vadd.f32 %v9905_v5, %v4112_v32  ;;  %4228 = vst.msk [vmem:[#allocation5 + $0x4] sm:$0x3] %vm6634_vm3, %v4220_v40  ;;  %6016 = vpow2.f32 %v3782_v16  ;;  %4528 = vmatprep.subr.bf16.mxu1 %v4305_v43 }
 0x41a   : > { %v3794_v60 = vmul.f32 1.442695, %v12372_v26  ;;  %v3796_v34 = vmul.f32 1.442695, %v12373_v25  ;;  %v12375_v51 = vsub.f32 %v12287_v9, %v9479_v47  ;;  %v12377_v61 = vsub.f32 %v12376_v20, %v9483_v36  ;;  %v9997_v26 = vpop.eup %5994 }
 0x41b   : > { %v12378_v6 = vsub.f32 %v12293_v4, %v9479_v47  ;;  %6018 = vpow2.f32 %v3784_v31  ;;  %v12379_v32 = vsub.f32 %v12294_v29, %v9483_v36  ;;  %v4077_v40 = vadd.f32 %v9910_v57, %v4076_v56  ;;  %v10007_v29 = vpop.eup %5996  ;;  %v12408_v31 = vld [vmem:[#allocation60_spill] sm:$0xff] }
 0x41c   : > { %v3798_v15 = vmul.f32 1.442695, %v12375_v51  ;;  %v3800_v18 = vmul.f32 1.442695, %v12377_v61  ;;  %v4114_v9 = vadd.f32 %v9921_v44, %v4113_v62  ;;  %6020 = vpow2.f32 %v3786_v11  ;;  %4529 = vmatpush1.bf16.msra.mxu1 %v4304_v2  ;;  %v10017_v20 = vpop.eup %5998  ;;  %v12387_v2 = vld [vmem:[#allocation204_spill] sm:$0xff] }
 0x41d   : > { %v3802_v45 = vmul.f32 1.442695, %v12378_v6  ;;  %v3804_v16 = vmul.f32 1.442695, %v12379_v32  ;;  %v12380_v25 = vsub.f32 %v12299_v1, %v9479_v47  ;;  %v12381_v43 = vsub.f32 %v12300_v52, %v9483_v36  ;;  %4530 = vmatprep.subr.bf16.mxu1 %v4303_v48  ;;  %v12386_v32 = vld [vmem:[#allocation146_spill] sm:$0xff]  ;;  %v12390_v48 = vld [vmem:[#allocation117_spill] sm:$0xff] }
 0x41e   : > { %6022 = vpow2.f32 %v9915_v46  ;;  %v12382_v56 = vsub.f32 %v12304_v54, %v9479_v47  ;;  %v4078_v11 = vadd.f32 %v9927_v59, %v4077_v40  ;;  %v4115_v1 = vadd.f32 %v9933_v24, %v4114_v9  ;;  %v12385_v54 = vld [vmem:[#allocation143_spill] sm:$0xff]  ;;  %v10029_v40 = vpop.eup %6000 }
 0x41f   : > { %v3806_v4 = vmul.f32 1.442695, %v12380_v25  ;;  %v3808_v51 = vmul.f32 1.442695, %v12381_v43  ;;  %6024 = vpow2.f32 %v3790_v39  ;;  %v12383_v52 = vsub.f32 %v12305_v38, %v9483_v36  ;;  %v12392_v25 = vld [vmem:[#allocation141_spill] sm:$0xff] }
 0x420   : > { %v10013_v62 = vmul.f32 1.442695, %v12382_v56  ;;  %v12384_v46 = vsub.f32 %v12309_v23, %v9479_v47  ;;  %6026 = vpow2.f32 %v3792_v14  ;;  %v12388_v9 = vsub.f32 %v12387_v2, %v9483_v36  ;;  %v10038_v56 = vpop.eup %6002  ;;  %v12389_v23 = vld [vmem:[#allocation119_spill] sm:$0xff]  ;;  %4531 = vmatpush1.bf16.msra.mxu1 %v4302_v3 }
 0x421   : > { %v3812_v61 = vmul.f32 1.442695, %v12383_v52  ;;  %v4079_v38 = vadd.f32 %v9940_v21, %v4078_v11  ;;  %v4116_v43 = vadd.f32 %v9946_v28, %v4115_v1  ;;  %6028 = vpow2.f32 %v3794_v60  ;;  %v10046_v49 = vpop.eup %6004 }
 0x422   : > { %v10025_v6 = vmul.f32 1.442695, %v12384_v46  ;;  %v10034_v39 = vmul.f32 1.442695, %v12388_v9  ;;  %v4301_v52 = vpack.c.bf16 %v12390_v48, %v12389_v23  ;;  %6030 = vpow2.f32 %v3796_v34  ;;  %v6007_v1 = vpop.eup %6006  ;;  %v12395_v23 = vld [vmem:[#allocation133_spill] sm:$0xff]  ;;  %v12396_v48 = vld [vmem:[#allocation131_spill] sm:$0xff] }
 0x423   : > { %v4080_v2 = vadd.f32 %v9954_v13, %v4079_v38  ;;  %v4117_v11 = vadd.f32 %v9961_v7, %v4116_v43  ;;  %v4340_v60 = vpack.c.bf16 %v10038_v56, %v10017_v20  ;;  %6032 = vpow2.f32 %v3798_v15  ;;  %v10058_v14 = vpop.eup %6008  ;;  %v12406_v46 = vld [vmem:[#allocation82_spill] sm:$0xff] }
 0x424   : > { %4532 = vmatprep.subr.bf16.mxu1 %v4301_v52  ;;  %v4341_v9 = vpack.c.bf16 %v10046_v49, %v10029_v40  ;;  %v4300_v50 = vpack.c.bf16 %v12396_v48, %v12395_v23  ;;  %6034 = vpow2.f32 %v3800_v18  ;;  %v4338_v43 = vpack.c.bf16 %v9997_v26, %v9977_v27  ;;  %v6011_v15 = vpop.eup %6010 }
 0x425   : > { %v4081_v3 = vadd.f32 %v9970_v35, %v4080_v2  ;;  %v4118_v38 = vadd.f32 %v6007_v1, %v4117_v11  ;;  %6036 = vpow2.f32 %v3802_v45  ;;  %v4339_v52 = vpack.c.bf16 %v10007_v29, %v9990_v19  ;;  %v10069_v63 = vpop.eup %6012  ;;  %v12404_v45 = vld [vmem:[#allocation12_spill] sm:$0xff]  ;;  %v12420_v11 = vld [vmem:[#allocation227_spill] sm:$0xff] }
 0x426   : > { %4597 = vmatprep.subr.bf16.mxu0 %v4341_v9  ;;  %6038 = vpow2.f32 %v3804_v16  ;;  %4533 = vmatpush1.bf16.msra.mxu1 %v4300_v50  ;;  %v10074_v0 = vpop.eup %6014  ;;  %v12407_v48 = vpack.c.bf16 %v12405_v42, %v12406_v46  ;;  %v12410_v16 = vld [vmem:[#allocation64_spill] sm:$0xff]  ;;  %v12413_v50 = vld [vmem:[#allocation193_spill] sm:$0xff] }
 0x427   : > { %v4082_v18 = vadd.f32 %v10058_v14, %v4081_v3  ;;  %v4119_v2 = vadd.f32 %v6011_v15, %v4118_v38  ;;  %4598 = vmatpush1.bf16.msra.mxu0 %v4340_v60  ;;  %6040 = vpow2.f32 %v3806_v4  ;;  %v10085_v23 = vpop.eup %6016  ;;  %v12417_v60 = vsub.f32 %v12315_v55, %v9479_v47  ;;  %v12423_v55 = vld [vmem:[#allocation230_spill] sm:$0xff] }
 0x428   : > { %4534 = vmatprep.subr.bf16.mxu1 %v12407_v48  ;;  %4599 = vmatprep.subr.bf16.mxu0 %v4339_v52  ;;  %6042 = vpow2.f32 %v3808_v51  ;;  %v10091_v52 = vpop.eup %6018  ;;  %v12416_v48 = vld [vmem:[#allocation97_spill] sm:$0xff]  ;;  %v4337_v38 = vpack.c.bf16 %v6011_v15, %v6007_v1  ;;  %v3328_v1 = vsub.f32 %v12423_v55, %v9479_v47 }
 0x429   : > { %v4083_v9 = vadd.f32 %v9977_v27, %v4082_v18  ;;  %v4120_v4 = vadd.f32 %v9990_v19, %v4119_v2  ;;  %v3327_v34 = vsub.f32 %v12416_v48, %v9483_v36  ;;  %6044 = vpow2.f32 %v10013_v62  ;;  %v10099_v51 = vpop.eup %6020  ;;  %v12418_v27 = vld [vmem:[#allocation180_spill] sm:$0xff]  ;;  %v12421_v48 = vld [vmem:[#allocation90_spill] sm:$0xff] }
 0x42a   : > { %v3818_v3 = vmul.f32 1.442695, %v12417_v60  ;;  %6046 = vpow2.f32 %v3812_v61  ;;  %v12419_v19 = vsub.f32 %v12418_v27, %v9483_v36  ;;  %v12422_v42 = vpack.c.bf16 %v12420_v11, %v12421_v48  ;;  %v12425_v60 = vld [vmem:[#allocation167_spill] sm:$0xff] }
 0x42b   : > { %v4084_v2 = vadd.f32 %v9997_v26, %v4083_v9  ;;  %v4121_v46 = vadd.f32 %v10007_v29, %v4120_v4  ;;  %4600 = vmatpush1.bf16.msra.mxu0 %v4338_v43  ;;  %v10109_v62 = vpop.eup %6022  ;;  %6048 = vpow2.f32 %v10025_v6  ;;  %v12424_v61 = vsub.f32 %v12321_v41, %v9479_v47  ;;  %v12427_v9 = vld [vmem:[#allocation83_spill] sm:$0xff]  ;;  %v12428_v4 = vld [vmem:[#allocation88_spill] sm:$0xff] }
 0x42c   : > { %v3820_v18 = vmul.f32 1.442695, %v12419_v19  ;;  %4535 = vmatpush1.bf16.msra.mxu1 %v12422_v42  ;;  %v12426_v26 = vsub.f32 %v12425_v60, %v9483_v36  ;;  %v12429_v11 = vpack.c.bf16 %v12427_v9, %v12428_v4  ;;  %4601 = vmatprep.subr.bf16.mxu0 %v4337_v38  ;;  %v10123_v43 = vpop.eup %6024  ;;  %6050 = vpow2.f32 %v10034_v39  ;;  %v12430_v19 = vld [vmem:[#allocation104_spill] sm:$0xff]  ;;  %v12438_v9 = vld [vmem:[#allocation101_spill] sm:$0xff] }
 0x42d   : > { %v3822_v15 = vmul.f32 1.442695, %v12424_v61  ;;  %v4085_v42 = vadd.f32 %v10017_v20, %v4084_v2  ;;  %v4122_v6 = vadd.f32 %v10029_v40, %v4121_v46  ;;  %v4336_v41 = vpack.c.bf16 %v10058_v14, %v9970_v35  ;;  %v10130_v27 = vpop.eup %6026  ;;  %v12432_v20 = vld [vmem:[#allocation108_spill] sm:$0xff]  ;;  %v12439_v4 = vld [vmem:[#allocation105_spill] sm:$0xff] }
 0x42e   : > { %v3828_v29 = vmul.f32 1.442695, %v12426_v26  ;;  %4536 = vmatprep.subr.bf16.mxu1 %v12429_v11  ;;  %v3329_v48 = vsub.f32 %v12430_v19, %v9483_v36  ;;  %6052 = vpow2.f32 %v3818_v3  ;;  %v12431_v38 = vsub.f32 %v12332_v8, %v9483_v36  ;;  %v10139_v61 = vpop.eup %6028  ;;  %v12434_v2 = vld [vmem:[#allocation92_spill] sm:$0xff]  ;;  %v12435_v3 = vld [vmem:[#allocation99_spill] sm:$0xff] }
 0x42f   : > { %v4335_v39 = vpack.c.bf16 %v9961_v7, %v9946_v28  ;;  %6054 = vpow2.f32 %v3820_v18  ;;  %v12433_v40 = vsub.f32 %v12432_v20, %v9479_v47  ;;  %v4086_v14 = vadd.f32 %v10038_v56, %v4085_v42  ;;  %4602 = vmatpush1.bf16.msra.mxu0 %v4336_v41  ;;  %v10149_v8 = vpop.eup %6030  ;;  %v12437_v28 = vld [vmem:[#allocation136_spill] sm:$0xff] }
 0x430   : > { %v3832_v55 = vmul.f32 1.442695, %v12431_v38  ;;  %v4123_v46 = vadd.f32 %v10046_v49, %v4122_v6  ;;  %v12436_v60 = vpack.c.bf16 %v12434_v2, %v12435_v3  ;;  %v3324_v7 = vsub.f32 %v12437_v28, %v9479_v47  ;;  %v10156_v56 = vpop.eup %6032  ;;  %v12448_v2 = vld [vmem:[#allocation207_spill] sm:$0xff] }
 0x431   : > { %v3834_v35 = vmul.f32 1.442695, %v12433_v40  ;;  %6056 = vpow2.f32 %v3822_v15  ;;  %v3836_v18 = vmul.f32 1.442695, %v3327_v34  ;;  %v3838_v26 = vmul.f32 1.442695, %v3328_v1  ;;  %4603 = vmatprep.subr.bf16.mxu0 %v4335_v39  ;;  %v10162_v41 = vpop.eup %6034 }
 0x432   : > { %4537 = vmatpush1.bf16.msra.mxu1 %v12436_v60  ;;  %v12440_v11 = vpack.c.bf16 %v12438_v9, %v12439_v4  ;;  %6058 = vpow2.f32 %v3828_v29  ;;  %v4087_v49 = vadd.f32 %v10069_v63, %v4086_v14  ;;  %v4124_v42 = vadd.f32 %v10074_v0, %v4123_v46  ;;  %v12441_v1 = vld [vmem:[#allocation151_spill] sm:$0xff]  ;;  %v12442_v15 = vld [vmem:[#allocation113_spill] sm:$0xff]  ;;  %v10168_v39 = vpop.eup %6036  ;;  %v12443_v29 = vld [vmem:[#allocation162_spill] sm:$0xff] }
 0x433   : > { %v4334_v6 = vpack.c.bf16 %v9954_v13, %v9940_v21  ;;  %6060 = vpow2.f32 %v3832_v55  ;;  %v3840_v34 = vmul.f32 1.442695, %v3329_v48  ;;  %v4325_v19 = vpack.c.bf16 %v12442_v15, %v12441_v1  ;;  %v12445_v13 = vld [vmem:[#allocation98_spill] sm:$0xff]  ;;  %v10178_v46 = vpop.eup %6038 }
 0x434   : > { %4538 = vmatprep.subr.bf16.mxu1 %v12440_v11  ;;  %v4333_v38 = vpack.c.bf16 %v9933_v24, %v9921_v44  ;;  %v12444_v20 = vsub.f32 %v12443_v29, %v9483_v36  ;;  %6062 = vpow2.f32 %v3834_v35  ;;  %v4088_v14 = vadd.f32 %v10085_v23, %v4087_v49  ;;  %v12446_v55 = vld [vmem:[#allocation102_spill] sm:$0xff]  ;;  %v12450_v36 = vld [vmem:[#allocation148_spill] sm:$0xff]  ;;  %v12451_v35 = vld [vmem:[#allocation153_spill] sm:$0xff]  ;;  %v10185_v28 = vpop.eup %6040 }
 0x435   : > { %v4125_v21 = vadd.f32 %v10091_v52, %v4124_v42  ;;  %v12447_v48 = vpack.c.bf16 %v12445_v13, %v12446_v55  ;;  %4604 = vmatpush1.bf16.msra.mxu0 %v4334_v6  ;;  %v12449_v44 = vsub.f32 %v12448_v2, %v9479_v47  ;;  %v3830_v3 = vmul.f32 1.442695, %v3324_v7  ;;  %v10191_v49 = vpop.eup %6042  ;;  %v12454_v29 = vld [vmem:[#allocation121_spill] sm:$0xff]  ;;  %v12458_v13 = vld [vmem:[#allocation156_spill] sm:$0xff]  ;;  %v12459_v55 = vld [vmem:[#allocation163_spill] sm:$0xff] }
 0x436   : > { %v3824_v40 = vmul.f32 1.442695, %v12444_v20  ;;  %6064 = vpow2.f32 %v3836_v18  ;;  %4605 = vmatprep.subr.bf16.mxu0 %v4333_v38  ;;  %v4324_v60 = vpack.c.bf16 %v12451_v35, %v12450_v36  ;;  %v4089_v9 = vadd.f32 %v10099_v51, %v4088_v14  ;;  %v10195_v7 = vpop.eup %6044  ;;  %v12456_v20 = vld [vmem:[#allocation37_spill] sm:$0xff]  ;;  %v12464_v35 = vld [vmem:[#allocation134_spill] sm:$0xff] }
 0x437   : > { %4539 = vmatpush1.bf16.msra.mxu1 %v12447_v48  ;;  %v3826_v24 = vmul.f32 1.442695, %v12449_v44  ;;  %6066 = vpow2.f32 %v3838_v26  ;;  %v4126_v4 = vadd.f32 %v10109_v62, %v4125_v21  ;;  %v4332_v11 = vpack.c.bf16 %v9927_v59, %v9910_v57  ;;  %v10199_v42 = vpop.eup %6046  ;;  %v12461_v44 = vld [vmem:[#allocation147_spill] sm:$0xff]  ;;  %v12463_v36 = vld [vmem:[#allocation137_spill] sm:$0xff] }
 0x438   : > { %4540 = vmatprep.subr.bf16.mxu1 %v4325_v19  ;;  %6068 = vpow2.f32 %v3840_v34  ;;  %v4331_v47 = vpack.c.bf16 %v9905_v5, %v9889_v12  ;;  %v4090_v18 = vadd.f32 %v10123_v43, %v4089_v9  ;;  %v12452_v57 = vpack.c.bf16 %v9770_v53, %v9754_v37  ;;  %v10204_v59 = vpop.eup %6048 }
 0x439   : > { %6070 = vpow2.f32 %v3824_v40  ;;  %v4127_v26 = vadd.f32 %v10130_v27, %v4126_v4  ;;  %4606 = vmatpush1.bf16.msra.mxu0 %v4332_v11  ;;  %v4330_v6 = vpack.c.bf16 %v9894_v17, %v9878_v10  ;;  %v10210_v34 = vpop.eup %6050  ;;  %v4329_v1 = vpack.c.bf16 %v9873_v22, %v9857_v30  ;;  %v12457_v40 = vld [vmem:[#allocation39_spill] sm:$0xff] }
 0x43a   : > { %6072 = vpow2.f32 %v3826_v24  ;;  %4607 = vmatprep.subr.bf16.mxu0 %v4331_v47  ;;  %v4091_v12 = vadd.f32 %v10139_v61, %v4090_v18  ;;  %v12453_v19 = vpack.c.bf16 %v12386_v32, %v12385_v54  ;;  %v12455_v10 = vpack.c.bf16 %v12392_v25, %v12454_v29  ;;  %v12460_v25 = vld [vmem:[#allocation139_spill] sm:$0xff]  ;;  %v12471_v29 = vld [vmem:[#allocation226_spill] sm:$0xff] }
 0x43b   : > { %4541 = vmatpush2.bf16.msra.mxu1 %v4324_v60  ;;  %6074 = vpow2.f32 %v3830_v3  ;;  %v4128_v5 = vadd.f32 %v10149_v8, %v4127_v26  ;;  %v10214_v15 = vpop.eup %6052  ;;  %v4328_v14 = vpack.c.bf16 %v12457_v40, %v12456_v20  ;;  %v4327_v54 = vpack.c.bf16 %v12459_v55, %v12458_v13  ;;  %v12466_v47 = vld [vmem:[#allocation107_spill] sm:$0xff] }
 0x43c   : > { %4542 = vmatprep.subr.bf16.mxu1 %v12452_v57  ;;  %v4092_v37 = vadd.f32 %v10156_v56, %v4091_v12  ;;  %v6055_v38 = vpop.eup %6054  ;;  %v12462_v24 = vpack.c.bf16 %v12460_v25, %v12461_v44  ;;  %v12465_v60 = vpack.c.bf16 %v12463_v36, %v12464_v35  ;;  %v12467_v18 = vld [vmem:[#allocation159_spill] sm:$0xff] }
 0x43d   : > { %v4129_v53 = vadd.f32 %v10162_v41, %v4128_v5  ;;  %4608 = vmatpush1.bf16.msra.mxu0 %v4330_v6  ;;  %v4326_v26 = vpack.c.bf16 %v12467_v18, %v12466_v47  ;;  %v12474_v25 = vld [vmem:[#allocation19_spill] sm:$0xff]  ;;  %v12477_v18 = vpack.c.bf16 %v12411_v58, %v12410_v16  ;;  %v4351_v58 = vpack.c.bf16 %v10210_v34, %v10199_v42 }
 0x43e   : > { %4609 = vmatprep.subr.bf16.mxu0 %v4329_v1  ;;  %v6057_v17 = vpop.eup %6056  ;;  %v4093_v30 = vadd.f32 %v10168_v39, %v4092_v37  ;;  %v12468_v1 = vld [vmem:[#allocation135_spill] sm:$0xff]  ;;  %v12475_v44 = vpack.c.bf16 %v12404_v45, %v12474_v25  ;;  %v12479_v45 = vld [vmem:[#allocation129_spill] sm:$0xff] }
 0x43f   : > { %4543 = vmatpush2.bf16.msra.mxu1 %v12453_v19  ;;  %v4130_v22 = vadd.f32 %v10178_v46, %v4129_v53  ;;  %v6059_v21 = vpop.eup %6058  ;;  %v12469_v37 = vld [vmem:[#allocation91_spill] sm:$0xff] }
 0x440   : > { %4544 = vmatprep.subr.bf16.mxu1 %v12455_v10  ;;  %v6061_v32 = vpop.eup %6060  ;;  %v4094_v48 = vadd.f32 %v10185_v28, %v4093_v30  ;;  %v12470_v53 = vpack.c.bf16 %v12468_v1, %v12469_v37  ;;  %v12472_v10 = vld [vmem:[#allocation14_spill] sm:$0xff]  ;;  %v12481_v1 = vld [vmem:[#allocation11_spill] sm:$0xff] }
 0x441   : > { %v4131_v2 = vadd.f32 %v10191_v49, %v4130_v22  ;;  %4610 = vmatpush1.bf16.msra.mxu0 %v4328_v14  ;;  %v6063_v3 = vpop.eup %6062  ;;  %v12473_v30 = vpack.c.bf16 %v12471_v29, %v12472_v10  ;;  %v12485_v10 = vld [vmem:[#allocation10_spill] sm:$0xff] }
 0x442   : > { %4611 = vmatprep.subr.bf16.mxu0 %v4327_v54  ;;  %v4095_v4 = vadd.f32 %v10195_v7, %v4094_v48  ;;  %v4355_v54 = vpack.c.bf16 %v6061_v32, %v6059_v21 }
 0x443   : > { %4545 = vmatpush2.bf16.msra.mxu1 %v12462_v24  ;;  %v6065_v9 = vpop.eup %6064  ;;  %v4132_v11 = vadd.f32 %v10199_v42, %v4131_v2  ;;  %v12476_v24 = vpack.c.bf16 %v12409_v33, %v12408_v31  ;;  %v12482_v33 = vpack.c.bf16 %v12413_v50, %v12481_v1  ;;  %v4861_v31 = vld [vmem:[#allocation5] sm:$0x3]  ;;  %v4349_v42 = vpack.c.bf16 %v10191_v49, %v10178_v46 }
 0x444   : > { %4546 = vmatprep.subr.bf16.mxu1 %v12465_v60  ;;  %v6067_v57 = vpop.eup %6066  ;;  %v4096_v5 = vadd.f32 %v10204_v59, %v4095_v4  ;;  %6076 = vrcp.f32 %v4861_v31  ;;  %v4347_v46 = vpack.c.bf16 %v10162_v41, %v10149_v8  ;;  %v4343_v1 = vpack.c.bf16 %v10091_v52, %v10074_v0 }
 0x445   : > { %v6069_v12 = vpop.eup %6068  ;;  %v4133_v6 = vadd.f32 %v10210_v34, %v4132_v11  ;;  %4612 = vmatpush1.bf16.msra.mxu0 %v4326_v26  ;;  %v4356_v13 = vpack.c.bf16 %v6067_v57, %v6063_v3  ;;  %v12478_v26 = vld [vmem:[#allocation77_spill] sm:$0xff] }
 0x446   : > { %v6071_v19 = vpop.eup %6070  ;;  %v4357_v22 = vpack.c.bf16 %v6069_v12, %v6065_v9  ;;  %v4097_v40 = vadd.f32 %v10214_v15, %v4096_v5  ;;  %v12480_v5 = vsub.f32 %v12478_v26, %v12479_v45 }
 0x447   : > { %4547 = vmatpush2.bf16.msra.mxu1 %v12470_v53  ;;  %v6073_v20 = vpop.eup %6072  ;;  %v4134_v14 = vadd.f32 %v6055_v38, %v4133_v6  ;;  %v4353_v4 = vpack.c.bf16 %v6071_v19, %v6055_v38  ;;  %v4352_v38 = vpack.c.bf16 %v6057_v17, %v10214_v15  ;;  %v12484_v53 = vld [vmem:[#allocation206_spill] sm:$0xff]  ;;  %v12488_v15 = vld [vmem:[#allocation72_spill] sm:$0xff] }
 0x448   : > { %4548 = vmatprep.subr.bf16.mxu1 %v12473_v30  ;;  %v6075_v55 = vpop.eup %6074  ;;  %4613 = vmatprep.subr.bf16.mxu0 %v4357_v22  ;;  %v4098_v48 = vadd.f32 %v6057_v17, %v4097_v40  ;;  %v3028_v6 = vmul.f32 1.442695, %v12480_v5  ;;  %v12486_v30 = vld [vmem:[#allocation197_spill] sm:$0xff]  ;;  %v12489_v17 = vld [vmem:[#allocation202_spill] sm:$0xff] }
 0x449   : > { %v4135_v2 = vadd.f32 %v6071_v19, %v4134_v14  ;;  %4614 = vmatpush2.bf16.msra.mxu0 %v4356_v13  ;;  %v4354_v60 = vpack.c.bf16 %v6075_v55, %v6073_v20  ;;  %v12487_v22 = vpack.c.bf16 %v12485_v10, %v12486_v30  ;;  %v12491_v40 = vld [vmem:[#allocation29_spill] sm:$0xff] }
 0x44a   : > { %4615 = vmatprep.subr.bf16.mxu0 %v4355_v54  ;;  %v4099_v36 = vadd.f32 %v6073_v20, %v4098_v48  ;;  %6078 = vpow2.f32 %v3028_v6  ;;  %v4350_v20 = vpack.c.bf16 %v10204_v59, %v10195_v7  ;;  %v4348_v54 = vpack.c.bf16 %v10185_v28, %v10168_v39  ;;  %v12492_v48 = vld [vmem:[#allocation25_spill] sm:$0xff]  ;;  %v12495_v59 = vld [vmem:[#allocation150_spill] sm:$0xff] }
 0x44b   : > { %4549 = vmatpush2.bf16.msra.mxu1 %v12475_v44  ;;  %v4136_v35 = vadd.f32 %v6059_v21, %v4135_v2  ;;  %v12493_v2 = vld [vmem:[#allocation24_spill] sm:$0xff]  ;;  %v12496_v44 = vld [vmem:[#allocation59_spill] sm:$0xff]  ;;  %v4346_v39 = vpack.c.bf16 %v10156_v56, %v10139_v61  ;;  %v4345_v28 = vpack.c.bf16 %v10130_v27, %v10109_v62  ;;  %v4344_v61 = vpack.c.bf16 %v10123_v43, %v10099_v51  ;;  %v3845_v5 = vld [vmem:[#allocation5 + $0x6] sm:$0x3] }
 0x44c   : > { %4550 = vmatprep.subr.bf16.mxu1 %v12476_v24  ;;  %v4100_v11 = vadd.f32 %v6075_v55, %v4099_v36  ;;  %v12494_v25 = vpack.c.bf16 %v12492_v48, %v12493_v2  ;;  %v4689_v24 = vrot.slane %v12496_v44, %v12495_v59  ;;  %v12498_v62 = vld [vmem:[#allocation28_spill] sm:$0xff]  ;;  %v12499_v27 = vld [vmem:[#allocation26_spill] sm:$0xff] }
 0x44d   : > { %v4137_v47 = vadd.f32 %v6061_v32, %v4136_v35  ;;  %4616 = vmatpush2.bf16.msra.mxu0 %v4354_v60  ;;  %v12483_v32 = vld [vmem:[#allocation50_spill] sm:$0xff]  ;;  %v12497_v60 = vld [vmem:[#allocation152_spill] sm:$0xff]  ;;  %v12500_v6 = vpack.c.bf16 %v12498_v62, %v12499_v27 }
 0x44e   : > { %4617 = vmatprep.subr.bf16.mxu0 %v4353_v4  ;;  %v4101_v21 = vadd.f32 %v6063_v3, %v4100_v11  ;;  %v4311_v19 = vpack.c.bf16 %v12484_v53, %v12483_v32  ;;  %v4693_v4 = vrot.slane %v12496_v44, %v12497_v60  ;;  %v4412_v11 = vpop.f32.mrf.mxu0  ;;  %v12502_v32 = vmov 0  }
 0x44f   : > { %4551 = vmatpush2.bf16.msra.mxu1 %v12477_v18  ;;  %v4138_v37 = vadd.f32 %v6065_v9, %v4137_v47  ;;  %v4310_v9 = vpack.c.bf16 %v12489_v17, %v12488_v15  ;;  %v10297_v18 = vmul.f32 0.0, %v4689_v24  ;;  %v12504_v15 = vld [vmem:[#allocation45_spill] sm:$0xff] }
 0x450   : > { %4552 = vmatprep.subr.bf16.mxu1 %v12482_v33  ;;  %v4102_v16 = vadd.f32 %v6067_v57, %v4101_v21  ;;  %v4414_v56 = vpop.f32.mrf.mxu0  ;;  %v10309_v31 = vmul.f32 0.0, %v4693_v4  ;;  %v12501_v21 = vld [vmem:[#allocation144_spill] sm:$0xff] }
 0x451   : > { %v4139_v29 = vadd.f32 %v6069_v12, %v4138_v37  ;;  %4618 = vmatpush2.bf16.msra.mxu0 %v4352_v38  ;;  %v12490_v12 = vld [vmem:[#allocation27_spill] sm:$0xff]  ;;  %v6077_v47 = vpop.eup %6076  ;;  %v4758_v33 = vadd.f32 %v10297_v18, %v4412_v11  ;;  %v4863_v11 = vld [vmem:[#allocation5 + $0x4] sm:$0x3] }
 0x452   : > { %4619 = vmatprep.subr.bf16.mxu0 %v4351_v58  ;;  %v4103_v50 = vrot.slane %v4102_v16, 4  ;;  %v5467_v14 = vpack.c.bf16 %v12491_v40, %v12490_v12  ;;  %v4416_v38 = vpop.f32.mrf.mxu0  ;;  %v10314_v51 = vrot.slane %v6077_v47, %v12495_v59  ;;  %v4759_v43 = vadd.f32 %v10309_v31, %v4414_v56  ;;  %v12509_v12 = vld [vmem:[#allocation36_spill] sm:$0xff]  ;;  %v12510_v40 = vld [vmem:[#allocation34_spill] sm:$0xff] }
 0x453   : > { %4553 = vmatpush2.bf16.msra.mxu1 %v12487_v22  ;;  %v4140_v3 = vrot.slane %v4139_v29, 4  ;;  %v4760_v53 = vadd.f32 %v10297_v18, %v4416_v38 }
 0x454   : > { %4554 = vmatprep.subr.bf16.mxu1 %v4311_v19  ;;  %v4104_v34 = vadd.f32 %v4103_v50, %v4102_v16  ;;  %v4342_v19 = vpack.c.bf16 %v10085_v23, %v10069_v63  ;;  %v4418_v58 = vpop.f32.mrf.mxu0  ;;  %v10323_v16 = vmul.f32 %v10314_v51, %v4758_v33 }
 0x455   : > { %v4141_v57 = vadd.f32 %v4140_v3, %v4139_v29  ;;  %4620 = vmatpush2.bf16.msra.mxu0 %v4350_v20  ;;  %v10326_v29 = vrot.slane %v6077_v47, %v12497_v60  ;;  %v10329_v10 = vmul.f32 %v10314_v51, %v4760_v53  ;;  %v4761_v30 = vadd.f32 %v10309_v31, %v4418_v58  ;;  %v12503_v3 = vld [vmem:[#allocation35_spill] sm:$0xff]  ;;  %v12506_v20 = vld [vmem:[#allocation32_spill] sm:$0xff] }
 0x456   : > { %4621 = vmatprep.subr.bf16.mxu0 %v4349_v42  ;;  %v4105_v13 = vrot.slane %v4104_v34, 2  ;;  %v5471_v17 = vpack.c.bf16 %v12504_v15, %v12503_v3  ;;  %v12507_v42 = vld [vmem:[#allocation30_spill] sm:$0xff] }
 0x457   : > { %4555 = vmatpush2.bf16.msra.mxu1 %v4310_v9  ;;  %v4142_v55 = vrot.slane %v4141_v57, 2  ;;  %v10299_v26 = vpop.eup %6078  ;;  %v10333_v50 = vmul.f32 %v10326_v29, %v4759_v43  ;;  %v4946_v63 = vpack.c.bf16 %v10329_v10, %v10323_v16  ;;  %v10338_v23 = vmul.f32 %v10326_v29, %v4761_v30 }
 0x458   : > { %v4106_v49 = vadd.f32 %v4105_v13, %v4104_v34  ;;  %v3849_v0 = vmul.f32 %v10299_v26, %v3845_v5  ;;  %v12508_v34 = vpack.c.bf16 %v12506_v20, %v12507_v42  ;;  %v4962_v13 = vld [vmem:[%s10491_s5] sm:$0xff]  ;;  %v4713_v27 = vrot.slane %v10299_v26, %v12495_v59 }
 0x459   : > { %v4143_v7 = vadd.f32 %v4142_v55, %v4141_v57  ;;  %4622 = vmatpush2.bf16.msra.mxu0 %v4348_v54  ;;  %v4947_v57 = vpack.c.bf16 %v10338_v23, %v10333_v50  ;;  %4965 = vperm.xlu0 %5533, %v4962_v13   ;;  %v10355_v55 = vpop.f32.mrf.mxu0 }
 0x45a   : > { %4557 = vmatmul.mubr.bf16.vlgmr.msra.gmra.mxu1 %v12494_v25  ;;  %4623 = vmatprep.subr.bf16.mxu0 %v4347_v46  ;;  %v4107_v36 = vrot.slane %v4106_v49, 1  ;;  %v4750_v53 = vmul.f32 0.0, %v4713_v27  ;;  %v12513_v27 = vld [vmem:[#allocation211_spill] sm:$0xff] }
 0x45b   : > { %4566 = vmatprep.mubr.bf16.mxu1 %v5467_v14  ;;  %v4144_v35 = vrot.slane %v4143_v7, 1  ;;  %v12511_v14 = vpack.c.bf16 %v12509_v12, %v12510_v40  ;;  %v10357_v54 = vpop.f32.mrf.mxu0 }
 0x45c   : > { %v4108_v8 = vadd.f32 %v4107_v36, %v4106_v49 }
 0x45d   : > { %v4145_v41 = vadd.f32 %v4144_v35, %v4143_v7  ;;  %4624 = vmatpush2.bf16.msra.mxu0 %v4346_v39  ;;  %v10359_v48 = vpop.f32.mrf.mxu0 }
 0x45e   : > { %4625 = vmatprep.subr.bf16.mxu0 %v4345_v28 }
 0x45f   : > { %v4199_v45 = vcombine.low %v4108_v8, %v4145_v41  ;;  %v10361_v2 = vpop.f32.mrf.mxu0 }
 0x461   : > { %v4206_v37 = vrot.slane %v4199_v45, %v12501_v21  ;;  %4626 = vmatpush2.bf16.msra.mxu0 %v4344_v61 }
 0x462   : > { %4567 = vmatmul.mubr.bf16.gmra.mxu1 %v12500_v6  ;;  %4627 = vmatprep.subr.bf16.mxu0 %v4343_v1  ;;  %v4717_v6 = vrot.slane %v10299_v26, %v12497_v60  ;;  %v4862_v1 = vld [vmem:[#allocation5 + $0x2] sm:$0x3] }
 0x463   : > { %5000 = vmatprep.mubr.bf16.mxu1 %v12502_v32  ;;  %v4213_v52 = vrot.slane %v4206_v37, %v12501_v21  ;;  %v12512_v32 = vld [vmem:[#allocation120_spill] sm:$0xff] }
 0x464   : > { %v4709_v43 = vrot.slane %v12512_v32, %v12497_v60 }
 0x465   : > { %v4221_v22 = vadd.f32 %v4213_v52, %v3849_v0  ;;  %4628 = vmatpush2.bf16.msra.mxu0 %v4342_v19  ;;  %v4751_v0 = vmul.f32 0.0, %v4717_v6  ;;  %v4701_v6 = vrot.slane %v12513_v27, %v12497_v60 }
 0x466   : > { %v4743_v9 = vmul.f32 0.0, %v4709_v43 }
 0x467   : > { %4229 = vst.msk [vmem:[#allocation5 + $0x6] sm:$0x3] %vm6634_vm3, %v4221_v22  ;;  %v4705_v22 = vrot.slane %v12512_v32, %v12495_v59 }
 0x468   : > { %4630 = vmatmul.mubr.bf16.vlgmr.msra.gmra.mxu0 %v12508_v34 }
 0x469   : > { %4639 = vmatprep.mubr.bf16.mxu0 %v5471_v17 }
 0x46e   : > { %v4864_v4 = vld [vmem:[#allocation5 + $0x6] sm:$0x3] }
 0x46f   : > { %6080 = vrcp.f32 %v4864_v4 }
 0x470   : > { %4640 = vmatmul.mubr.bf16.gmra.mxu0 %v12511_v14  ;;  %6082 = vrcp.f32 %v4863_v11 }
 0x471   : > { %6084 = vrcp.f32 %v4862_v1  ;;  %v4742_v1 = vmul.f32 0.0, %v4705_v22 }
 0x47c   : > { %v6081_v38 = vpop.eup %6080 }
 0x47d   : > { %v4900_v26 = vrot.slane %v6081_v38, %v12495_v59  ;;  %v4904_v42 = vrot.slane %v6081_v38, %v12497_v60  ;;  %v6083_v12 = vpop.eup %6082 }
 0x494   : > { %v10363_v25 = vpop.f32.mrf.mxu0 }
 0x496   : > { %v10365_v46 = vpop.f32.mrf.mxu0 }
 0x498   : > { %v10367_v49 = vpop.f32.mrf.mxu0 }
 0x49a   : > { %v10369_v7 = vpop.f32.mrf.mxu0 }
 0x49e   : > { %v10371_v44 = vpop.f32.mrf.mxu0 }
 0x4a0   : > { %v10375_v36 = vpop.f32.mrf.mxu0 }
 0x4a2   : > { %v10379_v39 = vpop.f32.mrf.mxu0 }
 0x4a4   : > { %v10383_v8 = vpop.f32.mrf.mxu0 }
 0x51a   : > { %v10373_v24 = vpop.f32.mrf.mxu1 }
 0x51c   : > { %v10377_v35 = vpop.f32.mrf.mxu1 }
 0x51e   : > { %v10381_v28 = vpop.f32.mrf.mxu1 }
 0x520   : > { %v4564_v41 = vpop.f32.mrf.mxu1 }
 0x522   : > { %v4568_v45 = vpop.f32.mrf.mxu1 }
 0x523   : > { %v4778_v22 = vadd.f32 %v4742_v1, %v4568_v45 }
 0x524   : > { %v4570_v5 = vpop.f32.mrf.mxu1 }
 0x525   : > { %v4779_v43 = vadd.f32 %v4743_v9, %v4570_v5  ;;  %v4775_v5 = vadd.f32 %v4743_v9, %v10377_v35 }
 0x526   : > { %v4572_v21 = vpop.f32.mrf.mxu1 }
 0x527   : > { %v4780_v38 = vadd.f32 %v4742_v1, %v4572_v21  ;;  %v6085_v21 = vpop.eup %6084 }
 0x528   : > { %v4631_v47 = vpop.f32.mrf.mxu0  ;;  %v4574_v3 = vpop.f32.mrf.mxu1 }
 0x529   : > { %v4781_v13 = vadd.f32 %v4743_v9, %v4574_v3  ;;  %v4892_v3 = vrot.slane %v6083_v12, %v12495_v59 }
 0x52a   : > { %v4633_v61 = vpop.f32.mrf.mxu0 }
 0x52b   : > { %v4783_v20 = vadd.f32 %v4751_v0, %v4633_v61  ;;  %v4933_v45 = vmul.f32 %v4892_v3, %v4778_v22 }
 0x52c   : > { %v4635_v56 = vpop.f32.mrf.mxu0 }
 0x52d   : > { %v4784_v40 = vadd.f32 %v4750_v53, %v4635_v56  ;;  %v4938_v61 = vmul.f32 %v4904_v42, %v4783_v20  ;;  %v4777_v56 = vadd.f32 %v4743_v9, %v4564_v41  ;;  %v4776_v20 = vadd.f32 %v4742_v1, %v10381_v28 }
 0x52e   : > { %v4637_v62 = vpop.f32.mrf.mxu0  ;;  %v4935_v41 = vmul.f32 %v4892_v3, %v4780_v38 }
 0x52f   : > { %v4785_v19 = vadd.f32 %v4751_v0, %v4637_v62  ;;  %v4931_v28 = vmul.f32 %v4892_v3, %v4776_v20 }
 0x530   : > { %v4641_v33 = vpop.f32.mrf.mxu0 }
 0x531   : > { %v4786_v15 = vadd.f32 %v4750_v53, %v4641_v33  ;;  %v4940_v4 = vmul.f32 %v4904_v42, %v4785_v19  ;;  %v4896_v33 = vrot.slane %v6083_v12, %v12497_v60  ;;  %v4774_v12 = vadd.f32 %v4742_v1, %v10373_v24 }
 0x532   : > { %v4643_v37 = vpop.f32.mrf.mxu0 }
 0x533   : > { %v4787_v58 = vadd.f32 %v4751_v0, %v4643_v37  ;;  %v4782_v37 = vadd.f32 %v4750_v53, %v4631_v47  ;;  %v4941_v32 = vmul.f32 %v4900_v26, %v4786_v15  ;;  %v4959_v19 = vpack.c.bf16 %v4940_v4, %v4938_v61 }
 0x534   : > { %v4645_v52 = vpop.f32.mrf.mxu0  ;;  %v4934_v15 = vmul.f32 %v4896_v33, %v4779_v43  ;;  %v4930_v9 = vmul.f32 %v4896_v33, %v4775_v5  ;;  %v4929_v1 = vmul.f32 %v4892_v3, %v4774_v12 }
 0x535   : > { %v4788_v30 = vadd.f32 %v4750_v53, %v4645_v52  ;;  %v4942_v11 = vmul.f32 %v4904_v42, %v4787_v58  ;;  %v4697_v58 = vrot.slane %v12513_v27, %v12495_v59  ;;  %v4937_v47 = vmul.f32 %v4900_v26, %v4782_v37 }
 0x536   : > { %v4647_v17 = vpop.f32.mrf.mxu0  ;;  %v4735_v53 = vmul.f32 0.0, %v4701_v6  ;;  %v4884_v6 = vrot.slane %v6085_v21, %v12495_v59 }
 0x537   : > { %v4789_v34 = vadd.f32 %v4751_v0, %v4647_v17  ;;  %v4943_v14 = vmul.f32 %v4900_v26, %v4788_v30  ;;  %v4939_v0 = vmul.f32 %v4900_v26, %v4784_v40  ;;  %v4936_v30 = vmul.f32 %v4896_v33, %v4781_v13 }
 0x538   : > { %v4932_v40 = vmul.f32 %v4896_v33, %v4777_v56  ;;  %v4734_v13 = vmul.f32 0.0, %v4697_v58  ;;  %v4888_v26 = vrot.slane %v6085_v21, %v12497_v60  ;;  %v4771_v35 = vadd.f32 %v4735_v53, %v10375_v36 }
 0x539   : > { %v4944_v62 = vmul.f32 %v4904_v42, %v4789_v34  ;;  %v4960_v17 = vpack.c.bf16 %v4943_v14, %v4941_v32  ;;  %v4958_v42 = vpack.c.bf16 %v4939_v0, %v4937_v47  ;;  %v4773_v34 = vadd.f32 %v4735_v53, %v10383_v8 }
 0x53a   : > { %v4957_v14 = vpack.c.bf16 %v4936_v30, %v4934_v15  ;;  %v4772_v4 = vadd.f32 %v4734_v13, %v10379_v39  ;;  %v4955_v27 = vpack.c.bf16 %v4932_v40, %v4930_v9  ;;  %v4770_v24 = vadd.f32 %v4734_v13, %v10371_v44 }
 0x53b   : > { %v4961_v52 = vpack.c.bf16 %v4944_v62, %v4942_v11  ;;  %v4956_v11 = vpack.c.bf16 %v4935_v41, %v4933_v45  ;;  %v4769_v62 = vadd.f32 %v4735_v53, %v10369_v7  ;;  %v4928_v8 = vmul.f32 %v4888_v26, %v4773_v34 }
 0x53c   : > { %v4767_v60 = vadd.f32 %v4735_v53, %v10365_v46  ;;  %v4926_v37 = vmul.f32 %v4888_v26, %v4771_v35  ;;  %v4768_v36 = vadd.f32 %v4734_v13, %v10367_v49  ;;  %v4927_v32 = vmul.f32 %v4884_v6, %v4772_v4 }
 0x53d   : > { %4968 = vmatprep.subr.bf16.mxu1 %v4961_v52  ;;  %v4954_v39 = vpack.c.bf16 %v4931_v28, %v4929_v1  ;;  %v4765_v33 = vadd.f32 %v10309_v31, %v10361_v2  ;;  %v4924_v7 = vmul.f32 %v4888_v26, %v4769_v62  ;;  %v4766_v61 = vadd.f32 %v4734_v13, %v10363_v25 }
 0x53e   : > { %4969 = vmatpush1.bf16.msra.mxu1 %v4960_v17  ;;  %v4953_v43 = vpack.c.bf16 %v4928_v8, %v4926_v37  ;;  %v4925_v59 = vmul.f32 %v4884_v6, %v4770_v24  ;;  %v4763_v44 = vadd.f32 %v10309_v31, %v10357_v54  ;;  %v4922_v52 = vmul.f32 %v4888_v26, %v4767_v60 }
 0x53f   : > { %4970 = vmatprep.subr.bf16.mxu1 %v4959_v19  ;;  %v4764_v46 = vadd.f32 %v10297_v18, %v10359_v48  ;;  %v4923_v49 = vmul.f32 %v4884_v6, %v4768_v36  ;;  %v4920_v0 = vmul.f32 %v10326_v29, %v4765_v33  ;;  %v4762_v2 = vadd.f32 %v10297_v18, %v10355_v55  ;;  %v4945_v18 = vld [vmem:[%s10490_s4] sm:$0xf] }
 0x540   : > { %v4952_v38 = vpack.c.bf16 %v4927_v32, %v4925_v59  ;;  %v4951_v17 = vpack.c.bf16 %v4924_v7, %v4922_v52  ;;  %v4921_v56 = vmul.f32 %v4884_v6, %v4766_v61  ;;  %v4918_v25 = vmul.f32 %v10326_v29, %v4763_v44 }
 0x541   : > { %v4919_v31 = vmul.f32 %v10314_v51, %v4764_v46  ;;  %v4917_v48 = vmul.f32 %v10314_v51, %v4762_v2  ;;  %v4966_v51 = vpop.permute.xlu0 %4965 }
 0x542   : > { %4971 = vmatpush1.bf16.msra.mxu1 %v4958_v42  ;;  %v4950_v54 = vpack.c.bf16 %v4923_v49, %v4921_v56  ;;  %v4949_v30 = vpack.c.bf16 %v4920_v0, %v4918_v25 }
 0x543   : > { %4972 = vmatprep.subr.bf16.mxu1 %v4957_v14  ;;  %v4948_v19 = vpack.c.bf16 %v4919_v31, %v4917_v48 }
 0x546   : > { %4973 = vmatpush1.bf16.msra.mxu1 %v4956_v11 }
 0x547   : > { %4974 = vmatprep.subr.bf16.mxu1 %v4955_v27 }
 0x54a   : > { %4975 = vmatpush1.bf16.msra.mxu1 %v4954_v39 }
 0x54b   : > { %4976 = vmatprep.subr.bf16.mxu1 %v4953_v43 }
 0x54e   : > { %4977 = vmatpush1.bf16.msra.mxu1 %v4952_v38 }
 0x54f   : > { %4978 = vmatprep.subr.bf16.mxu1 %v4951_v17 }
 0x552   : > { %4979 = vmatpush1.bf16.msra.mxu1 %v4950_v54 }
 0x553   : > { %4980 = vmatprep.subr.bf16.mxu1 %v4949_v30 }
 0x556   : > { %4981 = vmatpush1.bf16.msra.mxu1 %v4948_v19 }
 0x557   : > { %4982 = vmatprep.subr.bf16.mxu1 %v4947_v57 }
 0x55a   : > { %4983 = vmatpush1.bf16.msra.mxu1 %v4946_v63 }
 0x55d   : > { %5001 = vmatmul.mubr.bf16.vlgmr.msra.gmra.mxu1 %v4945_v18 }
 0x61d   : > { %v5002_v29 = vpop.f32.mrf.mxu1 }
 0x61e   : > { %v5003_v55 = vadd.f32 %v5002_v29, %v4966_v51 }
 0x61f   : > { %v5004_v50 = vpop.f32.mrf.mxu1 }
 0x620   : > { %v5005_v23 = vadd.f32 %v5004_v50, %v4966_v51  ;;  %5009 = vst [vmem:[%s312_s18] sm:$0xff] %v5003_v55 }
 0x621   : > { %v5006_v16 = vpop.f32.mrf.mxu1 }
 0x622   : > { %5010 = vst [vmem:[%s312_s18 + $0x8] sm:$0xff] %v5005_v23 }
 0x623   : > { %v5007_v10 = vpop.f32.mrf.mxu1 }
 0x624   : > { %6099 = shalt.err (!%p6096_p5)
}
 0x625   : > { %s6100_s13 = scalar_lea.hbm %s10440_s28, 256  ;;  %s6104_s16 = scalar_lea.hbm %s10492_s6, 512 }
 0x626   : > { %p6101_p6 = scmp.ne.s32.totalorder %s10440_s28, %s6100_s13  ;;  %p6105_p10 = scmp.lt.s32.totalorder %s10440_s28, %s10492_s6 }
 0x627   : > { %p6106_p11 = scmp.lt.s32.totalorder %s6104_s16, %s6100_s13 }
 0x628   : > { %p6102_p7 = pnand %p6101_p6, %p6244_p4 }
 0x629   : > { %p6107_p12 = por %p6106_p11, %p6105_p10 }
 0x62a   : > { %p6103_p9 = pneg %p6102_p7 }
 0x62c   : > { %p6108_p13 = pnand %p6107_p12, %p6103_p9 }
 0x62e   : > { %6111 = shalt.err (!%p6108_p13)
}
 0x62f   : > { %5474 = dma.vmem_to_hbm [thread:$0]  (%p6244_p4), %s10442_s19, 256, %s10440_s28, %s5012_s24  }
 0x630 PF: > { %p5480_p0 = scmp.ge.s32.totalorder %s6162_s26, 2  ;;  %s5040_s20 = sand.u32 1, %s6142_s21  }
 0x631   : > { %s5041_s27 = scalar_lea.sflag [#allocation8], %s5040_s20 }
 0x632   : > { %p5477_p1 = pnand %p5480_p0, %p6251_p8 }
 0x634   : > { %p5478_p2 = pneg %p5477_p1 }
 0x636   : > { %6137 = dma.done.wait (%p5478_p2), %s5041_s27, 256  }
 0x637   : > { %6139 = vsyncadd (%p5478_p2), %s5041_s27, 4294967040  ;;  %s19_s26 = sadd.s32 1, %s6162_s26   ;;  %s12514_s21 = smov %s6146_s22 }
 0x638   : > { %p16_p3 = scmp.ge.s32.totalorder %s19_s26, 4   ;;  %s12515_s22 = smov %s6150_s23 }
 0x639   : > { %s12516_s23 = smov %s6257_s10  ;;  %s12517_s24 = smov %s6158_s25 }
 0x63a   : > { %s12518_s25 = smov %s12520_s29  ;;  %18 = sbr.rel (!%p16_p3) target bundleno = 4 (0x4), region = 97 }
 0x63f   :  { %5046 = vsyncpa [#allocation8], 1 }
 0x640   :  { %5048 = vsyncpa [#allocation8 + $0x1], 1 }

</bundles_post_ra>
